<compile_context>
chip_gen: v7x
topology: tpu7x:2x2x1
jax: 0.10.0
libtpu: 0.0.40
codegen_flags: <defaults>
</compile_context>

<pallas_src>
import functools

import jax
import jax.numpy as jnp
from jax.experimental import pallas as pl
from jax.experimental.pallas import tpu as pltpu

# ----------------------- scaled-down ViT config -------------------------------
CHANNELS = 3
IMG_SIZE = 64          # vit-base: 224
PATCH = 16             # vit-base: 16
HIDDEN = 128           # vit-base: 768
NUM_LAYERS = 2         # vit-base: 12
NUM_HEADS = 4          # vit-base: 12
INTER = 512            # vit-base: 3072
LN_EPS_VIT = 1e-12     # HF ViT layer_norm_eps
LN_EPS_FINAL = 1e-5    # nn.LayerNorm default eps

N_PATCHES = (IMG_SIZE // PATCH) ** 2      # 16
SEQ = N_PATCHES + 1                       # 17 (CLS + patches)


def _round_up(x, m):
    return -(-x // m) * m


# ------------------------------ in-kernel helpers ------------------------------
def _ln(x, g, b, eps):
    """LayerNorm of an f32 (rows, H) value; g/b are (1, H)."""
    mu = jnp.mean(x, axis=-1, keepdims=True)
    var = jnp.mean(jnp.square(x - mu), axis=-1, keepdims=True)
    return (x - mu) * jax.lax.rsqrt(var + eps) * g + b


# ------------------------------ fused encoder kernel ---------------------------
def _encoder_kernel(patches_ref, emb_ref, w_patch_ref,
                    w_qkv_ref, b_qkv_ref, wo_ref, bo_ref, ln1_g_ref, ln1_b_ref,
                    wi_ref, bi_ref, wo2_ref, bo2_ref, ln2_g_ref, ln2_b_ref,
                    vit_g_ref, vit_b_ref, fin_g_ref, fin_b_ref,
                    out_ref, *, n_layers, n_heads, seq_valid):
    """One grid step = one batch element. Weights + activations VMEM-resident."""
    s_pad = patches_ref.shape[0]
    hidden = w_patch_ref.shape[1]
    d_head = hidden // n_heads
    scale = 1.0 / (d_head ** 0.5)

    # --- patch embedding + CLS/pos embeddings --------------------------------
    # emb already contains: row 0 = cls + pos[0]; patch rows = pos[i] + conv
    # bias; pad rows = 0. CLS / pad rows of `patches` are zero, so the matmul
    # contributes nothing to them.
    x = jnp.dot(patches_ref[...], w_patch_ref[...],
                preferred_element_type=jnp.float32) + emb_ref[...]   # (S_pad,H) f32

    # additive key mask for the padded tail (ViT itself is unmasked; padding
    # only exists for clean (8,128)/bf16 tiling)
    key_pos = jax.lax.broadcasted_iota(jnp.int32, (1, s_pad), 1)
    key_bias = jnp.where(key_pos < seq_valid, 0.0, -1e30).astype(jnp.float32)

    # --- pre-LN transformer layers (statically unrolled, weights indexed [l]) --
    for l in range(n_layers):
        # ---- MHSA block ----
        h_in = _ln(x, ln1_g_ref[l], ln1_b_ref[l], LN_EPS_VIT)
        qkv = jnp.dot(h_in.astype(jnp.bfloat16), w_qkv_ref[l],
                      preferred_element_type=jnp.float32) + b_qkv_ref[l]
        q_all = qkv[:, 0 * hidden:1 * hidden].astype(jnp.bfloat16)
        k_all = qkv[:, 1 * hidden:2 * hidden].astype(jnp.bfloat16)
        v_all = qkv[:, 2 * hidden:3 * hidden].astype(jnp.bfloat16)

        ctx_parts = []
        for h in range(n_heads):               # static unroll over heads
            sl = slice(h * d_head, (h + 1) * d_head)
            s = jax.lax.dot_general(q_all[:, sl], k_all[:, sl],
                                    (((1,), (1,)), ((), ())),
                                    preferred_element_type=jnp.float32)
            s = s * scale + key_bias                         # (S_pad, S_pad)
            m = jnp.max(s, axis=-1, keepdims=True)
            p = jnp.exp(s - m)
            denom = jnp.sum(p, axis=-1, keepdims=True)
            p = p * pl.reciprocal(denom, approx=True)
            ctx_parts.append(jnp.dot(p.astype(jnp.bfloat16), v_all[:, sl],
                                     preferred_element_type=jnp.float32))
        ctx = jnp.concatenate(ctx_parts, axis=-1)            # (S_pad, H) f32

        attn_out = jnp.dot(ctx.astype(jnp.bfloat16), wo_ref[l],
                           preferred_element_type=jnp.float32) + bo_ref[l]
        x = x + attn_out                                     # f32 residual

        # ---- FFN block ----
        h_ffn = _ln(x, ln2_g_ref[l], ln2_b_ref[l], LN_EPS_VIT)
        ffn = jnp.dot(h_ffn.astype(jnp.bfloat16), wi_ref[l],
                      preferred_element_type=jnp.float32) + bi_ref[l]
        # TODO(synk): HF ViT uses exact erf-GELU; tanh-approx GELU used in-kernel.
        ffn = jax.nn.gelu(ffn, approximate=True)
        ffn_out = jnp.dot(ffn.astype(jnp.bfloat16), wo2_ref[l],
                          preferred_element_type=jnp.float32) + bo2_ref[l]
        x = x + ffn_out                                      # f32 residual

    # --- ViT final LayerNorm -> CLS slice -> nn.LayerNorm (CLS row only) ------
    cls = x[0:1, :]                                          # (1, H) f32
    cls = _ln(cls, vit_g_ref[...], vit_b_ref[...], LN_EPS_VIT)
    cls = _ln(cls, fin_g_ref[...], fin_b_ref[...], LN_EPS_FINAL)
    out_ref[...] = cls.reshape(1, 1, hidden)


# ----------------------------- parameter setup --------------------------------
def init_params(key):
    std = 0.02
    L, H = NUM_LAYERS, HIDDEN

    def nrm(k, shape, dtype=jnp.float32):
        return (jax.random.normal(k, shape, jnp.float32) * std).astype(dtype)

    keys = jax.random.split(key, 8)
    return {
        # patch-conv expressed as matmul: (C*P*P, HIDDEN) weight
        "w_patch": nrm(keys[0], (CHANNELS * PATCH * PATCH, H), jnp.bfloat16),
        "b_patch": jnp.zeros((H,), jnp.float32),
        "cls_token": nrm(keys[1], (1, H)),
        "pos_emb": nrm(keys[2], (SEQ, H)),
        "vit_ln_g": jnp.ones((1, H), jnp.float32),      # ViTModel.layernorm
        "vit_ln_b": jnp.zeros((1, H), jnp.float32),
        "final_ln_g": jnp.ones((1, H), jnp.float32),    # nn.LayerNorm(hidden)
        "final_ln_b": jnp.zeros((1, H), jnp.float32),
        # per-layer weights stacked on a leading NUM_LAYERS axis
        "w_qkv": nrm(keys[3], (L, H, 3 * H), jnp.bfloat16),
        "b_qkv": jnp.zeros((L, 1, 3 * H), jnp.float32),
        "wo": nrm(keys[4], (L, H, H), jnp.bfloat16),
        "bo": jnp.zeros((L, 1, H), jnp.float32),
        "ln1_g": jnp.ones((L, 1, H), jnp.float32),      # layernorm_before
        "ln1_b": jnp.zeros((L, 1, H), jnp.float32),
        "wi": nrm(keys[5], (L, H, INTER), jnp.bfloat16),
        "bi": jnp.zeros((L, 1, INTER), jnp.float32),
        "wo2": nrm(keys[6], (L, INTER, H), jnp.bfloat16),
        "bo2": jnp.zeros((L, 1, H), jnp.float32),
        "ln2_g": jnp.ones((L, 1, H), jnp.float32),      # layernorm_after
        "ln2_b": jnp.zeros((L, 1, H), jnp.float32),
    }


# ------------------------------- forward pass ----------------------------------
def vit_encoder_forward(params, pixel_values):
    """Mirrors ViTEncoder.forward: ViT(last_hidden_state)[:, 0, :] -> LayerNorm."""
    B, C, IMG, _ = pixel_values.shape
    P = PATCH
    nP = IMG // P
    n_patches = nP * nP
    S = n_patches + 1
    S_pad = _round_up(S, 16)                  # 32: clean bf16 sublane packing
    H = HIDDEN
    CP2 = C * P * P
    L = NUM_LAYERS

    # --- patchify (Conv2d(k=P, s=P) as unfold); insert zero CLS row + zero pad
    #     rows so the kernel needs no scatter --------------------------------
    patches = pixel_values.reshape(B, C, nP, P, nP, P)
    patches = patches.transpose(0, 2, 4, 1, 3, 5).reshape(B, n_patches, CP2)
    patches = jnp.pad(patches, ((0, 0), (1, S_pad - S), (0, 0)))
    patches = patches.reshape(B * S_pad, CP2).astype(jnp.bfloat16)

    # additive embedding rows (batch-independent): CLS+pos[0] / pos[i]+conv-bias
    # / 0 for pad rows. TODO(synk): dropout layers omitted (inference).
    emb = jnp.concatenate(
        [params["cls_token"] + params["pos_emb"][0:1],
         params["pos_emb"][1:S] + params["b_patch"][None, :],
         jnp.zeros((S_pad - S, H), jnp.float32)], axis=0)    # (S_pad, H) f32

    kern = functools.partial(_encoder_kernel, n_layers=L,
                             n_heads=NUM_HEADS, seq_valid=S)

    full2 = lambda b: (0, 0)
    full3 = lambda b: (0, 0, 0)
    out = pl.pallas_call(
        kern,
        grid=(B,),
        in_specs=[
            pl.BlockSpec((S_pad, CP2), lambda b: (b, 0)),    # patches (per batch)
            pl.BlockSpec((S_pad, H), full2),                 # emb rows
            pl.BlockSpec((CP2, H), full2),                   # w_patch
            pl.BlockSpec((L, H, 3 * H), full3),              # w_qkv
            pl.BlockSpec((L, 1, 3 * H), full3),              # b_qkv
            pl.BlockSpec((L, H, H), full3),                  # wo
            pl.BlockSpec((L, 1, H), full3),                  # bo
            pl.BlockSpec((L, 1, H), full3),                  # ln1_g
            pl.BlockSpec((L, 1, H), full3),                  # ln1_b
            pl.BlockSpec((L, H, INTER), full3),              # wi
            pl.BlockSpec((L, 1, INTER), full3),              # bi
            pl.BlockSpec((L, INTER, H), full3),              # wo2
            pl.BlockSpec((L, 1, H), full3),                  # bo2
            pl.BlockSpec((L, 1, H), full3),                  # ln2_g
            pl.BlockSpec((L, 1, H), full3),                  # ln2_b
            pl.BlockSpec((1, H), full2),                     # vit_ln_g
            pl.BlockSpec((1, H), full2),                     # vit_ln_b
            pl.BlockSpec((1, H), full2),                     # final_ln_g
            pl.BlockSpec((1, H), full2),                     # final_ln_b
        ],
        out_specs=pl.BlockSpec((1, 1, H), lambda b: (b, 0, 0)),
        out_shape=jax.ShapeDtypeStruct((B, 1, H), jnp.float32),
        compiler_params=pltpu.CompilerParams(
            dimension_semantics=("parallel",)),
    )(patches, emb, params["w_patch"],
      params["w_qkv"], params["b_qkv"], params["wo"], params["bo"],
      params["ln1_g"], params["ln1_b"],
      params["wi"], params["bi"], params["wo2"], params["bo2"],
      params["ln2_g"], params["ln2_b"],
      params["vit_ln_g"], params["vit_ln_b"],
      params["final_ln_g"], params["final_ln_b"])
    return out.reshape(B, H)


# ----------------------------------- main ---------------------------------------
if __name__ == "__main__":
    key = jax.random.PRNGKey(0)
    pkey, ikey = jax.random.split(key)

    params = init_params(pkey)

    B = 2
    img_inputs = jax.random.normal(
        ikey, (B, CHANNELS, IMG_SIZE, IMG_SIZE), jnp.float32)

    fwd = jax.jit(vit_encoder_forward)
    cls_embedding = fwd(params, img_inputs)
    jax.block_until_ready(cls_embedding)

    assert cls_embedding.shape == (B, HIDDEN)
    assert cls_embedding.dtype == jnp.float32
    assert bool(jnp.all(jnp.isfinite(cls_embedding)))
    print("KERNEL_OK")
</pallas_src>

<mosaic_0001>
module attributes {stable_mosaic.version = 11 : i64} {
  func.func @_encoder_kernel(%arg0: i32, %arg1: memref<32x768xbf16, #tpu.memory_space<vmem>>, %arg2: memref<32x128xf32, #tpu.memory_space<vmem>>, %arg3: memref<768x128xbf16, #tpu.memory_space<vmem>>, %arg4: memref<2x128x384xbf16, #tpu.memory_space<vmem>>, %arg5: memref<2x1x384xf32, #tpu.memory_space<vmem>>, %arg6: memref<2x128x128xbf16, #tpu.memory_space<vmem>>, %arg7: memref<2x1x128xf32, #tpu.memory_space<vmem>>, %arg8: memref<2x1x128xf32, #tpu.memory_space<vmem>>, %arg9: memref<2x1x128xf32, #tpu.memory_space<vmem>>, %arg10: memref<2x128x512xbf16, #tpu.memory_space<vmem>>, %arg11: memref<2x1x512xf32, #tpu.memory_space<vmem>>, %arg12: memref<2x512x128xbf16, #tpu.memory_space<vmem>>, %arg13: memref<2x1x128xf32, #tpu.memory_space<vmem>>, %arg14: memref<2x1x128xf32, #tpu.memory_space<vmem>>, %arg15: memref<2x1x128xf32, #tpu.memory_space<vmem>>, %arg16: memref<1x128xf32, #tpu.memory_space<vmem>>, %arg17: memref<1x128xf32, #tpu.memory_space<vmem>>, %arg18: memref<1x128xf32, #tpu.memory_space<vmem>>, %arg19: memref<1x128xf32, #tpu.memory_space<vmem>>, %arg20: memref<1x1x128xf32, #tpu.memory_space<vmem>>) attributes {dimension_semantics = [#tpu.dimension_semantics<parallel>], iteration_bounds = array<i64: 2>, scalar_prefetch = 0 : i64, scratch_operands = 0 : i64, tpu.core_type = #tpu.core_type<tc>, window_params = [{transform_indices = @transform_0, window_bounds = array<i64: 32, 768>}, {pipeline_mode = #tpu.pipeline_mode<synchronous>, transform_indices = @transform_1, window_bounds = array<i64: 32, 128>}, {pipeline_mode = #tpu.pipeline_mode<synchronous>, transform_indices = @transform_2, window_bounds = array<i64: 768, 128>}, {pipeline_mode = #tpu.pipeline_mode<synchronous>, transform_indices = @transform_3, window_bounds = array<i64: 2, 128, 384>}, {pipeline_mode = #tpu.pipeline_mode<synchronous>, transform_indices = @transform_4, window_bounds = array<i64: 2, 1, 384>}, {pipeline_mode = #tpu.pipeline_mode<synchronous>, transform_indices = @transform_5, window_bounds = array<i64: 2, 128, 128>}, {pipeline_mode = #tpu.pipeline_mode<synchronous>, transform_indices = @transform_6, window_bounds = array<i64: 2, 1, 128>}, {pipeline_mode = #tpu.pipeline_mode<synchronous>, transform_indices = @transform_7, window_bounds = array<i64: 2, 1, 128>}, {pipeline_mode = #tpu.pipeline_mode<synchronous>, transform_indices = @transform_8, window_bounds = array<i64: 2, 1, 128>}, {pipeline_mode = #tpu.pipeline_mode<synchronous>, transform_indices = @transform_9, window_bounds = array<i64: 2, 128, 512>}, {pipeline_mode = #tpu.pipeline_mode<synchronous>, transform_indices = @transform_10, window_bounds = array<i64: 2, 1, 512>}, {pipeline_mode = #tpu.pipeline_mode<synchronous>, transform_indices = @transform_11, window_bounds = array<i64: 2, 512, 128>}, {pipeline_mode = #tpu.pipeline_mode<synchronous>, transform_indices = @transform_12, window_bounds = array<i64: 2, 1, 128>}, {pipeline_mode = #tpu.pipeline_mode<synchronous>, transform_indices = @transform_13, window_bounds = array<i64: 2, 1, 128>}, {pipeline_mode = #tpu.pipeline_mode<synchronous>, transform_indices = @transform_14, window_bounds = array<i64: 2, 1, 128>}, {pipeline_mode = #tpu.pipeline_mode<synchronous>, transform_indices = @transform_15, window_bounds = array<i64: 1, 128>}, {pipeline_mode = #tpu.pipeline_mode<synchronous>, transform_indices = @transform_16, window_bounds = array<i64: 1, 128>}, {pipeline_mode = #tpu.pipeline_mode<synchronous>, transform_indices = @transform_17, window_bounds = array<i64: 1, 128>}, {pipeline_mode = #tpu.pipeline_mode<synchronous>, transform_indices = @transform_18, window_bounds = array<i64: 1, 128>}, {transform_indices = @transform_19, window_bounds = array<i64: 1, 1, 128>}]} {
    %c0 = arith.constant 0 : index
    %c0_0 = arith.constant 0 : index
    %0 = vector.load %arg1[%c0, %c0_0] : memref<32x768xbf16, #tpu.memory_space<vmem>>, vector<32x768xbf16>
    %c0_1 = arith.constant 0 : index
    %c0_2 = arith.constant 0 : index
    %1 = vector.load %arg3[%c0_1, %c0_2] : memref<768x128xbf16, #tpu.memory_space<vmem>>, vector<768x128xbf16>
    %cst = arith.constant dense<0.000000e+00> : vector<32x128xf32>
    %2 = tpu.matmul %0, %1, %cst {dimension_numbers = #tpu.dot_dimension_numbers<[1], [0], [0], [1], [0, 0, 1, 1], [], []>} : vector<32x768xbf16>, vector<768x128xbf16>, vector<32x128xf32> -> vector<32x128xf32>
    %c0_3 = arith.constant 0 : index
    %c0_4 = arith.constant 0 : index
    %3 = vector.load %arg2[%c0_3, %c0_4] : memref<32x128xf32, #tpu.memory_space<vmem>>, vector<32x128xf32>
    %4 = arith.addf %2, %3 : vector<32x128xf32>
    %5 = tpu.iota {dimensions = array<i32: 1>} : vector<1x32xi32>
    %c17_i32 = arith.constant 17 : i32
    %6 = vector.broadcast %c17_i32 : i32 to vector<1x32xi32>
    %7 = arith.cmpi slt, %5, %6 : vector<1x32xi32>
    %cst_5 = arith.constant 0.000000e+00 : f32
    %cst_6 = arith.constant -1.000000e+30 : f32
    %8 = vector.broadcast %cst_5 : f32 to vector<1x32xf32>
    %9 = vector.broadcast %cst_6 : f32 to vector<1x32xf32>
    %10 = arith.select %7, %8, %9 : vector<1x32xi1>, vector<1x32xf32>
    %c0_7 = arith.constant 0 : index
    %c0_8 = arith.constant 0 : index
    %c0_9 = arith.constant 0 : index
    %11 = vector.load %arg8[%c0_7, %c0_8, %c0_9] : memref<2x1x128xf32, #tpu.memory_space<vmem>>, vector<1x1x128xf32>
    %12 = vector.shape_cast %11 : vector<1x1x128xf32> to vector<1x128xf32>
    %c0_10 = arith.constant 0 : index
    %c0_11 = arith.constant 0 : index
    %c0_12 = arith.constant 0 : index
    %13 = vector.load %arg9[%c0_10, %c0_11, %c0_12] : memref<2x1x128xf32, #tpu.memory_space<vmem>>, vector<1x1x128xf32>
    %14 = vector.shape_cast %13 : vector<1x1x128xf32> to vector<1x128xf32>
    %cst_13 = arith.constant dense<0.000000e+00> : vector<32xf32>
    %15 = vector.multi_reduction <add>, %4, %cst_13 [1] : vector<32x128xf32> to vector<32xf32>
    %16 = vector.shape_cast %15 : vector<32xf32> to vector<32x1xf32>
    %cst_14 = arith.constant 1.280000e+02 : f32
    %17 = vector.broadcast %cst_14 : f32 to vector<32x1xf32>
    %18 = arith.divf %16, %17 : vector<32x1xf32>
    %19 = vector.broadcast %18 : vector<32x1xf32> to vector<32x128xf32>
    %20 = arith.subf %4, %19 : vector<32x128xf32>
    %21 = arith.mulf %20, %20 : vector<32x128xf32>
    %cst_15 = arith.constant dense<0.000000e+00> : vector<32xf32>
    %22 = vector.multi_reduction <add>, %21, %cst_15 [1] : vector<32x128xf32> to vector<32xf32>
    %23 = vector.shape_cast %22 : vector<32xf32> to vector<32x1xf32>
    %cst_16 = arith.constant 1.280000e+02 : f32
    %24 = vector.broadcast %cst_16 : f32 to vector<32x1xf32>
    %25 = arith.divf %23, %24 : vector<32x1xf32>
    %26 = vector.broadcast %18 : vector<32x1xf32> to vector<32x128xf32>
    %27 = arith.subf %4, %26 : vector<32x128xf32>
    %cst_17 = arith.constant 9.99999996E-13 : f32
    %28 = vector.broadcast %cst_17 : f32 to vector<32x1xf32>
    %29 = arith.addf %25, %28 : vector<32x1xf32>
    %30 = math.rsqrt %29 : vector<32x1xf32>
    %31 = vector.broadcast %30 : vector<32x1xf32> to vector<32x128xf32>
    %32 = arith.mulf %27, %31 : vector<32x128xf32>
    %33 = vector.broadcast %12 : vector<1x128xf32> to vector<32x128xf32>
    %34 = arith.mulf %32, %33 : vector<32x128xf32>
    %35 = vector.broadcast %14 : vector<1x128xf32> to vector<32x128xf32>
    %36 = arith.addf %34, %35 : vector<32x128xf32>
    %37 = arith.truncf %36 : vector<32x128xf32> to vector<32x128xbf16>
    %c0_18 = arith.constant 0 : index
    %c0_19 = arith.constant 0 : index
    %c0_20 = arith.constant 0 : index
    %38 = vector.load %arg4[%c0_18, %c0_19, %c0_20] : memref<2x128x384xbf16, #tpu.memory_space<vmem>>, vector<1x128x384xbf16>
    %39 = vector.shape_cast %38 : vector<1x128x384xbf16> to vector<128x384xbf16>
    %cst_21 = arith.constant dense<0.000000e+00> : vector<32x384xf32>
    %40 = tpu.matmul %37, %39, %cst_21 {dimension_numbers = #tpu.dot_dimension_numbers<[1], [0], [0], [1], [0, 0, 1, 1], [], []>} : vector<32x128xbf16>, vector<128x384xbf16>, vector<32x384xf32> -> vector<32x384xf32>
    %c0_22 = arith.constant 0 : index
    %c0_23 = arith.constant 0 : index
    %c0_24 = arith.constant 0 : index
    %41 = vector.load %arg5[%c0_22, %c0_23, %c0_24] : memref<2x1x384xf32, #tpu.memory_space<vmem>>, vector<1x1x384xf32>
    %42 = vector.shape_cast %41 : vector<1x1x384xf32> to vector<1x384xf32>
    %43 = vector.broadcast %42 : vector<1x384xf32> to vector<32x384xf32>
    %44 = arith.addf %40, %43 : vector<32x384xf32>
    %45 = vector.extract_strided_slice %44 {offsets = [0, 0], sizes = [32, 128], strides = [1, 1]} : vector<32x384xf32> to vector<32x128xf32>
    %46 = arith.truncf %45 : vector<32x128xf32> to vector<32x128xbf16>
    %47 = vector.extract_strided_slice %44 {offsets = [0, 128], sizes = [32, 128], strides = [1, 1]} : vector<32x384xf32> to vector<32x128xf32>
    %48 = arith.truncf %47 : vector<32x128xf32> to vector<32x128xbf16>
    %49 = vector.extract_strided_slice %44 {offsets = [0, 256], sizes = [32, 128], strides = [1, 1]} : vector<32x384xf32> to vector<32x128xf32>
    %50 = arith.truncf %49 : vector<32x128xf32> to vector<32x128xbf16>
    %51 = vector.extract_strided_slice %46 {offsets = [0, 0], sizes = [32, 32], strides = [1, 1]} : vector<32x128xbf16> to vector<32x32xbf16>
    %52 = vector.extract_strided_slice %48 {offsets = [0, 0], sizes = [32, 32], strides = [1, 1]} : vector<32x128xbf16> to vector<32x32xbf16>
    %cst_25 = arith.constant dense<0.000000e+00> : vector<32x32xf32>
    %53 = tpu.matmul %51, %52, %cst_25 {dimension_numbers = #tpu.dot_dimension_numbers<[1], [1], [0], [0], [0, 0, 1, 0], [], []>} : vector<32x32xbf16>, vector<32x32xbf16>, vector<32x32xf32> -> vector<32x32xf32>
    %cst_26 = arith.constant 0.176776692 : f32
    %54 = vector.broadcast %cst_26 : f32 to vector<32x32xf32>
    %55 = arith.mulf %53, %54 : vector<32x32xf32>
    %56 = vector.broadcast %10 : vector<1x32xf32> to vector<32x32xf32>
    %57 = arith.addf %55, %56 : vector<32x32xf32>
    %cst_27 = arith.constant dense<0xFF800000> : vector<32xf32>
    %58 = vector.multi_reduction <maximumf>, %57, %cst_27 [1] : vector<32x32xf32> to vector<32xf32>
    %59 = vector.shape_cast %58 : vector<32xf32> to vector<32x1xf32>
    %60 = vector.broadcast %59 : vector<32x1xf32> to vector<32x32xf32>
    %61 = arith.subf %57, %60 : vector<32x32xf32>
    %62 = math.exp %61 : vector<32x32xf32>
    %cst_28 = arith.constant dense<0.000000e+00> : vector<32xf32>
    %63 = vector.multi_reduction <add>, %62, %cst_28 [1] : vector<32x32xf32> to vector<32xf32>
    %64 = vector.shape_cast %63 : vector<32xf32> to vector<32x1xf32>
    %65 = tpu.reciprocal %64 {approx = true} : vector<32x1xf32> -> vector<32x1xf32>
    %66 = vector.broadcast %65 : vector<32x1xf32> to vector<32x32xf32>
    %67 = arith.mulf %62, %66 : vector<32x32xf32>
    %68 = arith.truncf %67 : vector<32x32xf32> to vector<32x32xbf16>
    %69 = vector.extract_strided_slice %50 {offsets = [0, 0], sizes = [32, 32], strides = [1, 1]} : vector<32x128xbf16> to vector<32x32xbf16>
    %cst_29 = arith.constant dense<0.000000e+00> : vector<32x32xf32>
    %70 = tpu.matmul %68, %69, %cst_29 {dimension_numbers = #tpu.dot_dimension_numbers<[1], [0], [0], [1], [0, 0, 1, 1], [], []>} : vector<32x32xbf16>, vector<32x32xbf16>, vector<32x32xf32> -> vector<32x32xf32>
    %71 = vector.extract_strided_slice %46 {offsets = [0, 32], sizes = [32, 32], strides = [1, 1]} : vector<32x128xbf16> to vector<32x32xbf16>
    %72 = vector.extract_strided_slice %48 {offsets = [0, 32], sizes = [32, 32], strides = [1, 1]} : vector<32x128xbf16> to vector<32x32xbf16>
    %cst_30 = arith.constant dense<0.000000e+00> : vector<32x32xf32>
    %73 = tpu.matmul %71, %72, %cst_30 {dimension_numbers = #tpu.dot_dimension_numbers<[1], [1], [0], [0], [0, 0, 1, 0], [], []>} : vector<32x32xbf16>, vector<32x32xbf16>, vector<32x32xf32> -> vector<32x32xf32>
    %cst_31 = arith.constant 0.176776692 : f32
    %74 = vector.broadcast %cst_31 : f32 to vector<32x32xf32>
    %75 = arith.mulf %73, %74 : vector<32x32xf32>
    %76 = vector.broadcast %10 : vector<1x32xf32> to vector<32x32xf32>
    %77 = arith.addf %75, %76 : vector<32x32xf32>
    %cst_32 = arith.constant dense<0xFF800000> : vector<32xf32>
    %78 = vector.multi_reduction <maximumf>, %77, %cst_32 [1] : vector<32x32xf32> to vector<32xf32>
    %79 = vector.shape_cast %78 : vector<32xf32> to vector<32x1xf32>
    %80 = vector.broadcast %79 : vector<32x1xf32> to vector<32x32xf32>
    %81 = arith.subf %77, %80 : vector<32x32xf32>
    %82 = math.exp %81 : vector<32x32xf32>
    %cst_33 = arith.constant dense<0.000000e+00> : vector<32xf32>
    %83 = vector.multi_reduction <add>, %82, %cst_33 [1] : vector<32x32xf32> to vector<32xf32>
    %84 = vector.shape_cast %83 : vector<32xf32> to vector<32x1xf32>
    %85 = tpu.reciprocal %84 {approx = true} : vector<32x1xf32> -> vector<32x1xf32>
    %86 = vector.broadcast %85 : vector<32x1xf32> to vector<32x32xf32>
    %87 = arith.mulf %82, %86 : vector<32x32xf32>
    %88 = arith.truncf %87 : vector<32x32xf32> to vector<32x32xbf16>
    %89 = vector.extract_strided_slice %50 {offsets = [0, 32], sizes = [32, 32], strides = [1, 1]} : vector<32x128xbf16> to vector<32x32xbf16>
    %cst_34 = arith.constant dense<0.000000e+00> : vector<32x32xf32>
    %90 = tpu.matmul %88, %89, %cst_34 {dimension_numbers = #tpu.dot_dimension_numbers<[1], [0], [0], [1], [0, 0, 1, 1], [], []>} : vector<32x32xbf16>, vector<32x32xbf16>, vector<32x32xf32> -> vector<32x32xf32>
    %91 = vector.extract_strided_slice %46 {offsets = [0, 64], sizes = [32, 32], strides = [1, 1]} : vector<32x128xbf16> to vector<32x32xbf16>
    %92 = vector.extract_strided_slice %48 {offsets = [0, 64], sizes = [32, 32], strides = [1, 1]} : vector<32x128xbf16> to vector<32x32xbf16>
    %cst_35 = arith.constant dense<0.000000e+00> : vector<32x32xf32>
    %93 = tpu.matmul %91, %92, %cst_35 {dimension_numbers = #tpu.dot_dimension_numbers<[1], [1], [0], [0], [0, 0, 1, 0], [], []>} : vector<32x32xbf16>, vector<32x32xbf16>, vector<32x32xf32> -> vector<32x32xf32>
    %cst_36 = arith.constant 0.176776692 : f32
    %94 = vector.broadcast %cst_36 : f32 to vector<32x32xf32>
    %95 = arith.mulf %93, %94 : vector<32x32xf32>
    %96 = vector.broadcast %10 : vector<1x32xf32> to vector<32x32xf32>
    %97 = arith.addf %95, %96 : vector<32x32xf32>
    %cst_37 = arith.constant dense<0xFF800000> : vector<32xf32>
    %98 = vector.multi_reduction <maximumf>, %97, %cst_37 [1] : vector<32x32xf32> to vector<32xf32>
    %99 = vector.shape_cast %98 : vector<32xf32> to vector<32x1xf32>
    %100 = vector.broadcast %99 : vector<32x1xf32> to vector<32x32xf32>
    %101 = arith.subf %97, %100 : vector<32x32xf32>
    %102 = math.exp %101 : vector<32x32xf32>
    %cst_38 = arith.constant dense<0.000000e+00> : vector<32xf32>
    %103 = vector.multi_reduction <add>, %102, %cst_38 [1] : vector<32x32xf32> to vector<32xf32>
    %104 = vector.shape_cast %103 : vector<32xf32> to vector<32x1xf32>
    %105 = tpu.reciprocal %104 {approx = true} : vector<32x1xf32> -> vector<32x1xf32>
    %106 = vector.broadcast %105 : vector<32x1xf32> to vector<32x32xf32>
    %107 = arith.mulf %102, %106 : vector<32x32xf32>
    %108 = arith.truncf %107 : vector<32x32xf32> to vector<32x32xbf16>
    %109 = vector.extract_strided_slice %50 {offsets = [0, 64], sizes = [32, 32], strides = [1, 1]} : vector<32x128xbf16> to vector<32x32xbf16>
    %cst_39 = arith.constant dense<0.000000e+00> : vector<32x32xf32>
    %110 = tpu.matmul %108, %109, %cst_39 {dimension_numbers = #tpu.dot_dimension_numbers<[1], [0], [0], [1], [0, 0, 1, 1], [], []>} : vector<32x32xbf16>, vector<32x32xbf16>, vector<32x32xf32> -> vector<32x32xf32>
    %111 = vector.extract_strided_slice %46 {offsets = [0, 96], sizes = [32, 32], strides = [1, 1]} : vector<32x128xbf16> to vector<32x32xbf16>
    %112 = vector.extract_strided_slice %48 {offsets = [0, 96], sizes = [32, 32], strides = [1, 1]} : vector<32x128xbf16> to vector<32x32xbf16>
    %cst_40 = arith.constant dense<0.000000e+00> : vector<32x32xf32>
    %113 = tpu.matmul %111, %112, %cst_40 {dimension_numbers = #tpu.dot_dimension_numbers<[1], [1], [0], [0], [0, 0, 1, 0], [], []>} : vector<32x32xbf16>, vector<32x32xbf16>, vector<32x32xf32> -> vector<32x32xf32>
    %cst_41 = arith.constant 0.176776692 : f32
    %114 = vector.broadcast %cst_41 : f32 to vector<32x32xf32>
    %115 = arith.mulf %113, %114 : vector<32x32xf32>
    %116 = vector.broadcast %10 : vector<1x32xf32> to vector<32x32xf32>
    %117 = arith.addf %115, %116 : vector<32x32xf32>
    %cst_42 = arith.constant dense<0xFF800000> : vector<32xf32>
    %118 = vector.multi_reduction <maximumf>, %117, %cst_42 [1] : vector<32x32xf32> to vector<32xf32>
    %119 = vector.shape_cast %118 : vector<32xf32> to vector<32x1xf32>
    %120 = vector.broadcast %119 : vector<32x1xf32> to vector<32x32xf32>
    %121 = arith.subf %117, %120 : vector<32x32xf32>
    %122 = math.exp %121 : vector<32x32xf32>
    %cst_43 = arith.constant dense<0.000000e+00> : vector<32xf32>
    %123 = vector.multi_reduction <add>, %122, %cst_43 [1] : vector<32x32xf32> to vector<32xf32>
    %124 = vector.shape_cast %123 : vector<32xf32> to vector<32x1xf32>
    %125 = tpu.reciprocal %124 {approx = true} : vector<32x1xf32> -> vector<32x1xf32>
    %126 = vector.broadcast %125 : vector<32x1xf32> to vector<32x32xf32>
    %127 = arith.mulf %122, %126 : vector<32x32xf32>
    %128 = arith.truncf %127 : vector<32x32xf32> to vector<32x32xbf16>
    %129 = vector.extract_strided_slice %50 {offsets = [0, 96], sizes = [32, 32], strides = [1, 1]} : vector<32x128xbf16> to vector<32x32xbf16>
    %cst_44 = arith.constant dense<0.000000e+00> : vector<32x32xf32>
    %130 = tpu.matmul %128, %129, %cst_44 {dimension_numbers = #tpu.dot_dimension_numbers<[1], [0], [0], [1], [0, 0, 1, 1], [], []>} : vector<32x32xbf16>, vector<32x32xbf16>, vector<32x32xf32> -> vector<32x32xf32>
    %131 = tpu.concatenate %70, %90, %110, %130 in 1 : vector<32x32xf32>, vector<32x32xf32>, vector<32x32xf32>, vector<32x32xf32> -> vector<32x128xf32>
    %132 = arith.truncf %131 : vector<32x128xf32> to vector<32x128xbf16>
    %c0_45 = arith.constant 0 : index
    %c0_46 = arith.constant 0 : index
    %c0_47 = arith.constant 0 : index
    %133 = vector.load %arg6[%c0_45, %c0_46, %c0_47] : memref<2x128x128xbf16, #tpu.memory_space<vmem>>, vector<1x128x128xbf16>
    %134 = vector.shape_cast %133 : vector<1x128x128xbf16> to vector<128x128xbf16>
    %cst_48 = arith.constant dense<0.000000e+00> : vector<32x128xf32>
    %135 = tpu.matmul %132, %134, %cst_48 {dimension_numbers = #tpu.dot_dimension_numbers<[1], [0], [0], [1], [0, 0, 1, 1], [], []>} : vector<32x128xbf16>, vector<128x128xbf16>, vector<32x128xf32> -> vector<32x128xf32>
    %c0_49 = arith.constant 0 : index
    %c0_50 = arith.constant 0 : index
    %c0_51 = arith.constant 0 : index
    %136 = vector.load %arg7[%c0_49, %c0_50, %c0_51] : memref<2x1x128xf32, #tpu.memory_space<vmem>>, vector<1x1x128xf32>
    %137 = vector.shape_cast %136 : vector<1x1x128xf32> to vector<1x128xf32>
    %138 = vector.broadcast %137 : vector<1x128xf32> to vector<32x128xf32>
    %139 = arith.addf %135, %138 : vector<32x128xf32>
    %140 = arith.addf %4, %139 : vector<32x128xf32>
    %c0_52 = arith.constant 0 : index
    %c0_53 = arith.constant 0 : index
    %c0_54 = arith.constant 0 : index
    %141 = vector.load %arg14[%c0_52, %c0_53, %c0_54] : memref<2x1x128xf32, #tpu.memory_space<vmem>>, vector<1x1x128xf32>
    %142 = vector.shape_cast %141 : vector<1x1x128xf32> to vector<1x128xf32>
    %c0_55 = arith.constant 0 : index
    %c0_56 = arith.constant 0 : index
    %c0_57 = arith.constant 0 : index
    %143 = vector.load %arg15[%c0_55, %c0_56, %c0_57] : memref<2x1x128xf32, #tpu.memory_space<vmem>>, vector<1x1x128xf32>
    %144 = vector.shape_cast %143 : vector<1x1x128xf32> to vector<1x128xf32>
    %cst_58 = arith.constant dense<0.000000e+00> : vector<32xf32>
    %145 = vector.multi_reduction <add>, %140, %cst_58 [1] : vector<32x128xf32> to vector<32xf32>
    %146 = vector.shape_cast %145 : vector<32xf32> to vector<32x1xf32>
    %cst_59 = arith.constant 1.280000e+02 : f32
    %147 = vector.broadcast %cst_59 : f32 to vector<32x1xf32>
    %148 = arith.divf %146, %147 : vector<32x1xf32>
    %149 = vector.broadcast %148 : vector<32x1xf32> to vector<32x128xf32>
    %150 = arith.subf %140, %149 : vector<32x128xf32>
    %151 = arith.mulf %150, %150 : vector<32x128xf32>
    %cst_60 = arith.constant dense<0.000000e+00> : vector<32xf32>
    %152 = vector.multi_reduction <add>, %151, %cst_60 [1] : vector<32x128xf32> to vector<32xf32>
    %153 = vector.shape_cast %152 : vector<32xf32> to vector<32x1xf32>
    %cst_61 = arith.constant 1.280000e+02 : f32
    %154 = vector.broadcast %cst_61 : f32 to vector<32x1xf32>
    %155 = arith.divf %153, %154 : vector<32x1xf32>
    %156 = vector.broadcast %148 : vector<32x1xf32> to vector<32x128xf32>
    %157 = arith.subf %140, %156 : vector<32x128xf32>
    %cst_62 = arith.constant 9.99999996E-13 : f32
    %158 = vector.broadcast %cst_62 : f32 to vector<32x1xf32>
    %159 = arith.addf %155, %158 : vector<32x1xf32>
    %160 = math.rsqrt %159 : vector<32x1xf32>
    %161 = vector.broadcast %160 : vector<32x1xf32> to vector<32x128xf32>
    %162 = arith.mulf %157, %161 : vector<32x128xf32>
    %163 = vector.broadcast %142 : vector<1x128xf32> to vector<32x128xf32>
    %164 = arith.mulf %162, %163 : vector<32x128xf32>
    %165 = vector.broadcast %144 : vector<1x128xf32> to vector<32x128xf32>
    %166 = arith.addf %164, %165 : vector<32x128xf32>
    %167 = arith.truncf %166 : vector<32x128xf32> to vector<32x128xbf16>
    %c0_63 = arith.constant 0 : index
    %c0_64 = arith.constant 0 : index
    %c0_65 = arith.constant 0 : index
    %168 = vector.load %arg10[%c0_63, %c0_64, %c0_65] : memref<2x128x512xbf16, #tpu.memory_space<vmem>>, vector<1x128x512xbf16>
    %169 = vector.shape_cast %168 : vector<1x128x512xbf16> to vector<128x512xbf16>
    %cst_66 = arith.constant dense<0.000000e+00> : vector<32x512xf32>
    %170 = tpu.matmul %167, %169, %cst_66 {dimension_numbers = #tpu.dot_dimension_numbers<[1], [0], [0], [1], [0, 0, 1, 1], [], []>} : vector<32x128xbf16>, vector<128x512xbf16>, vector<32x512xf32> -> vector<32x512xf32>
    %c0_67 = arith.constant 0 : index
    %c0_68 = arith.constant 0 : index
    %c0_69 = arith.constant 0 : index
    %171 = vector.load %arg11[%c0_67, %c0_68, %c0_69] : memref<2x1x512xf32, #tpu.memory_space<vmem>>, vector<1x1x512xf32>
    %172 = vector.shape_cast %171 : vector<1x1x512xf32> to vector<1x512xf32>
    %173 = vector.broadcast %172 : vector<1x512xf32> to vector<32x512xf32>
    %174 = arith.addf %170, %173 : vector<32x512xf32>
    %175 = arith.mulf %174, %174 : vector<32x512xf32>
    %176 = arith.mulf %174, %175 : vector<32x512xf32>
    %cst_70 = arith.constant 4.471500e-02 : f32
    %177 = vector.broadcast %cst_70 : f32 to vector<32x512xf32>
    %178 = arith.mulf %177, %176 : vector<32x512xf32>
    %179 = arith.addf %174, %178 : vector<32x512xf32>
    %cst_71 = arith.constant 0.797884583 : f32
    %180 = vector.broadcast %cst_71 : f32 to vector<32x512xf32>
    %181 = arith.mulf %180, %179 : vector<32x512xf32>
    %182 = math.tanh %181 : vector<32x512xf32>
    %cst_72 = arith.constant 1.000000e+00 : f32
    %183 = vector.broadcast %cst_72 : f32 to vector<32x512xf32>
    %184 = arith.addf %183, %182 : vector<32x512xf32>
    %cst_73 = arith.constant 5.000000e-01 : f32
    %185 = vector.broadcast %cst_73 : f32 to vector<32x512xf32>
    %186 = arith.mulf %185, %184 : vector<32x512xf32>
    %187 = arith.mulf %174, %186 : vector<32x512xf32>
    %188 = arith.truncf %187 : vector<32x512xf32> to vector<32x512xbf16>
    %c0_74 = arith.constant 0 : index
    %c0_75 = arith.constant 0 : index
    %c0_76 = arith.constant 0 : index
    %189 = vector.load %arg12[%c0_74, %c0_75, %c0_76] : memref<2x512x128xbf16, #tpu.memory_space<vmem>>, vector<1x512x128xbf16>
    %190 = vector.shape_cast %189 : vector<1x512x128xbf16> to vector<512x128xbf16>
    %cst_77 = arith.constant dense<0.000000e+00> : vector<32x128xf32>
    %191 = tpu.matmul %188, %190, %cst_77 {dimension_numbers = #tpu.dot_dimension_numbers<[1], [0], [0], [1], [0, 0, 1, 1], [], []>} : vector<32x512xbf16>, vector<512x128xbf16>, vector<32x128xf32> -> vector<32x128xf32>
    %c0_78 = arith.constant 0 : index
    %c0_79 = arith.constant 0 : index
    %c0_80 = arith.constant 0 : index
    %192 = vector.load %arg13[%c0_78, %c0_79, %c0_80] : memref<2x1x128xf32, #tpu.memory_space<vmem>>, vector<1x1x128xf32>
    %193 = vector.shape_cast %192 : vector<1x1x128xf32> to vector<1x128xf32>
    %194 = vector.broadcast %193 : vector<1x128xf32> to vector<32x128xf32>
    %195 = arith.addf %191, %194 : vector<32x128xf32>
    %196 = arith.addf %140, %195 : vector<32x128xf32>
    %c1 = arith.constant 1 : index
    %c0_81 = arith.constant 0 : index
    %c0_82 = arith.constant 0 : index
    %197 = vector.load %arg8[%c1, %c0_81, %c0_82] : memref<2x1x128xf32, #tpu.memory_space<vmem>>, vector<1x1x128xf32>
    %198 = vector.shape_cast %197 : vector<1x1x128xf32> to vector<1x128xf32>
    %c1_83 = arith.constant 1 : index
    %c0_84 = arith.constant 0 : index
    %c0_85 = arith.constant 0 : index
    %199 = vector.load %arg9[%c1_83, %c0_84, %c0_85] : memref<2x1x128xf32, #tpu.memory_space<vmem>>, vector<1x1x128xf32>
    %200 = vector.shape_cast %199 : vector<1x1x128xf32> to vector<1x128xf32>
    %cst_86 = arith.constant dense<0.000000e+00> : vector<32xf32>
    %201 = vector.multi_reduction <add>, %196, %cst_86 [1] : vector<32x128xf32> to vector<32xf32>
    %202 = vector.shape_cast %201 : vector<32xf32> to vector<32x1xf32>
    %cst_87 = arith.constant 1.280000e+02 : f32
    %203 = vector.broadcast %cst_87 : f32 to vector<32x1xf32>
    %204 = arith.divf %202, %203 : vector<32x1xf32>
    %205 = vector.broadcast %204 : vector<32x1xf32> to vector<32x128xf32>
    %206 = arith.subf %196, %205 : vector<32x128xf32>
    %207 = arith.mulf %206, %206 : vector<32x128xf32>
    %cst_88 = arith.constant dense<0.000000e+00> : vector<32xf32>
    %208 = vector.multi_reduction <add>, %207, %cst_88 [1] : vector<32x128xf32> to vector<32xf32>
    %209 = vector.shape_cast %208 : vector<32xf32> to vector<32x1xf32>
    %cst_89 = arith.constant 1.280000e+02 : f32
    %210 = vector.broadcast %cst_89 : f32 to vector<32x1xf32>
    %211 = arith.divf %209, %210 : vector<32x1xf32>
    %212 = vector.broadcast %204 : vector<32x1xf32> to vector<32x128xf32>
    %213 = arith.subf %196, %212 : vector<32x128xf32>
    %cst_90 = arith.constant 9.99999996E-13 : f32
    %214 = vector.broadcast %cst_90 : f32 to vector<32x1xf32>
    %215 = arith.addf %211, %214 : vector<32x1xf32>
    %216 = math.rsqrt %215 : vector<32x1xf32>
    %217 = vector.broadcast %216 : vector<32x1xf32> to vector<32x128xf32>
    %218 = arith.mulf %213, %217 : vector<32x128xf32>
    %219 = vector.broadcast %198 : vector<1x128xf32> to vector<32x128xf32>
    %220 = arith.mulf %218, %219 : vector<32x128xf32>
    %221 = vector.broadcast %200 : vector<1x128xf32> to vector<32x128xf32>
    %222 = arith.addf %220, %221 : vector<32x128xf32>
    %223 = arith.truncf %222 : vector<32x128xf32> to vector<32x128xbf16>
    %c1_91 = arith.constant 1 : index
    %c0_92 = arith.constant 0 : index
    %c0_93 = arith.constant 0 : index
    %224 = vector.load %arg4[%c1_91, %c0_92, %c0_93] : memref<2x128x384xbf16, #tpu.memory_space<vmem>>, vector<1x128x384xbf16>
    %225 = vector.shape_cast %224 : vector<1x128x384xbf16> to vector<128x384xbf16>
    %cst_94 = arith.constant dense<0.000000e+00> : vector<32x384xf32>
    %226 = tpu.matmul %223, %225, %cst_94 {dimension_numbers = #tpu.dot_dimension_numbers<[1], [0], [0], [1], [0, 0, 1, 1], [], []>} : vector<32x128xbf16>, vector<128x384xbf16>, vector<32x384xf32> -> vector<32x384xf32>
    %c1_95 = arith.constant 1 : index
    %c0_96 = arith.constant 0 : index
    %c0_97 = arith.constant 0 : index
    %227 = vector.load %arg5[%c1_95, %c0_96, %c0_97] : memref<2x1x384xf32, #tpu.memory_space<vmem>>, vector<1x1x384xf32>
    %228 = vector.shape_cast %227 : vector<1x1x384xf32> to vector<1x384xf32>
    %229 = vector.broadcast %228 : vector<1x384xf32> to vector<32x384xf32>
    %230 = arith.addf %226, %229 : vector<32x384xf32>
    %231 = vector.extract_strided_slice %230 {offsets = [0, 0], sizes = [32, 128], strides = [1, 1]} : vector<32x384xf32> to vector<32x128xf32>
    %232 = arith.truncf %231 : vector<32x128xf32> to vector<32x128xbf16>
    %233 = vector.extract_strided_slice %230 {offsets = [0, 128], sizes = [32, 128], strides = [1, 1]} : vector<32x384xf32> to vector<32x128xf32>
    %234 = arith.truncf %233 : vector<32x128xf32> to vector<32x128xbf16>
    %235 = vector.extract_strided_slice %230 {offsets = [0, 256], sizes = [32, 128], strides = [1, 1]} : vector<32x384xf32> to vector<32x128xf32>
    %236 = arith.truncf %235 : vector<32x128xf32> to vector<32x128xbf16>
    %237 = vector.extract_strided_slice %232 {offsets = [0, 0], sizes = [32, 32], strides = [1, 1]} : vector<32x128xbf16> to vector<32x32xbf16>
    %238 = vector.extract_strided_slice %234 {offsets = [0, 0], sizes = [32, 32], strides = [1, 1]} : vector<32x128xbf16> to vector<32x32xbf16>
    %cst_98 = arith.constant dense<0.000000e+00> : vector<32x32xf32>
    %239 = tpu.matmul %237, %238, %cst_98 {dimension_numbers = #tpu.dot_dimension_numbers<[1], [1], [0], [0], [0, 0, 1, 0], [], []>} : vector<32x32xbf16>, vector<32x32xbf16>, vector<32x32xf32> -> vector<32x32xf32>
    %cst_99 = arith.constant 0.176776692 : f32
    %240 = vector.broadcast %cst_99 : f32 to vector<32x32xf32>
    %241 = arith.mulf %239, %240 : vector<32x32xf32>
    %242 = vector.broadcast %10 : vector<1x32xf32> to vector<32x32xf32>
    %243 = arith.addf %241, %242 : vector<32x32xf32>
    %cst_100 = arith.constant dense<0xFF800000> : vector<32xf32>
    %244 = vector.multi_reduction <maximumf>, %243, %cst_100 [1] : vector<32x32xf32> to vector<32xf32>
    %245 = vector.shape_cast %244 : vector<32xf32> to vector<32x1xf32>
    %246 = vector.broadcast %245 : vector<32x1xf32> to vector<32x32xf32>
    %247 = arith.subf %243, %246 : vector<32x32xf32>
    %248 = math.exp %247 : vector<32x32xf32>
    %cst_101 = arith.constant dense<0.000000e+00> : vector<32xf32>
    %249 = vector.multi_reduction <add>, %248, %cst_101 [1] : vector<32x32xf32> to vector<32xf32>
    %250 = vector.shape_cast %249 : vector<32xf32> to vector<32x1xf32>
    %251 = tpu.reciprocal %250 {approx = true} : vector<32x1xf32> -> vector<32x1xf32>
    %252 = vector.broadcast %251 : vector<32x1xf32> to vector<32x32xf32>
    %253 = arith.mulf %248, %252 : vector<32x32xf32>
    %254 = arith.truncf %253 : vector<32x32xf32> to vector<32x32xbf16>
    %255 = vector.extract_strided_slice %236 {offsets = [0, 0], sizes = [32, 32], strides = [1, 1]} : vector<32x128xbf16> to vector<32x32xbf16>
    %cst_102 = arith.constant dense<0.000000e+00> : vector<32x32xf32>
    %256 = tpu.matmul %254, %255, %cst_102 {dimension_numbers = #tpu.dot_dimension_numbers<[1], [0], [0], [1], [0, 0, 1, 1], [], []>} : vector<32x32xbf16>, vector<32x32xbf16>, vector<32x32xf32> -> vector<32x32xf32>
    %257 = vector.extract_strided_slice %232 {offsets = [0, 32], sizes = [32, 32], strides = [1, 1]} : vector<32x128xbf16> to vector<32x32xbf16>
    %258 = vector.extract_strided_slice %234 {offsets = [0, 32], sizes = [32, 32], strides = [1, 1]} : vector<32x128xbf16> to vector<32x32xbf16>
    %cst_103 = arith.constant dense<0.000000e+00> : vector<32x32xf32>
    %259 = tpu.matmul %257, %258, %cst_103 {dimension_numbers = #tpu.dot_dimension_numbers<[1], [1], [0], [0], [0, 0, 1, 0], [], []>} : vector<32x32xbf16>, vector<32x32xbf16>, vector<32x32xf32> -> vector<32x32xf32>
    %cst_104 = arith.constant 0.176776692 : f32
    %260 = vector.broadcast %cst_104 : f32 to vector<32x32xf32>
    %261 = arith.mulf %259, %260 : vector<32x32xf32>
    %262 = vector.broadcast %10 : vector<1x32xf32> to vector<32x32xf32>
    %263 = arith.addf %261, %262 : vector<32x32xf32>
    %cst_105 = arith.constant dense<0xFF800000> : vector<32xf32>
    %264 = vector.multi_reduction <maximumf>, %263, %cst_105 [1] : vector<32x32xf32> to vector<32xf32>
    %265 = vector.shape_cast %264 : vector<32xf32> to vector<32x1xf32>
    %266 = vector.broadcast %265 : vector<32x1xf32> to vector<32x32xf32>
    %267 = arith.subf %263, %266 : vector<32x32xf32>
    %268 = math.exp %267 : vector<32x32xf32>
    %cst_106 = arith.constant dense<0.000000e+00> : vector<32xf32>
    %269 = vector.multi_reduction <add>, %268, %cst_106 [1] : vector<32x32xf32> to vector<32xf32>
    %270 = vector.shape_cast %269 : vector<32xf32> to vector<32x1xf32>
    %271 = tpu.reciprocal %270 {approx = true} : vector<32x1xf32> -> vector<32x1xf32>
    %272 = vector.broadcast %271 : vector<32x1xf32> to vector<32x32xf32>
    %273 = arith.mulf %268, %272 : vector<32x32xf32>
    %274 = arith.truncf %273 : vector<32x32xf32> to vector<32x32xbf16>
    %275 = vector.extract_strided_slice %236 {offsets = [0, 32], sizes = [32, 32], strides = [1, 1]} : vector<32x128xbf16> to vector<32x32xbf16>
    %cst_107 = arith.constant dense<0.000000e+00> : vector<32x32xf32>
    %276 = tpu.matmul %274, %275, %cst_107 {dimension_numbers = #tpu.dot_dimension_numbers<[1], [0], [0], [1], [0, 0, 1, 1], [], []>} : vector<32x32xbf16>, vector<32x32xbf16>, vector<32x32xf32> -> vector<32x32xf32>
    %277 = vector.extract_strided_slice %232 {offsets = [0, 64], sizes = [32, 32], strides = [1, 1]} : vector<32x128xbf16> to vector<32x32xbf16>
    %278 = vector.extract_strided_slice %234 {offsets = [0, 64], sizes = [32, 32], strides = [1, 1]} : vector<32x128xbf16> to vector<32x32xbf16>
    %cst_108 = arith.constant dense<0.000000e+00> : vector<32x32xf32>
    %279 = tpu.matmul %277, %278, %cst_108 {dimension_numbers = #tpu.dot_dimension_numbers<[1], [1], [0], [0], [0, 0, 1, 0], [], []>} : vector<32x32xbf16>, vector<32x32xbf16>, vector<32x32xf32> -> vector<32x32xf32>
    %cst_109 = arith.constant 0.176776692 : f32
    %280 = vector.broadcast %cst_109 : f32 to vector<32x32xf32>
    %281 = arith.mulf %279, %280 : vector<32x32xf32>
    %282 = vector.broadcast %10 : vector<1x32xf32> to vector<32x32xf32>
    %283 = arith.addf %281, %282 : vector<32x32xf32>
    %cst_110 = arith.constant dense<0xFF800000> : vector<32xf32>
    %284 = vector.multi_reduction <maximumf>, %283, %cst_110 [1] : vector<32x32xf32> to vector<32xf32>
    %285 = vector.shape_cast %284 : vector<32xf32> to vector<32x1xf32>
    %286 = vector.broadcast %285 : vector<32x1xf32> to vector<32x32xf32>
    %287 = arith.subf %283, %286 : vector<32x32xf32>
    %288 = math.exp %287 : vector<32x32xf32>
    %cst_111 = arith.constant dense<0.000000e+00> : vector<32xf32>
    %289 = vector.multi_reduction <add>, %288, %cst_111 [1] : vector<32x32xf32> to vector<32xf32>
    %290 = vector.shape_cast %289 : vector<32xf32> to vector<32x1xf32>
    %291 = tpu.reciprocal %290 {approx = true} : vector<32x1xf32> -> vector<32x1xf32>
    %292 = vector.broadcast %291 : vector<32x1xf32> to vector<32x32xf32>
    %293 = arith.mulf %288, %292 : vector<32x32xf32>
    %294 = arith.truncf %293 : vector<32x32xf32> to vector<32x32xbf16>
    %295 = vector.extract_strided_slice %236 {offsets = [0, 64], sizes = [32, 32], strides = [1, 1]} : vector<32x128xbf16> to vector<32x32xbf16>
    %cst_112 = arith.constant dense<0.000000e+00> : vector<32x32xf32>
    %296 = tpu.matmul %294, %295, %cst_112 {dimension_numbers = #tpu.dot_dimension_numbers<[1], [0], [0], [1], [0, 0, 1, 1], [], []>} : vector<32x32xbf16>, vector<32x32xbf16>, vector<32x32xf32> -> vector<32x32xf32>
    %297 = vector.extract_strided_slice %232 {offsets = [0, 96], sizes = [32, 32], strides = [1, 1]} : vector<32x128xbf16> to vector<32x32xbf16>
    %298 = vector.extract_strided_slice %234 {offsets = [0, 96], sizes = [32, 32], strides = [1, 1]} : vector<32x128xbf16> to vector<32x32xbf16>
    %cst_113 = arith.constant dense<0.000000e+00> : vector<32x32xf32>
    %299 = tpu.matmul %297, %298, %cst_113 {dimension_numbers = #tpu.dot_dimension_numbers<[1], [1], [0], [0], [0, 0, 1, 0], [], []>} : vector<32x32xbf16>, vector<32x32xbf16>, vector<32x32xf32> -> vector<32x32xf32>
    %cst_114 = arith.constant 0.176776692 : f32
    %300 = vector.broadcast %cst_114 : f32 to vector<32x32xf32>
    %301 = arith.mulf %299, %300 : vector<32x32xf32>
    %302 = vector.broadcast %10 : vector<1x32xf32> to vector<32x32xf32>
    %303 = arith.addf %301, %302 : vector<32x32xf32>
    %cst_115 = arith.constant dense<0xFF800000> : vector<32xf32>
    %304 = vector.multi_reduction <maximumf>, %303, %cst_115 [1] : vector<32x32xf32> to vector<32xf32>
    %305 = vector.shape_cast %304 : vector<32xf32> to vector<32x1xf32>
    %306 = vector.broadcast %305 : vector<32x1xf32> to vector<32x32xf32>
    %307 = arith.subf %303, %306 : vector<32x32xf32>
    %308 = math.exp %307 : vector<32x32xf32>
    %cst_116 = arith.constant dense<0.000000e+00> : vector<32xf32>
    %309 = vector.multi_reduction <add>, %308, %cst_116 [1] : vector<32x32xf32> to vector<32xf32>
    %310 = vector.shape_cast %309 : vector<32xf32> to vector<32x1xf32>
    %311 = tpu.reciprocal %310 {approx = true} : vector<32x1xf32> -> vector<32x1xf32>
    %312 = vector.broadcast %311 : vector<32x1xf32> to vector<32x32xf32>
    %313 = arith.mulf %308, %312 : vector<32x32xf32>
    %314 = arith.truncf %313 : vector<32x32xf32> to vector<32x32xbf16>
    %315 = vector.extract_strided_slice %236 {offsets = [0, 96], sizes = [32, 32], strides = [1, 1]} : vector<32x128xbf16> to vector<32x32xbf16>
    %cst_117 = arith.constant dense<0.000000e+00> : vector<32x32xf32>
    %316 = tpu.matmul %314, %315, %cst_117 {dimension_numbers = #tpu.dot_dimension_numbers<[1], [0], [0], [1], [0, 0, 1, 1], [], []>} : vector<32x32xbf16>, vector<32x32xbf16>, vector<32x32xf32> -> vector<32x32xf32>
    %317 = tpu.concatenate %256, %276, %296, %316 in 1 : vector<32x32xf32>, vector<32x32xf32>, vector<32x32xf32>, vector<32x32xf32> -> vector<32x128xf32>
    %318 = arith.truncf %317 : vector<32x128xf32> to vector<32x128xbf16>
    %c1_118 = arith.constant 1 : index
    %c0_119 = arith.constant 0 : index
    %c0_120 = arith.constant 0 : index
    %319 = vector.load %arg6[%c1_118, %c0_119, %c0_120] : memref<2x128x128xbf16, #tpu.memory_space<vmem>>, vector<1x128x128xbf16>
    %320 = vector.shape_cast %319 : vector<1x128x128xbf16> to vector<128x128xbf16>
    %cst_121 = arith.constant dense<0.000000e+00> : vector<32x128xf32>
    %321 = tpu.matmul %318, %320, %cst_121 {dimension_numbers = #tpu.dot_dimension_numbers<[1], [0], [0], [1], [0, 0, 1, 1], [], []>} : vector<32x128xbf16>, vector<128x128xbf16>, vector<32x128xf32> -> vector<32x128xf32>
    %c1_122 = arith.constant 1 : index
    %c0_123 = arith.constant 0 : index
    %c0_124 = arith.constant 0 : index
    %322 = vector.load %arg7[%c1_122, %c0_123, %c0_124] : memref<2x1x128xf32, #tpu.memory_space<vmem>>, vector<1x1x128xf32>
    %323 = vector.shape_cast %322 : vector<1x1x128xf32> to vector<1x128xf32>
    %324 = vector.broadcast %323 : vector<1x128xf32> to vector<32x128xf32>
    %325 = arith.addf %321, %324 : vector<32x128xf32>
    %326 = arith.addf %196, %325 : vector<32x128xf32>
    %c1_125 = arith.constant 1 : index
    %c0_126 = arith.constant 0 : index
    %c0_127 = arith.constant 0 : index
    %327 = vector.load %arg14[%c1_125, %c0_126, %c0_127] : memref<2x1x128xf32, #tpu.memory_space<vmem>>, vector<1x1x128xf32>
    %328 = vector.shape_cast %327 : vector<1x1x128xf32> to vector<1x128xf32>
    %c1_128 = arith.constant 1 : index
    %c0_129 = arith.constant 0 : index
    %c0_130 = arith.constant 0 : index
    %329 = vector.load %arg15[%c1_128, %c0_129, %c0_130] : memref<2x1x128xf32, #tpu.memory_space<vmem>>, vector<1x1x128xf32>
    %330 = vector.shape_cast %329 : vector<1x1x128xf32> to vector<1x128xf32>
    %cst_131 = arith.constant dense<0.000000e+00> : vector<32xf32>
    %331 = vector.multi_reduction <add>, %326, %cst_131 [1] : vector<32x128xf32> to vector<32xf32>
    %332 = vector.shape_cast %331 : vector<32xf32> to vector<32x1xf32>
    %cst_132 = arith.constant 1.280000e+02 : f32
    %333 = vector.broadcast %cst_132 : f32 to vector<32x1xf32>
    %334 = arith.divf %332, %333 : vector<32x1xf32>
    %335 = vector.broadcast %334 : vector<32x1xf32> to vector<32x128xf32>
    %336 = arith.subf %326, %335 : vector<32x128xf32>
    %337 = arith.mulf %336, %336 : vector<32x128xf32>
    %cst_133 = arith.constant dense<0.000000e+00> : vector<32xf32>
    %338 = vector.multi_reduction <add>, %337, %cst_133 [1] : vector<32x128xf32> to vector<32xf32>
    %339 = vector.shape_cast %338 : vector<32xf32> to vector<32x1xf32>
    %cst_134 = arith.constant 1.280000e+02 : f32
    %340 = vector.broadcast %cst_134 : f32 to vector<32x1xf32>
    %341 = arith.divf %339, %340 : vector<32x1xf32>
    %342 = vector.broadcast %334 : vector<32x1xf32> to vector<32x128xf32>
    %343 = arith.subf %326, %342 : vector<32x128xf32>
    %cst_135 = arith.constant 9.99999996E-13 : f32
    %344 = vector.broadcast %cst_135 : f32 to vector<32x1xf32>
    %345 = arith.addf %341, %344 : vector<32x1xf32>
    %346 = math.rsqrt %345 : vector<32x1xf32>
    %347 = vector.broadcast %346 : vector<32x1xf32> to vector<32x128xf32>
    %348 = arith.mulf %343, %347 : vector<32x128xf32>
    %349 = vector.broadcast %328 : vector<1x128xf32> to vector<32x128xf32>
    %350 = arith.mulf %348, %349 : vector<32x128xf32>
    %351 = vector.broadcast %330 : vector<1x128xf32> to vector<32x128xf32>
    %352 = arith.addf %350, %351 : vector<32x128xf32>
    %353 = arith.truncf %352 : vector<32x128xf32> to vector<32x128xbf16>
    %c1_136 = arith.constant 1 : index
    %c0_137 = arith.constant 0 : index
    %c0_138 = arith.constant 0 : index
    %354 = vector.load %arg10[%c1_136, %c0_137, %c0_138] : memref<2x128x512xbf16, #tpu.memory_space<vmem>>, vector<1x128x512xbf16>
    %355 = vector.shape_cast %354 : vector<1x128x512xbf16> to vector<128x512xbf16>
    %cst_139 = arith.constant dense<0.000000e+00> : vector<32x512xf32>
    %356 = tpu.matmul %353, %355, %cst_139 {dimension_numbers = #tpu.dot_dimension_numbers<[1], [0], [0], [1], [0, 0, 1, 1], [], []>} : vector<32x128xbf16>, vector<128x512xbf16>, vector<32x512xf32> -> vector<32x512xf32>
    %c1_140 = arith.constant 1 : index
    %c0_141 = arith.constant 0 : index
    %c0_142 = arith.constant 0 : index
    %357 = vector.load %arg11[%c1_140, %c0_141, %c0_142] : memref<2x1x512xf32, #tpu.memory_space<vmem>>, vector<1x1x512xf32>
    %358 = vector.shape_cast %357 : vector<1x1x512xf32> to vector<1x512xf32>
    %359 = vector.broadcast %358 : vector<1x512xf32> to vector<32x512xf32>
    %360 = arith.addf %356, %359 : vector<32x512xf32>
    %361 = arith.mulf %360, %360 : vector<32x512xf32>
    %362 = arith.mulf %360, %361 : vector<32x512xf32>
    %cst_143 = arith.constant 4.471500e-02 : f32
    %363 = vector.broadcast %cst_143 : f32 to vector<32x512xf32>
    %364 = arith.mulf %363, %362 : vector<32x512xf32>
    %365 = arith.addf %360, %364 : vector<32x512xf32>
    %cst_144 = arith.constant 0.797884583 : f32
    %366 = vector.broadcast %cst_144 : f32 to vector<32x512xf32>
    %367 = arith.mulf %366, %365 : vector<32x512xf32>
    %368 = math.tanh %367 : vector<32x512xf32>
    %cst_145 = arith.constant 1.000000e+00 : f32
    %369 = vector.broadcast %cst_145 : f32 to vector<32x512xf32>
    %370 = arith.addf %369, %368 : vector<32x512xf32>
    %cst_146 = arith.constant 5.000000e-01 : f32
    %371 = vector.broadcast %cst_146 : f32 to vector<32x512xf32>
    %372 = arith.mulf %371, %370 : vector<32x512xf32>
    %373 = arith.mulf %360, %372 : vector<32x512xf32>
    %374 = arith.truncf %373 : vector<32x512xf32> to vector<32x512xbf16>
    %c1_147 = arith.constant 1 : index
    %c0_148 = arith.constant 0 : index
    %c0_149 = arith.constant 0 : index
    %375 = vector.load %arg12[%c1_147, %c0_148, %c0_149] : memref<2x512x128xbf16, #tpu.memory_space<vmem>>, vector<1x512x128xbf16>
    %376 = vector.shape_cast %375 : vector<1x512x128xbf16> to vector<512x128xbf16>
    %cst_150 = arith.constant dense<0.000000e+00> : vector<32x128xf32>
    %377 = tpu.matmul %374, %376, %cst_150 {dimension_numbers = #tpu.dot_dimension_numbers<[1], [0], [0], [1], [0, 0, 1, 1], [], []>} : vector<32x512xbf16>, vector<512x128xbf16>, vector<32x128xf32> -> vector<32x128xf32>
    %c1_151 = arith.constant 1 : index
    %c0_152 = arith.constant 0 : index
    %c0_153 = arith.constant 0 : index
    %378 = vector.load %arg13[%c1_151, %c0_152, %c0_153] : memref<2x1x128xf32, #tpu.memory_space<vmem>>, vector<1x1x128xf32>
    %379 = vector.shape_cast %378 : vector<1x1x128xf32> to vector<1x128xf32>
    %380 = vector.broadcast %379 : vector<1x128xf32> to vector<32x128xf32>
    %381 = arith.addf %377, %380 : vector<32x128xf32>
    %382 = arith.addf %326, %381 : vector<32x128xf32>
    %383 = vector.extract_strided_slice %382 {offsets = [0, 0], sizes = [1, 128], strides = [1, 1]} : vector<32x128xf32> to vector<1x128xf32>
    %c0_154 = arith.constant 0 : index
    %c0_155 = arith.constant 0 : index
    %384 = vector.load %arg16[%c0_154, %c0_155] : memref<1x128xf32, #tpu.memory_space<vmem>>, vector<1x128xf32>
    %c0_156 = arith.constant 0 : index
    %c0_157 = arith.constant 0 : index
    %385 = vector.load %arg17[%c0_156, %c0_157] : memref<1x128xf32, #tpu.memory_space<vmem>>, vector<1x128xf32>
    %cst_158 = arith.constant dense<0.000000e+00> : vector<1xf32>
    %386 = vector.multi_reduction <add>, %383, %cst_158 [1] : vector<1x128xf32> to vector<1xf32>
    %387 = vector.shape_cast %386 : vector<1xf32> to vector<1x1xf32>
    %cst_159 = arith.constant 1.280000e+02 : f32
    %388 = vector.broadcast %cst_159 : f32 to vector<1x1xf32>
    %389 = arith.divf %387, %388 : vector<1x1xf32>
    %390 = vector.broadcast %389 : vector<1x1xf32> to vector<1x128xf32>
    %391 = arith.subf %383, %390 : vector<1x128xf32>
    %392 = arith.mulf %391, %391 : vector<1x128xf32>
    %cst_160 = arith.constant dense<0.000000e+00> : vector<1xf32>
    %393 = vector.multi_reduction <add>, %392, %cst_160 [1] : vector<1x128xf32> to vector<1xf32>
    %394 = vector.shape_cast %393 : vector<1xf32> to vector<1x1xf32>
    %cst_161 = arith.constant 1.280000e+02 : f32
    %395 = vector.broadcast %cst_161 : f32 to vector<1x1xf32>
    %396 = arith.divf %394, %395 : vector<1x1xf32>
    %397 = vector.broadcast %389 : vector<1x1xf32> to vector<1x128xf32>
    %398 = arith.subf %383, %397 : vector<1x128xf32>
    %cst_162 = arith.constant 9.99999996E-13 : f32
    %399 = vector.broadcast %cst_162 : f32 to vector<1x1xf32>
    %400 = arith.addf %396, %399 : vector<1x1xf32>
    %401 = math.rsqrt %400 : vector<1x1xf32>
    %402 = vector.broadcast %401 : vector<1x1xf32> to vector<1x128xf32>
    %403 = arith.mulf %398, %402 : vector<1x128xf32>
    %404 = arith.mulf %403, %384 : vector<1x128xf32>
    %405 = arith.addf %404, %385 : vector<1x128xf32>
    %c0_163 = arith.constant 0 : index
    %c0_164 = arith.constant 0 : index
    %406 = vector.load %arg18[%c0_163, %c0_164] : memref<1x128xf32, #tpu.memory_space<vmem>>, vector<1x128xf32>
    %c0_165 = arith.constant 0 : index
    %c0_166 = arith.constant 0 : index
    %407 = vector.load %arg19[%c0_165, %c0_166] : memref<1x128xf32, #tpu.memory_space<vmem>>, vector<1x128xf32>
    %cst_167 = arith.constant dense<0.000000e+00> : vector<1xf32>
    %408 = vector.multi_reduction <add>, %405, %cst_167 [1] : vector<1x128xf32> to vector<1xf32>
    %409 = vector.shape_cast %408 : vector<1xf32> to vector<1x1xf32>
    %cst_168 = arith.constant 1.280000e+02 : f32
    %410 = vector.broadcast %cst_168 : f32 to vector<1x1xf32>
    %411 = arith.divf %409, %410 : vector<1x1xf32>
    %412 = vector.broadcast %411 : vector<1x1xf32> to vector<1x128xf32>
    %413 = arith.subf %405, %412 : vector<1x128xf32>
    %414 = arith.mulf %413, %413 : vector<1x128xf32>
    %cst_169 = arith.constant dense<0.000000e+00> : vector<1xf32>
    %415 = vector.multi_reduction <add>, %414, %cst_169 [1] : vector<1x128xf32> to vector<1xf32>
    %416 = vector.shape_cast %415 : vector<1xf32> to vector<1x1xf32>
    %cst_170 = arith.constant 1.280000e+02 : f32
    %417 = vector.broadcast %cst_170 : f32 to vector<1x1xf32>
    %418 = arith.divf %416, %417 : vector<1x1xf32>
    %419 = vector.broadcast %411 : vector<1x1xf32> to vector<1x128xf32>
    %420 = arith.subf %405, %419 : vector<1x128xf32>
    %cst_171 = arith.constant 9.99999974E-6 : f32
    %421 = vector.broadcast %cst_171 : f32 to vector<1x1xf32>
    %422 = arith.addf %418, %421 : vector<1x1xf32>
    %423 = math.rsqrt %422 : vector<1x1xf32>
    %424 = vector.broadcast %423 : vector<1x1xf32> to vector<1x128xf32>
    %425 = arith.mulf %420, %424 : vector<1x128xf32>
    %426 = arith.mulf %425, %406 : vector<1x128xf32>
    %427 = arith.addf %426, %407 : vector<1x128xf32>
    %428 = vector.shape_cast %427 : vector<1x128xf32> to vector<1x1x128xf32>
    %c0_172 = arith.constant 0 : index
    %c0_173 = arith.constant 0 : index
    %c0_174 = arith.constant 0 : index
    %429 = vector.load %arg20[%c0_172, %c0_173, %c0_174] : memref<1x1x128xf32, #tpu.memory_space<vmem>>, vector<1x1x128xf32>
    tpu.vector_store %arg20[%c0_172, %c0_173, %c0_174], %428 {strides = array<i32>} : memref<1x1x128xf32, #tpu.memory_space<vmem>>, vector<1x1x128xf32>,
    return
  }
  func.func @transform_0(%arg0: i32) -> (i32, i32) {
    %c0_i32 = arith.constant 0 : i32
    %c0_i32_0 = arith.constant 0 : i32
    return %arg0, %c0_i32 : i32, i32
  }
  func.func @transform_1(%arg0: i32) -> (i32, i32) {
    %c0_i32 = arith.constant 0 : i32
    %c0_i32_0 = arith.constant 0 : i32
    %c0_i32_1 = arith.constant 0 : i32
    return %c0_i32, %c0_i32_0 : i32, i32
  }
  func.func @transform_2(%arg0: i32) -> (i32, i32) {
    %c0_i32 = arith.constant 0 : i32
    %c0_i32_0 = arith.constant 0 : i32
    %c0_i32_1 = arith.constant 0 : i32
    return %c0_i32, %c0_i32_0 : i32, i32
  }
  func.func @transform_3(%arg0: i32) -> (i32, i32, i32) {
    %c0_i32 = arith.constant 0 : i32
    %c0_i32_0 = arith.constant 0 : i32
    %c0_i32_1 = arith.constant 0 : i32
    %c0_i32_2 = arith.constant 0 : i32
    return %c0_i32, %c0_i32_0, %c0_i32_1 : i32, i32, i32
  }
  func.func @transform_4(%arg0: i32) -> (i32, i32, i32) {
    %c0_i32 = arith.constant 0 : i32
    %c0_i32_0 = arith.constant 0 : i32
    %c0_i32_1 = arith.constant 0 : i32
    %c0_i32_2 = arith.constant 0 : i32
    return %c0_i32, %c0_i32_0, %c0_i32_1 : i32, i32, i32
  }
  func.func @transform_5(%arg0: i32) -> (i32, i32, i32) {
    %c0_i32 = arith.constant 0 : i32
    %c0_i32_0 = arith.constant 0 : i32
    %c0_i32_1 = arith.constant 0 : i32
    %c0_i32_2 = arith.constant 0 : i32
    return %c0_i32, %c0_i32_0, %c0_i32_1 : i32, i32, i32
  }
  func.func @transform_6(%arg0: i32) -> (i32, i32, i32) {
    %c0_i32 = arith.constant 0 : i32
    %c0_i32_0 = arith.constant 0 : i32
    %c0_i32_1 = arith.constant 0 : i32
    %c0_i32_2 = arith.constant 0 : i32
    return %c0_i32, %c0_i32_0, %c0_i32_1 : i32, i32, i32
  }
  func.func @transform_7(%arg0: i32) -> (i32, i32, i32) {
    %c0_i32 = arith.constant 0 : i32
    %c0_i32_0 = arith.constant 0 : i32
    %c0_i32_1 = arith.constant 0 : i32
    %c0_i32_2 = arith.constant 0 : i32
    return %c0_i32, %c0_i32_0, %c0_i32_1 : i32, i32, i32
  }
  func.func @transform_8(%arg0: i32) -> (i32, i32, i32) {
    %c0_i32 = arith.constant 0 : i32
    %c0_i32_0 = arith.constant 0 : i32
    %c0_i32_1 = arith.constant 0 : i32
    %c0_i32_2 = arith.constant 0 : i32
    return %c0_i32, %c0_i32_0, %c0_i32_1 : i32, i32, i32
  }
  func.func @transform_9(%arg0: i32) -> (i32, i32, i32) {
    %c0_i32 = arith.constant 0 : i32
    %c0_i32_0 = arith.constant 0 : i32
    %c0_i32_1 = arith.constant 0 : i32
    %c0_i32_2 = arith.constant 0 : i32
    return %c0_i32, %c0_i32_0, %c0_i32_1 : i32, i32, i32
  }
  func.func @transform_10(%arg0: i32) -> (i32, i32, i32) {
    %c0_i32 = arith.constant 0 : i32
    %c0_i32_0 = arith.constant 0 : i32
    %c0_i32_1 = arith.constant 0 : i32
    %c0_i32_2 = arith.constant 0 : i32
    return %c0_i32, %c0_i32_0, %c0_i32_1 : i32, i32, i32
  }
  func.func @transform_11(%arg0: i32) -> (i32, i32, i32) {
    %c0_i32 = arith.constant 0 : i32
    %c0_i32_0 = arith.constant 0 : i32
    %c0_i32_1 = arith.constant 0 : i32
    %c0_i32_2 = arith.constant 0 : i32
    return %c0_i32, %c0_i32_0, %c0_i32_1 : i32, i32, i32
  }
  func.func @transform_12(%arg0: i32) -> (i32, i32, i32) {
    %c0_i32 = arith.constant 0 : i32
    %c0_i32_0 = arith.constant 0 : i32
    %c0_i32_1 = arith.constant 0 : i32
    %c0_i32_2 = arith.constant 0 : i32
    return %c0_i32, %c0_i32_0, %c0_i32_1 : i32, i32, i32
  }
  func.func @transform_13(%arg0: i32) -> (i32, i32, i32) {
    %c0_i32 = arith.constant 0 : i32
    %c0_i32_0 = arith.constant 0 : i32
    %c0_i32_1 = arith.constant 0 : i32
    %c0_i32_2 = arith.constant 0 : i32
    return %c0_i32, %c0_i32_0, %c0_i32_1 : i32, i32, i32
  }
  func.func @transform_14(%arg0: i32) -> (i32, i32, i32) {
    %c0_i32 = arith.constant 0 : i32
    %c0_i32_0 = arith.constant 0 : i32
    %c0_i32_1 = arith.constant 0 : i32
    %c0_i32_2 = arith.constant 0 : i32
    return %c0_i32, %c0_i32_0, %c0_i32_1 : i32, i32, i32
  }
  func.func @transform_15(%arg0: i32) -> (i32, i32) {
    %c0_i32 = arith.constant 0 : i32
    %c0_i32_0 = arith.constant 0 : i32
    %c0_i32_1 = arith.constant 0 : i32
    return %c0_i32, %c0_i32_0 : i32, i32
  }
  func.func @transform_16(%arg0: i32) -> (i32, i32) {
    %c0_i32 = arith.constant 0 : i32
    %c0_i32_0 = arith.constant 0 : i32
    %c0_i32_1 = arith.constant 0 : i32
    return %c0_i32, %c0_i32_0 : i32, i32
  }
  func.func @transform_17(%arg0: i32) -> (i32, i32) {
    %c0_i32 = arith.constant 0 : i32
    %c0_i32_0 = arith.constant 0 : i32
    %c0_i32_1 = arith.constant 0 : i32
    return %c0_i32, %c0_i32_0 : i32, i32
  }
  func.func @transform_18(%arg0: i32) -> (i32, i32) {
    %c0_i32 = arith.constant 0 : i32
    %c0_i32_0 = arith.constant 0 : i32
    %c0_i32_1 = arith.constant 0 : i32
    return %c0_i32, %c0_i32_0 : i32, i32
  }
  func.func @transform_19(%arg0: i32) -> (i32, i32, i32) {
    %c0_i32 = arith.constant 0 : i32
    %c0_i32_0 = arith.constant 0 : i32
    %c0_i32_1 = arith.constant 0 : i32
    return %arg0, %c0_i32, %c0_i32_0 : i32, i32, i32
  }
}

</mosaic_0001>

<bundles_post_ra>
// kernel: vit_encoder_forward.1
= control target key start
LH: loop header
LB: loop body
LE: loop exit
PB: predicated region body
PF: predicated region fallthrough
CT: control target
= control target key end

     0   :  { %s9234_s0 = inlined_call_operand.vmem [shape: bf16[64,768], index: 0, kind: input, shape index: {}]   ;;  %s9235_s1 = inlined_call_operand.vmem [shape: f32[32,128], index: 1, kind: input, shape index: {}]   ;;  %s9236_s2 = inlined_call_operand.vmem [shape: bf16[768,128], index: 2, kind: input, shape index: {}]   ;;  %s9237_s3 = inlined_call_operand.vmem [shape: bf16[2,128,384], index: 3, kind: input, shape index: {}]   ;;  %s9238_s4 = inlined_call_operand.vmem [shape: f32[2,1,384], index: 4, kind: input, shape index: {}]   ;;  %s9239_s5 = inlined_call_operand.vmem [shape: bf16[2,128,128], index: 5, kind: input, shape index: {}]   ;;  %s9240_s6 = inlined_call_operand.vmem [shape: f32[2,1,128], index: 6, kind: input, shape index: {}]   ;;  %s9241_s7 = inlined_call_operand.vmem [shape: f32[2,1,128], index: 7, kind: input, shape index: {}]   ;;  %s9242_s8 = inlined_call_operand.vmem [shape: f32[2,1,128], index: 8, kind: input, shape index: {}]   ;;  %s9243_s9 = inlined_call_operand.vmem [shape: bf16[2,128,512], index: 9, kind: input, shape index: {}]   ;;  %s9244_s10 = inlined_call_operand.vmem [shape: f32[2,1,512], index: 10, kind: input, shape index: {}]   ;;  %s9245_s11 = inlined_call_operand.vmem [shape: bf16[2,512,128], index: 11, kind: input, shape index: {}]   ;;  %s9246_s12 = inlined_call_operand.vmem [shape: f32[2,1,128], index: 12, kind: input, shape index: {}]   ;;  %s9247_s13 = inlined_call_operand.vmem [shape: f32[2,1,128], index: 13, kind: input, shape index: {}]   ;;  %s9248_s14 = inlined_call_operand.vmem [shape: f32[2,1,128], index: 14, kind: input, shape index: {}]   ;;  %s9249_s15 = inlined_call_operand.vmem [shape: f32[1,128], index: 15, kind: input, shape index: {}]   ;;  %s9250_s16 = inlined_call_operand.vmem [shape: f32[1,128], index: 16, kind: input, shape index: {}]   ;;  %s9251_s17 = inlined_call_operand.vmem [shape: f32[1,128], index: 17, kind: input, shape index: {}]   ;;  %s9252_s18 = inlined_call_operand.vmem [shape: f32[1,128], index: 18, kind: input, shape index: {}]   ;;  %s9253_s19 = inlined_call_operand.hbm [shape: f32[2,1,128], index: 19, kind: output, shape index: {}]  }
   0x1   :  { %9272 = sst [smem:[#allocation11_spill]] %s9234_s0 }
   0x2   :  { %9273 = sst [smem:[#allocation12_spill]] %s9235_s1 }
   0x3   :  { %9274 = sst [smem:[#allocation13_spill]] %s9236_s2 }
   0x4   :  { %9275 = sst [smem:[#allocation14_spill]] %s9237_s3 }
   0x5   :  { %9276 = sst [smem:[#allocation15_spill]] %s9253_s19 }
   0x6   :  { %24 = vsyncpa [#allocation3], 0 }
   0x7   :  { %26 = vsyncpa [#allocation3 + $0x1], 0  ;;  %s7462_s0 = smov 0   ;;  %s7464_s30 = smov 0  }
   0x8   :  { %s7466_s20 = smov 0   ;;  %s7468_s21 = smov 0  }
   0x9 LB: > { %9277 = sst [smem:[#allocation5_spill]] %s7342_s0  ;;  %s7483_s1 = sadd.s32 4294967295, %s7354_s21   ;;  %s7354_s21 = sphi %s7468_s21, %s9296_s21   ;;  %s7350_s20 = sphi %s7466_s20, %s9298_s20   ;;  %s7346_s30 = sphi %s7464_s30, %s9300_s30   ;;  %s7342_s0 = sphi %s7462_s0, %s9299_s0  }
   0xa   : > { %9278 = sst [smem:[#allocation6_spill]] %s7350_s20  ;;  %s5672_s22 = sadd.s32 4294967294, %s7354_s21  }
   0xb   : > { %9279 = sst [smem:[#allocation7_spill]] %s7354_s21  ;;  %s7487_s2 = sadd.s32 1, %s7354_s21  }
   0xc   : > { %9280 = sst [smem:[#allocation8_spill]] %s7487_s2  ;;  %s443_s23 = sadd.s32 1, %s7350_s20 }
   0xd   : > { %s440_s24 = ssub.s32 %s7354_s21, %s7487_s2  ;;  %p453_p0 = scmp.ne.s32.totalorder %s7350_s20, %s7346_s30 }
   0xe   : > { %p441_p1 = scmp.eq.s32.totalorder %s440_s24, 0  ;;  %p454_p2 = scmp.eq.s32.totalorder %s7483_s1, 1 }
   0xf   : > { %p459_p3 = scmp.ne.s32.totalorder %s7346_s30, %s7342_s0  ;;  %p460_p4 = scmp.eq.s32.totalorder %s5672_s22, 1 }
  0x10   : > { %s7498_s25 = scalar_select %p441_p1, %s7350_s20, %s443_s23  }
  0x11   : > { %p7500_p5 = por %p454_p2, %p453_p0  ;;  %p7504_p6 = por %p460_p4, %p459_p3 }
  0x12   : > { %9281 = sst [smem:[#allocation9_spill]] %s7498_s25  ;;  %p5675_p7 = scmp.ge.s32.totalorder %s7354_s21, 1 }
  0x13   : > { %s9283_s26 = scalar_select %p7504_p6, 1, 0 }
  0x14   : > { %p542_p8 = scmp.lt.s32.totalorder %s7354_s21, 3 }
  0x15   : > { %9284 = sst [smem:[#allocation10_spill]] %s9283_s26 }
  0x16   : > { %p543_p9 = pnand %p5675_p7, %p542_p8 }
  0x17   : > { %s9285_s29 = sld [smem:[#allocation13_spill]] (!%p543_p9)  ;;  %s5676_s26 = sshll.u32 (!%p543_p9), %s7483_s1, 2  ;;  %vm1571_vm0 = vcmask (!%p543_p9), 261120   ;;  %vm2352_vm2 = vcmask (!%p543_p9), 523264   ;;  %vm2357_vm3 = vcmask (!%p543_p9), 785408   ;;  %vm5570_vm4 = vcmask (!%p543_p9), 1040384  }
  0x18   : > { %546 = sbr.rel (%p543_p9) target bundleno = 8656 (0x21d0), region = 96  ;;  %p599_p10 = scmp.lt.s32.totalorder (!%p543_p9), %s5676_s26, 7 }
  0x19   : > { %s9286_s19 = sld [smem:[#allocation11_spill]] (!%p543_p9)  ;;  %s9287_s27 = sld [smem:[#allocation12_spill]] (!%p543_p9) }
  0x1a   : > { %s9264_s28 = smov (!%p543_p9), 96   ;;  %s9289_s24 = smov (!%p543_p9), 96  }
  0x1b   : > { %s596_s23 = sand.u32 (!%p543_p9), 1, %s7346_s30   ;;  %s6126_s0 = sshll.u32 (!%p543_p9), %s7483_s1, 4 }
  0x1c   : > { %s5605_s25 = scalar_lea.sflag (!%p543_p9), [#allocation3], %s596_s23  ;;  %s7361_s1 = smov (!%p543_p9), [#allocation2]  }
  0x1d   : > { %v6758_v0 = vld [vmem:[%s9285_s29 + $0x40] sm:$0xff] (!%p543_p9)   ;;  %v6762_v4 = vld [vmem:[%s9285_s29 + $0x48] sm:$0xff] (!%p543_p9)   ;;  %v6766_v8 = vld [vmem:[%s9285_s29 + $0x50] sm:$0xff] (!%p543_p9)   ;;  %s7296_s20 = sshll.u32 (!%p543_p9), %s7361_s1, 4  ;;  %s7297_s20 = int_to_ptr.vmem [resolvable:$false] %s7296_s20 }
  0x1e   : > { %v6759_v1 = vld [vmem:[%s9285_s29] sm:$0xff] (!%p543_p9)   ;;  %6129 = vmatprep.subr.bf16.mxu0 (!%p543_p9), %v6758_v0  ;;  %v6763_v5 = vld [vmem:[%s9285_s29 + $0x8] sm:$0xff] (!%p543_p9)   ;;  %v6767_v9 = vld [vmem:[%s9285_s29 + $0x10] sm:$0xff] (!%p543_p9)   ;;  %s7298_s2 = scalar_lea.vmem (!%p543_p9), %s7297_s20, 32 }
  0x1f   : > { %v6760_v2 = vld [vmem:[%s9285_s29 + $0xc0] sm:$0xff]   ;;  %6130 = vmatpush3.bf16.msra.mxu0 %v6759_v1  ;;  %v6764_v6 = vld [vmem:[%s9285_s29 + $0xc8] sm:$0xff]   ;;  %v6768_v10 = vld [vmem:[%s9285_s29 + $0xd0] sm:$0xff]   ;;  %s9302_s26 = smov (!%p599_p10, %s5676_s26), 7 }
  0x20   : > { %v6761_v3 = vld [vmem:[%s9285_s29 + $0x80] sm:$0xff]   ;;  %6157 = vmatprep.subr.bf16.mxu1 %v6760_v2  ;;  %6131 = vmatprep.subr.bf16.mxu0 %v6762_v4  ;;  %v6765_v7 = vld [vmem:[%s9285_s29 + $0x88] sm:$0xff]   ;;  %v6769_v11 = vld [vmem:[%s9285_s29 + $0x90] sm:$0xff]   ;;  %s6653_s22 = smul.u32 24, %s9302_s26  ;;  %s9268_s26 = smov 64  }
  0x21   : > { %6158 = vmatpush3.bf16.msra.mxu1 %v6761_v3  ;;  %v6770_v12 = vld [vmem:[%s9285_s29 + $0x58] sm:$0xff]   ;;  %v6774_v16 = vld [vmem:[%s9285_s29 + $0x60] sm:$0xff]   ;;  %v6778_v20 = vld [vmem:[%s9285_s29 + $0x68] sm:$0xff]  }
  0x22   : > { %6159 = vmatprep.subr.bf16.mxu1 %v6764_v6  ;;  %v6771_v13 = vld [vmem:[%s9285_s29 + $0x18] sm:$0xff]   ;;  %v6775_v17 = vld [vmem:[%s9285_s29 + $0x20] sm:$0xff]   ;;  %v6779_v21 = vld [vmem:[%s9285_s29 + $0x28] sm:$0xff]   ;;  %s7601_s21 = scalar_lea.vmem %s9286_s19, %s6653_s22  ;;  %s9288_s19 = sld [smem:[#allocation14_spill]] }
  0x23   : > { %6132 = vmatpush3.bf16.msra.mxu0 %v6763_v5  ;;  %v6772_v14 = vld [vmem:[%s9285_s29 + $0xd8] sm:$0xff]   ;;  %v6776_v18 = vld [vmem:[%s9285_s29 + $0xe0] sm:$0xff]   ;;  %v6780_v22 = vld [vmem:[%s9285_s29 + $0xe8] sm:$0xff]   ;;  %s597_s22 = scalar_lea.vmem [#allocation2], %s596_s23 }
  0x24   : > { %6133 = vmatprep.subr.bf16.mxu0 %v6766_v8  ;;  %v6773_v15 = vld [vmem:[%s9285_s29 + $0x98] sm:$0xff]   ;;  %v6777_v19 = vld [vmem:[%s9285_s29 + $0xa0] sm:$0xff]   ;;  %v6781_v23 = vld [vmem:[%s9285_s29 + $0xa8] sm:$0xff]  }
  0x25   : > { %6160 = vmatpush3.bf16.msra.mxu1 %v6765_v7  ;;  %v6782_v24 = vld [vmem:[%s9285_s29 + $0x70] sm:$0xff]   ;;  %v6786_v28 = vld [vmem:[%s9285_s29 + $0x78] sm:$0xff]   ;;  %v6793_v34 = vld [vmem:[%s9285_s29 + $0x140] sm:$0xff]  }
  0x26   : > { %6161 = vmatprep.subr.bf16.mxu1 %v6768_v10  ;;  %v6783_v25 = vld [vmem:[%s9285_s29 + $0x30] sm:$0xff]   ;;  %v6787_v29 = vld [vmem:[%s9285_s29 + $0x38] sm:$0xff]   ;;  %v6794_v35 = vld [vmem:[%s7601_s21 + $0x8] ss:$24 sps:$4 sm:$0xff]  }
  0x27   : > { %6134 = vmatpush3.bf16.msra.mxu0 %v6767_v9  ;;  %v6784_v26 = vld [vmem:[%s9285_s29 + $0xf0] sm:$0xff]   ;;  %v6788_v30 = vld [vmem:[%s9285_s29 + $0xf8] sm:$0xff]   ;;  %v6796_v36 = vld [vmem:[%s7601_s21 + $0xc] ss:$24 sps:$4 sm:$0xff]  }
  0x28   : > { %6135 = vmatprep.subr.bf16.mxu0 %v6770_v12  ;;  %v6785_v27 = vld [vmem:[%s9285_s29 + $0xb0] sm:$0xff]   ;;  %v6789_v31 = vld [vmem:[%s7601_s21] ss:$24 sps:$4 sm:$0xff]   ;;  %v6791_v32 = vld [vmem:[%s7601_s21 + $0x4] ss:$24 sps:$4 sm:$0xff]   ;;  %1147 = vmatprep.mubr.bf16.mxu1 %v6796_v36 }
  0x29   : > { %6162 = vmatpush3.bf16.msra.mxu1 %v6769_v11  ;;  %v6792_v33 = vld [vmem:[%s9285_s29 + $0xb8] sm:$0xff]   ;;  %1098 = vmatprep.mubr.bf16.mxu0 %v6791_v32  ;;  %v6797_v37 = vld [vmem:[%s9285_s29 + $0x100] sm:$0xff]   ;;  %v6798_v38 = vld [vmem:[%s9285_s29 + $0x148] sm:$0xff]  }
  0x2a   : > { %6163 = vmatprep.subr.bf16.mxu1 %v6772_v14  ;;  %v6799_v39 = vld [vmem:[%s9285_s29 + $0x108] sm:$0xff]   ;;  %v6800_v40 = vld [vmem:[%s9285_s29 + $0x150] sm:$0xff]   ;;  %v6802_v42 = vld [vmem:[%s9285_s29 + $0x158] sm:$0xff]  }
  0x2b   : > { %6136 = vmatpush3.bf16.msra.mxu0 %v6771_v13  ;;  %v6801_v41 = vld [vmem:[%s9285_s29 + $0x110] sm:$0xff]   ;;  %v6803_v44 = vld [vmem:[%s9285_s29 + $0x118] sm:$0xff]   ;;  %v6804_v46 = vld [vmem:[%s9285_s29 + $0x160] sm:$0xff]  }
  0x2c   : > { %6137 = vmatprep.subr.bf16.mxu0 %v6774_v16  ;;  %v6806_v43 = vld [vmem:[%s7601_s21 + $0x34] ss:$24 sps:$4 sm:$0xff]   ;;  %v6809_v45 = vld [vmem:[%s7601_s21 + $0x30] ss:$24 sps:$4 sm:$0xff]   ;;  %v6805_v49 = vld [vmem:[%s9285_s29 + $0x120] sm:$0xff]  }
  0x2d   : > { %6164 = vmatpush3.bf16.msra.mxu1 %v6773_v15  ;;  %v6811_v47 = vld [vmem:[%s7601_s21 + $0x3c] ss:$24 sps:$4 sm:$0xff]   ;;  %v6813_v48 = vld [vmem:[%s7601_s21 + $0x38] ss:$24 sps:$4 sm:$0xff]   ;;  %v6808_v50 = vld [vmem:[%s9285_s29 + $0x168] sm:$0xff]  }
  0x2e   : > { %6165 = vmatprep.subr.bf16.mxu1 %v6776_v18  ;;  %v6810_v51 = vld [vmem:[%s9285_s29 + $0x128] sm:$0xff]   ;;  %v6814_v53 = vld [vmem:[%s9285_s29 + $0x170] sm:$0xff]   ;;  %v6816_v55 = vld [vmem:[%s9285_s29 + $0x178] sm:$0xff]  }
  0x2f   : > { %6138 = vmatpush3.bf16.msra.mxu0 %v6775_v17  ;;  %v6820_v52 = vld [vmem:[%s7601_s21 + $0x14] ss:$24 sps:$4 sm:$0xff]   ;;  %v6817_v56 = vld [vmem:[%s9285_s29 + $0x138] sm:$0xff]   ;;  %v6818_v57 = vld [vmem:[%s7601_s21 + $0x10] ss:$24 sps:$4 sm:$0xff]  }
  0x30   : > { %6139 = vmatprep.subr.bf16.mxu0 %v6778_v20  ;;  %v6815_v54 = vld [vmem:[%s9285_s29 + $0x130] sm:$0xff]   ;;  %v6821_v58 = vld [vmem:[%s7601_s21 + $0x44] ss:$24 sps:$4 sm:$0xff]   ;;  %v6823_v59 = vld [vmem:[%s7601_s21 + $0x40] ss:$24 sps:$4 sm:$0xff]   ;;  %s9266_s21 = smov 32  }
  0x31   : > { %6166 = vmatpush3.bf16.msra.mxu1 %v6777_v19  ;;  %v714_v61 = vld [vmem:[%s9287_s27] sm:$0xff]  ;;  %v715_v2 = vld [vmem:[%s9287_s27 + $0x8] sm:$0xff]  ;;  %v716_v15 = vld [vmem:[%s9287_s27 + $0x10] sm:$0xff] }
  0x32   : > { %6167 = vmatprep.subr.bf16.mxu1 %v6780_v22  ;;  %v717_v20 = vld [vmem:[%s9287_s27 + $0x18] sm:$0xff]  ;;  %s9292_s27 = sld [smem:[#allocation15_spill]] }
  0x33   : > { %6140 = vmatpush3.bf16.msra.mxu0 %v6779_v21 }
  0x34   : > { %6141 = vmatprep.subr.bf16.mxu0 %v6782_v24 }
  0x35   : > { %6168 = vmatpush3.bf16.msra.mxu1 %v6781_v23 }
  0x36   : > { %6169 = vmatprep.subr.bf16.mxu1 %v6784_v26 }
  0x37   : > { %6142 = vmatpush3.bf16.msra.mxu0 %v6783_v25 }
  0x38   : > { %6143 = vmatprep.subr.bf16.mxu0 %v6786_v28 }
  0x39   : > { %6170 = vmatpush3.bf16.msra.mxu1 %v6785_v27 }
  0x3a   : > { %6171 = vmatprep.subr.bf16.mxu1 %v6788_v30 }
  0x3b   : > { %6144 = vmatpush3.bf16.msra.mxu0 %v6787_v29 }
  0x3c   : > { %6185 = vmatprep.subr.bf16.mxu0 %v6793_v34 }
  0x3d   : > { %6172 = vmatpush3.bf16.msra.mxu1 %v6792_v33 }
  0x3e   : > { %1099 = vmatmul.mubr.bf16.vlgmr.msra.gmra.mrb[0].mxu0 %v6789_v31 }
  0x3f   : > { %6186 = vmatpush3.bf16.msra.mxu0 %v6797_v37  ;;  %1106 = vmatprep.mubr.bf16.mxu0 %v6806_v43 }
  0x40   : > { %1148 = vmatmul.mubr.bf16.vlgmr.msra.gmra.mrb[0].mxu1 %v6794_v35  ;;  %6187 = vmatprep.subr.bf16.mxu0 %v6798_v38 }
  0x41   : > { %1155 = vmatprep.mubr.bf16.mxu1 %v6811_v47 }
  0x43   : > { %6188 = vmatpush3.bf16.msra.mxu0 %v6799_v39 }
  0x44   : > { %6189 = vmatprep.subr.bf16.mxu0 %v6800_v40 }
  0x46   : > { %1107 = vmatmul.mubr.bf16.gmra.mrb[4].mxu0 %v6809_v45 }
  0x47   : > { %6190 = vmatpush3.bf16.msra.mxu0 %v6801_v41  ;;  %1196 = vmatprep.mubr.bf16.mxu0 %v6820_v52 }
  0x48   : > { %6191 = vmatprep.subr.bf16.mxu0 %v6802_v42  ;;  %1156 = vmatmul.mubr.bf16.gmra.mrb[4].mxu1 %v6813_v48  ;;  %v6824_v48 = vld [vmem:[%s9288_s19] ss:$12 sps:$4 sm:$0xff]  }
  0x4b   : > { %6192 = vmatpush3.bf16.msra.mxu0 %v6803_v44 }
  0x4c   : > { %6193 = vmatprep.subr.bf16.mxu0 %v6804_v46 }
  0x4f   : > { %6194 = vmatpush3.bf16.msra.mxu0 %v6805_v49  ;;  %v6826_v49 = vld [vmem:[%s9288_s19 + $0x4] ss:$12 sps:$4 sm:$0xff]  }
  0x50   : > { %6195 = vmatprep.subr.bf16.mxu0 %v6808_v50  ;;  %v6829_v50 = vld [vmem:[%s9288_s19 + $0x1c] ss:$12 sps:$4 sm:$0xff]   ;;  %1463 = vmatprep.subr.bf16.mxu1 %v6826_v49 }
  0x51   : > { %1464 = vmatpush1.bf16.msra.mxu1 %v6824_v48 }
  0x52   : > { %1465 = vmatprep.subr.bf16.mxu1 %v6829_v50 }
  0x53   : > { %6196 = vmatpush3.bf16.msra.mxu0 %v6810_v51  ;;  %v6827_v51 = vld [vmem:[%s9288_s19 + $0x18] ss:$12 sps:$4 sm:$0xff]  }
  0x54   : > { %6197 = vmatprep.subr.bf16.mxu0 %v6814_v53 }
  0x55   : > { %1466 = vmatpush1.bf16.msra.mxu1 %v6827_v51 }
  0x57   : > { %6198 = vmatpush3.bf16.msra.mxu0 %v6815_v54 }
  0x58   : > { %6199 = vmatprep.subr.bf16.mxu0 %v6816_v55 }
  0x5b   : > { %6200 = vmatpush3.bf16.msra.mxu0 %v6817_v56 }
  0x5e   : > { %1197 = vmatmul.mubr.bf16.vlgmr.msra.gmra.mrb[8].mxu0 %v6818_v57 }
  0x5f   : > { %1204 = vmatprep.mubr.bf16.mxu0 %v6821_v58 }
  0x66   : > { %1205 = vmatmul.mubr.bf16.gmra.mrb[12].mxu0 %v6823_v59 }
 0x111   : > { %v6145_v60 = vpop.f32.mrb[0].mxu0 }
 0x112   : > { %v6146_v62 = vpop.f32.mrb[1].mxu0 }
 0x113   : > { %v6147_v63 = vadd.f32 %v6146_v62, %v6145_v60  ;;  %v6148_v0 = vpop.f32.mrb[2].mxu0  ;;  %v6173_v1 = vpop.f32.mrb[0].mxu1 }
 0x114   : > { %v6149_v3 = vpop.f32.mrb[3].mxu0  ;;  %v6174_v6 = vpop.f32.mrb[1].mxu1 }
 0x115   : > { %v1101_v4 = vadd.f32 %v6147_v63, %v714_v61  ;;  %v6150_v5 = vadd.f32 %v6149_v3, %v6148_v0  ;;  %v6175_v7 = vadd.f32 %v6174_v6, %v6173_v1  ;;  %v6176_v8 = vpop.f32.mrb[2].mxu1  ;;  %v6830_v6 = vld [vmem:[%s9288_s19 + $0x30] ss:$12 sps:$4 sm:$0xff]  }
 0x116   : > { %v6177_v10 = vpop.f32.mrb[3].mxu1 }
 0x117   : > { %v1104_v9 = vadd.f32 %v6150_v5, %v715_v2  ;;  %v1150_v11 = vadd.f32 %v6175_v7, %v1101_v4  ;;  %v6178_v12 = vadd.f32 %v6177_v10, %v6176_v8  ;;  %v6832_v4 = vld [vmem:[%s9288_s19 + $0x34] ss:$12 sps:$4 sm:$0xff]   ;;  %v6836_v7 = vld [vmem:[%s9288_s19 + $0x4c] ss:$12 sps:$4 sm:$0xff]   ;;  %v6840_v10 = vld [vmem:[%s9288_s19 + $0x64] ss:$12 sps:$4 sm:$0xff]  }
 0x118   : > { %v6833_v5 = vld [vmem:[%s9288_s19 + $0x8] ss:$12 sps:$4 sm:$0xff]   ;;  %1467 = vmatprep.subr.bf16.mxu1 %v6832_v4  ;;  %v6837_v8 = vld [vmem:[%s9288_s19 + $0x20] ss:$12 sps:$4 sm:$0xff]  }
 0x119   : > { %v1153_v13 = vadd.f32 %v6178_v12, %v1104_v9  ;;  %v6151_v14 = vpop.f32.mrb[4].mxu0  ;;  %6429 = vmatprep.subr.bf16.mxu0 %v6833_v5  ;;  %1468 = vmatpush1.bf16.msra.mxu1 %v6830_v6  ;;  %v6834_v9 = vld [vmem:[%s9288_s19 + $0x48] ss:$12 sps:$4 sm:$0xff]   ;;  %v6838_v12 = vld [vmem:[%s9288_s19 + $0x60] ss:$12 sps:$4 sm:$0xff]  }
 0x11a   : > { %v6152_v16 = vpop.f32.mrb[5].mxu0  ;;  %6430 = vmatpush3.bf16.msra.mxu0 %v6833_v5  ;;  %1469 = vmatprep.subr.bf16.mxu1 %v6836_v7 }
 0x11b   : > { %v6153_v17 = vadd.f32 %v6152_v16, %v6151_v14  ;;  %v6154_v18 = vpop.f32.mrb[6].mxu0  ;;  %v6179_v19 = vpop.f32.mrb[4].mxu1  ;;  %6431 = vmatprep.subr.bf16.mxu0 %v6837_v8  ;;  %v6845_v14 = vld [vmem:[%s9288_s19 + $0x50] ss:$12 sps:$4 sm:$0xff]   ;;  %v6848_v16 = vld [vmem:[%s9288_s19 + $0x94] ss:$12 sps:$4 sm:$0xff]  }
 0x11c   : > { %v6155_v21 = vpop.f32.mrb[7].mxu0  ;;  %v6180_v24 = vpop.f32.mrb[5].mxu1 }
 0x11d   : > { %v1109_v22 = vadd.f32 %v6153_v17, %v716_v15  ;;  %v6156_v23 = vadd.f32 %v6155_v21, %v6154_v18  ;;  %v6181_v25 = vadd.f32 %v6180_v24, %v6179_v19  ;;  %v6182_v26 = vpop.f32.mrb[6].mxu1  ;;  %1470 = vmatpush1.bf16.msra.mxu1 %v6834_v9  ;;  %v6842_v15 = vld [vmem:[%s9288_s19 + $0x78] ss:$12 sps:$4 sm:$0xff]   ;;  %v6849_v17 = vld [vmem:[%s9288_s19 + $0x68] ss:$12 sps:$4 sm:$0xff]  }
 0x11e   : > { %v6183_v28 = vpop.f32.mrb[7].mxu1  ;;  %6432 = vmatpush3.bf16.msra.mxu0 %v6837_v8  ;;  %1471 = vmatprep.subr.bf16.mxu1 %v6840_v10  ;;  %v6846_v18 = vld [vmem:[%s9288_s19 + $0x90] ss:$12 sps:$4 sm:$0xff]   ;;  %v6850_v19 = vld [vmem:[%s9288_s19 + $0xa8] ss:$12 sps:$4 sm:$0xff]  }
 0x11f   : > { %v1112_v27 = vadd.f32 %v6156_v23, %v717_v20  ;;  %v1158_v29 = vadd.f32 %v6181_v25, %v1109_v22  ;;  %v6184_v30 = vadd.f32 %v6183_v28, %v6182_v26  ;;  %v6852_v20 = vld [vmem:[%s9288_s19 + $0xac] ss:$12 sps:$4 sm:$0xff]   ;;  %v7356_v22 = vmov 0   ;;  %v6855_v24 = vld [vmem:[%s9288_s19 + $0xb0] ss:$12 sps:$4 sm:$0xff]  }
 0x120   : > { %v6853_v21 = vld [vmem:[%s9288_s19 + $0x80] ss:$12 sps:$4 sm:$0xff]   ;;  %1495 = vmatprep.mubr.bf16.mxu1 %v7356_v22  ;;  %v6854_v23 = vld [vmem:[%s9288_s19 + $0x98] ss:$12 sps:$4 sm:$0xff]  }
 0x121   : > { %v1161_v31 = vadd.f32 %v6184_v30, %v1112_v27  ;;  %1472 = vmatpush1.bf16.msra.mxu1 %v6838_v12 }
 0x131   : > { %v6201_v32 = vpop.f32.mrb[8].mxu0 }
 0x132   : > { %v6202_v33 = vpop.f32.mrb[9].mxu0 }
 0x133   : > { %v6203_v34 = vadd.f32 %v6202_v33, %v6201_v32  ;;  %v6204_v35 = vpop.f32.mrb[10].mxu0 }
 0x134   : > { %v6205_v36 = vpop.f32.mrb[11].mxu0 }
 0x135   : > { %v7684_v37 = vadd.f32 %v6203_v34, %v1150_v11  ;;  %v6206_v38 = vadd.f32 %v6205_v36, %v6204_v35  ;;  %v6841_v11 = vld [vmem:[%s9288_s19 + $0x38] ss:$12 sps:$4 sm:$0xff]  }
 0x136   : > { %6433 = vmatprep.subr.bf16.mxu0 %v6841_v11 }
 0x137   : > { %v7686_v39 = vadd.f32 %v6206_v38, %v1153_v13  ;;  %1219 = vadd.xlane.f32.xlu0 %v7684_v37  ;;  %6434 = vmatpush3.bf16.msra.mxu0 %v6841_v11  ;;  %v6844_v13 = vld [vmem:[%s9288_s19 + $0x7c] ss:$12 sps:$4 sm:$0xff]  }
 0x138   : > { %1473 = vmatprep.subr.bf16.mxu1 %v6844_v13  ;;  %6435 = vmatprep.subr.bf16.mxu0 %v6845_v14 }
 0x139   : > { %v6207_v40 = vpop.f32.mrb[12].mxu0  ;;  %1474 = vmatpush1.bf16.msra.mxu1 %v6842_v15 }
 0x13a   : > { %v6208_v41 = vpop.f32.mrb[13].mxu0  ;;  %1475 = vmatprep.subr.bf16.mxu1 %v6848_v16 }
 0x13b   : > { %v6209_v42 = vadd.f32 %v6208_v41, %v6207_v40  ;;  %v6210_v43 = vpop.f32.mrb[14].mxu0  ;;  %1221 = vadd.xlane.f32.xlu0 %v7686_v39  ;;  %6436 = vmatpush3.bf16.msra.mxu0 %v6845_v14  ;;  %v5738_v41 = vld [vmem:[%s9241_s7] ss:$0 sm:$0xff] }
 0x13c   : > { %v6211_v44 = vpop.f32.mrb[15].mxu0  ;;  %6437 = vmatprep.subr.bf16.mxu0 %v6849_v17 }
 0x13d   : > { %v7690_v45 = vadd.f32 %v6209_v42, %v1158_v29  ;;  %v6212_v46 = vadd.f32 %v6211_v44, %v6210_v43  ;;  %1476 = vmatpush1.bf16.msra.mxu1 %v6846_v18 }
 0x13e   : > { %1477 = vmatprep.subr.bf16.mxu1 %v6852_v20 }
 0x13f   : > { %v7692_v47 = vadd.f32 %v6212_v46, %v1161_v31  ;;  %1223 = vadd.xlane.f32.xlu1 %v7690_v45  ;;  %6438 = vmatpush3.bf16.msra.mxu0 %v6849_v17  ;;  %v5739_v46 = vld [vmem:[%s9242_s8] ss:$0 sm:$0xff] }
 0x140   : > { %6439 = vmatprep.subr.bf16.mxu0 %v6853_v21 }
 0x141   : > { %1478 = vmatpush1.bf16.msra.mxu1 %v6850_v19 }
 0x143   : > { %1225 = vadd.xlane.f32.xlu1 %v7692_v47  ;;  %6440 = vmatpush3.bf16.msra.mxu0 %v6853_v21 }
 0x144   : > { %6441 = vmatprep.subr.bf16.mxu0 %v6854_v23 }
 0x147   : > { %6442 = vmatpush3.bf16.msra.mxu0 %v6854_v23 }
 0x148   : > { %6443 = vmatprep.subr.bf16.mxu0 %v6855_v24 }
 0x14b   : > { %6444 = vmatpush3.bf16.msra.mxu0 %v6855_v24 }
 0x1c4   : > { %v1220_v52 = vpop.xlane.xlu0 %1219 }
 0x1c5   : > { %v1228_v53 = vmul.f32 0.0078125, %v1220_v52 }
 0x1c7   : > { %v7709_v54 = vsub.f32 %v7684_v37, %v1228_v53 }
 0x1c8   : > { %v1222_v55 = vpop.xlane.xlu0 %1221 }
 0x1c9   : > { %v1229_v56 = vmul.f32 0.0078125, %v1222_v55  ;;  %v1236_v57 = vmul.f32 %v7709_v54, %v7709_v54 }
 0x1cb   : > { %1240 = vadd.xlane.f32.xlu0 %v1236_v57  ;;  %v7714_v58 = vsub.f32 %v7686_v39, %v1229_v56 }
 0x1cc   : > { %v1224_v59 = vpop.xlane.xlu1 %1223 }
 0x1cd   : > { %v1230_v60 = vmul.f32 0.0078125, %v1224_v59  ;;  %v1237_v61 = vmul.f32 %v7714_v58, %v7714_v58 }
 0x1cf   : > { %1242 = vadd.xlane.f32.xlu1 %v1237_v61  ;;  %v7719_v62 = vsub.f32 %v7690_v45, %v1230_v60  ;;  %v1213_v61 = vlaneseq }
 0x1d0   : > { %v1226_v63 = vpop.xlane.xlu1 %1225 }
 0x1d1   : > { %v1231_v0 = vmul.f32 0.0078125, %v1226_v63  ;;  %v1238_v1 = vmul.f32 %v7719_v62, %v7719_v62  ;;  %v7800_v63 = vshrl.u32 %v1213_v61, 7 }
 0x1d3   : > { %1244 = vadd.xlane.f32.xlu0 %v1238_v1  ;;  %v7724_v2 = vsub.f32 %v7692_v47, %v1231_v0  ;;  %v1318_v0 = vld [vmem:[%s9238_s4] sm:$0x7]  ;;  %v7809_v1 = vsub.s32 1, %v7800_v63  ;;  %v7814_v10 = vsub.s32 2, %v7800_v63 }
 0x1d5   : > { %v1239_v3 = vmul.f32 %v7724_v2, %v7724_v2  ;;  %v1327_v4 = vrot.slane %v1318_v0, %v7809_v1  ;;  %v1331_v15 = vrot.slane %v1318_v0, %v7814_v10 }
 0x1d7   : > { %1246 = vadd.xlane.f32.xlu1 %v1239_v3 }
 0x258   : > { %v1241_v25 = vpop.xlane.xlu0 %1240 }
 0x259   : > { %v1248_v26 = vmul.f32 0.0078125, %v1241_v25 }
 0x25b   : > { %v1252_v27 = vadd.f32 1e-12, %v1248_v26 }
 0x25c   : > { %v1243_v28 = vpop.xlane.xlu1 %1242 }
 0x25d   : > { %7064 = vrsqrt.f32 %v1252_v27  ;;  %v1249_v29 = vmul.f32 0.0078125, %v1243_v28 }
 0x25f   : > { %v1253_v30 = vadd.f32 1e-12, %v1249_v29 }
 0x260   : > { %v1245_v31 = vpop.xlane.xlu0 %1244 }
 0x261   : > { %7066 = vrsqrt.f32 %v1253_v30  ;;  %v1250_v32 = vmul.f32 0.0078125, %v1245_v31 }
 0x263   : > { %v1254_v33 = vadd.f32 1e-12, %v1250_v32 }
 0x264   : > { %v1247_v34 = vpop.xlane.xlu1 %1246 }
 0x265   : > { %7068 = vrsqrt.f32 %v1254_v33  ;;  %v1251_v35 = vmul.f32 0.0078125, %v1247_v34 }
 0x267   : > { %v7065_v36 = vpop.eup %7064  ;;  %v1255_v38 = vadd.f32 1e-12, %v1251_v35 }
 0x268   : > { %v1260_v40 = vmul.f32 %v7065_v36, %v7709_v54 }
 0x269   : > { %7070 = vrsqrt.f32 %v1255_v38 }
 0x26a   : > { %v1270_v43 = vmul.f32 %v5738_v41, %v1260_v40 }
 0x26b   : > { %v7067_v42 = vpop.eup %7066 }
 0x26c   : > { %v1261_v44 = vmul.f32 %v7067_v42, %v7714_v58  ;;  %v1280_v50 = vadd.f32 %v5739_v46, %v1270_v43  ;;  %v7357_v43 = vmov -1e+30  }
 0x26e   : > { %v1271_v48 = vmul.f32 %v5738_v41, %v1261_v44 }
 0x26f   : > { %v7069_v49 = vpop.eup %7068 }
 0x270   : > { %v1281_v51 = vadd.f32 %v5739_v46, %v1271_v48  ;;  %v1262_v52 = vmul.f32 %v7069_v49, %v7719_v62  ;;  %v7803_v62 = vsub.s32 0, %v7800_v63 }
 0x272   : > { %v1284_v53 = vpack.c.bf16 %v1281_v51, %v1280_v50  ;;  %v1272_v56 = vmul.f32 %v5738_v41, %v1262_v52 }
 0x273   : > { %v7071_v54 = vpop.eup %7070 }
 0x274   : > { %1496 = vmatmul.mubr.bf16.vlgmr.msra.gmra.mrb[8].mxu1 %v1284_v53  ;;  %6445 = vmatprep.mubr.bf16.mxu0 %v1284_v53  ;;  %v1263_v55 = vmul.f32 %v7071_v54, %v7724_v2  ;;  %v1282_v58 = vadd.f32 %v5739_v46, %v1272_v56  ;;  %v1323_v2 = vrot.slane %v1318_v0, %v7803_v62 }
 0x275   : > { %1505 = vmatprep.mubr.bf16.mxu1 %v7356_v22 }
 0x276   : > { %v1273_v57 = vmul.f32 %v5738_v41, %v1263_v55  ;;  %v1214_v41 = vand.u32 127, %v1213_v61 }
 0x278   : > { %v1283_v59 = vadd.f32 %v5739_v46, %v1273_v57  ;;  %vm1215_vm1 = vcmp.lt.s32.totalorder %v1214_v41, 17 }
 0x279   : > { %v7845_v44 = vsel %vm1215_vm1, 0.0, %v7357_v43 }
 0x27a   : > { %v1285_v60 = vpack.c.bf16 %v1283_v59, %v1282_v58 }
 0x27c   : > { %1506 = vmatmul.mubr.bf16.gmra.mrb[12].mxu1 %v1285_v60  ;;  %6446 = vmatmul.mubr.bf16.vlgmr.msra.gmra.mrb[16].mxu0 %v1285_v60 }
 0x347   : > { %v1497_v3 = vpop.f32.mrb[8].mxu1 }
 0x348   : > { %v1499_v5 = vpop.f32.mrb[9].mxu1  ;;  %v1498_v7 = vadd.f32 %v1497_v3, %v1323_v2 }
 0x349   : > { %v1501_v6 = vpop.f32.mrb[10].mxu1  ;;  %v1500_v11 = vadd.f32 %v1499_v5, %v1327_v4 }
 0x34a   : > { %v1502_v8 = vadd.f32 %v1501_v6, %v1323_v2  ;;  %v1503_v9 = vpop.f32.mrb[11].mxu1 }
 0x34b   : > { %v1504_v12 = vadd.f32 %v1503_v9, %v1327_v4 }
 0x34c   : > { %v7816_v13 = vpack.c.bf16 %v1502_v8, %v1498_v7 }
 0x34d   : > { %v7818_v14 = vpack.c.bf16 %v1504_v12, %v1500_v11 }
 0x34e   : > { %6453 = vmatprep.mubr.msk.bf16.mxu1 %vm1571_vm0, %v7816_v13 }
 0x34f   : > { %v1507_v16 = vpop.f32.mrb[12].mxu1  ;;  %v6447_v17 = vpop.f32.mrb[16].mxu0  ;;  %6637 = vmatprep.subr.msk.bf16.mxu1 %vm1571_vm0, %v7818_v14  ;;  %v1579_v18 = vsel %vm1571_vm0, %v7818_v14, 0 }
 0x350   : > { %v1509_v19 = vpop.f32.mrb[13].mxu1  ;;  %v1550_v20 = vpop.f32.mrb[17].mxu0  ;;  %6450 = vmatpush3.bf16.xpose.msra.mxu1 %v1579_v18  ;;  %v1508_v24 = vadd.f32 %v1507_v16, %v1323_v2  ;;  %v1559_v25 = vadd.f32 %v6447_v17, %v1331_v15 }
 0x351   : > { %v1511_v21 = vpop.f32.mrb[14].mxu1  ;;  %v6448_v23 = vpop.f32.mrb[18].mxu0  ;;  %v1510_v30 = vadd.f32 %v1509_v19, %v1327_v4  ;;  %v1551_v31 = vadd.f32 %v1550_v20, %v1331_v15 }
 0x352   : > { %v1512_v26 = vadd.f32 %v1511_v21, %v1323_v2  ;;  %v1562_v27 = vadd.f32 %v6448_v23, %v1331_v15  ;;  %v1513_v28 = vpop.f32.mrb[15].mxu1  ;;  %v1553_v29 = vpop.f32.mrb[19].mxu0 }
 0x353   : > { %v1514_v32 = vadd.f32 %v1513_v28, %v1327_v4  ;;  %v1554_v33 = vadd.f32 %v1553_v29, %v1331_v15 }
 0x354   : > { %v7827_v34 = vpack.c.bf16 %v1512_v26, %v1508_v24  ;;  %v7829_v35 = vpack.c.bf16 %v1562_v27, %v1559_v25 }
 0x355   : > { %v7831_v36 = vpack.c.bf16 %v1514_v32, %v1510_v30  ;;  %v7833_v38 = vpack.c.bf16 %v1554_v33, %v1551_v31 }
 0x357   : > { %6638 = vmatprep.subr.msk.bf16.mxu1 %vm1571_vm0, %v7831_v36  ;;  %v1582_v40 = vsel %vm1571_vm0, %v7831_v36, 0 }
 0x358   : > { %6452 = vmatpush3.bf16.xpose.msra.mxu1 %v1582_v40 }
 0x359   : > { %6457 = vmatprep.subr.bf16.mxu1 %v7833_v38 }
 0x35f   : > { %6454 = vmatmul.mubr.msk.bf16.vlgmr.msra.gmra.mrb[16].mxu1 %vm1571_vm0, %v7827_v34 }
 0x360   : > { %6458 = vmatpush3.bf16.msra.mxu1 %v7833_v38 }
 0x361   : > { %6459 = vmatprep.subr.bf16.mxu1 %v7829_v35 }
 0x364   : > { %6460 = vmatpush3.bf16.msra.mxu1 %v7829_v35 }
 0x432   : > { %v6455_v42 = vpop.f32.mrb[16].mxu1 }
 0x433   : > { %v1618_v46 = vpop.f32.mrb[17].mxu1  ;;  %v1635_v48 = vmul.f32 0.17677669, %v6455_v42 }
 0x434   : > { %v1633_v49 = vmul.f32 0.17677669, %v1618_v46  ;;  %v6456_v50 = vpop.f32.mrb[18].mxu1 }
 0x435   : > { %v1621_v51 = vpop.f32.mrb[19].mxu1  ;;  %v1636_v52 = vmul.f32 0.17677669, %v6456_v50  ;;  %v1639_v57 = vadd.f32 %v1635_v48, %v7845_v44 }
 0x436   : > { %v1634_v53 = vmul.f32 0.17677669, %v1621_v51  ;;  %v1637_v54 = vadd.f32 %v1633_v49, %v7845_v44 }
 0x437   : > { %v1640_v59 = vadd.f32 %v1636_v52, %v7845_v44  ;;  %v1647_v60 = vsel %vm1571_vm0, %v1639_v57, -inf }
 0x438   : > { %v1641_v55 = vsel %vm1571_vm0, %v1637_v54, -inf  ;;  %v1638_v56 = vadd.f32 %v1634_v53, %v7845_v44 }
 0x439   : > { %1642 = vmax.xlane.f32.xlu0 %v1641_v55  ;;  %v1650_v61 = vsel %vm1571_vm0, %v1640_v59, -inf }
 0x43a   : > { %v1644_v58 = vsel %vm1571_vm0, %v1638_v56, -inf }
 0x43b   : > { %1645 = vmax.xlane.f32.xlu1 %v1644_v58 }
 0x43d   : > { %1648 = vmax.xlane.f32.xlu0 %v1647_v60 }
 0x43f   : > { %1651 = vmax.xlane.f32.xlu1 %v1650_v61 }
 0x4c6   : > { %v1643_v0 = vpop.xlane.xlu0 %1642 }
 0x4c7   : > { %v1653_v2 = vsub.f32 %v1637_v54, %v1643_v0 }
 0x4c8   : > { %v1646_v3 = vpop.xlane.xlu1 %1645 }
 0x4c9   : > { %v1654_v4 = vsub.f32 %v1638_v56, %v1646_v3  ;;  %v1657_v8 = vmul.f32 1.442695, %v1653_v2 }
 0x4ca   : > { %v1649_v5 = vpop.xlane.xlu0 %1648 }
 0x4cb   : > { %v1659_v6 = vmul.f32 1.442695, %v1654_v4  ;;  %v1655_v7 = vsub.f32 %v1639_v57, %v1649_v5 }
 0x4cc   : > { %v1652_v9 = vpop.xlane.xlu1 %1651 }
 0x4cd   : > { %7072 = vpow2.f32 %v1659_v6  ;;  %v1661_v11 = vmul.f32 1.442695, %v1655_v7  ;;  %v1656_v12 = vsub.f32 %v1640_v59, %v1652_v9 }
 0x4cf   : > { %7074 = vpow2.f32 %v1661_v11  ;;  %v1663_v15 = vmul.f32 1.442695, %v1656_v12 }
 0x4d0   : > { %7076 = vpow2.f32 %v1657_v8 }
 0x4d1   : > { %7078 = vpow2.f32 %v1663_v15 }
 0x4d7   : > { %v7073_v16 = vpop.eup %7072 }
 0x4d8   : > { %v1668_v17 = vsel %vm1571_vm0, %v7073_v16, 0.0 }
 0x4d9   : > { %v7075_v18 = vpop.eup %7074  ;;  %1669 = vadd.xlane.f32.xlu1 %v1668_v17 }
 0x4da   : > { %v7077_v19 = vpop.eup %7076  ;;  %v1671_v20 = vsel %vm1571_vm0, %v7075_v18, 0.0 }
 0x4db   : > { %v7079_v21 = vpop.eup %7078  ;;  %1672 = vadd.xlane.f32.xlu0 %v1671_v20  ;;  %v1665_v24 = vsel %vm1571_vm0, %v7077_v19, 0.0 }
 0x4dc   : > { %v1674_v23 = vsel %vm1571_vm0, %v7079_v21, 0.0 }
 0x4dd   : > { %1675 = vadd.xlane.f32.xlu1 %v1674_v23 }
 0x4df   : > { %1666 = vadd.xlane.f32.xlu0 %v1665_v24 }
 0x4ee   : > { %1752 = vrot.lane.b32.xlu1 %v7831_v36, %s9264_s28 }
 0x4f2   : > { %1744 = vrot.lane.b32.xlu1 %v7816_v13, %s9264_s28 }
 0x4f5   : > { %1750 = vrot.lane.b32.xlu0 %v7818_v14, %s9264_s28 }
 0x4f6   : > { %1936 = vrot.lane.b32.xlu1 %v7818_v14, %s9268_s26 }
 0x4f9   : > { %1746 = vrot.lane.b32.xlu0 %v7827_v34, %s9264_s28 }
 0x4fa   : > { %1938 = vrot.lane.b32.xlu1 %v7831_v36, %s9268_s26 }
 0x4fd   : > { %1932 = vrot.lane.b32.xlu0 %v7816_v13, %s9268_s26 }
 0x4fe   : > { %1934 = vrot.lane.b32.xlu1 %v7827_v34, %s9268_s26 }
 0x566   : > { %v1670_v25 = vpop.xlane.xlu1 %1669 }
 0x567   : > { %7080 = vrcp.f32 %v1670_v25 }
 0x568   : > { %v1673_v26 = vpop.xlane.xlu0 %1672 }
 0x56a   : > { %v1676_v27 = vpop.xlane.xlu1 %1675 }
 0x56b   : > { %7082 = vrcp.f32 %v1676_v27 }
 0x56c   : > { %7084 = vrcp.f32 %v1673_v26  ;;  %v1667_v28 = vpop.xlane.xlu0 %1666 }
 0x56d   : > { %7086 = vrcp.f32 %v1667_v28 }
 0x56e   : > { %v1753_v41 = vpop.permute.xlu1 %1752 }
 0x56f   : > { %v1764_v52 = vsel %vm1571_vm0, %v1753_v41, 0 }
 0x570   : > { %v1751_v29 = vpop.permute.xlu0 %1750 }
 0x571   : > { %6639 = vmatprep.subr.msk.bf16.mxu1 %vm1571_vm0, %v1751_v29  ;;  %v7081_v30 = vpop.eup %7080  ;;  %v1761_v51 = vsel %vm1571_vm0, %v1751_v29, 0 }
 0x572   : > { %v1682_v43 = vmul.f32 %v7081_v30, %v7073_v16  ;;  %v1745_v50 = vpop.permute.xlu1 %1744 }
 0x574   : > { %v1747_v54 = vpop.permute.xlu0 %1746 }
 0x575   : > { %v7083_v31 = vpop.eup %7082 }
 0x576   : > { %v7085_v32 = vpop.eup %7084  ;;  %v1684_v40 = vmul.f32 %v7083_v31, %v7079_v21  ;;  %v1937_v53 = vpop.permute.xlu1 %1936 }
 0x577   : > { %v7087_v33 = vpop.eup %7086  ;;  %v1683_v46 = vmul.f32 %v7085_v32, %v7075_v18  ;;  %v1947_v56 = vsel %vm1571_vm0, %v1937_v53, 0 }
 0x578   : > { %v1681_v42 = vmul.f32 %v7087_v33, %v7077_v19  ;;  %v1933_v55 = vpop.permute.xlu0 %1932 }
 0x579   : > { %v1686_v49 = vpack.c.bf16 %v1684_v40, %v1683_v46 }
 0x57a   : > { %v1685_v48 = vpack.c.bf16 %v1682_v43, %v1681_v42  ;;  %v1939_v57 = vpop.permute.xlu1 %1938 }
 0x57b   : > { %v1950_v58 = vsel %vm1571_vm0, %v1939_v57, 0 }
 0x57c   : > { %6461 = vmatprep.mubr.msk.bf16.mxu1 %vm1571_vm0, %v1685_v48 }
 0x57d   : > { %6462 = vmatmul.mubr.msk.bf16.vlgmr.msra.gmra.mrb[20].mxu1 %vm1571_vm0, %v1686_v49 }
 0x57e   : > { %6466 = vmatpush3.bf16.xpose.msra.mxu1 %v1761_v51  ;;  %6469 = vmatprep.mubr.msk.bf16.mxu1 %vm1571_vm0, %v1745_v50  ;;  %v1935_v59 = vpop.permute.xlu1 %1934 }
 0x57f   : > { %6640 = vmatprep.subr.msk.bf16.mxu1 %vm1571_vm0, %v1753_v41 }
 0x586   : > { %6468 = vmatpush3.bf16.xpose.msra.mxu1 %v1764_v52 }
 0x587   : > { %6641 = vmatprep.subr.msk.bf16.mxu1 %vm1571_vm0, %v1937_v53 }
 0x58d   : > { %6470 = vmatmul.mubr.msk.bf16.vlgmr.msra.gmra.mrb[24].mxu1 %vm1571_vm0, %v1747_v54 }
 0x58e   : > { %6482 = vmatpush3.bf16.xpose.msra.mxu1 %v1947_v56  ;;  %6485 = vmatprep.mubr.msk.bf16.mxu1 %vm1571_vm0, %v1933_v55 }
 0x58f   : > { %6642 = vmatprep.subr.msk.bf16.mxu1 %vm1571_vm0, %v1939_v57 }
 0x596   : > { %6484 = vmatpush3.bf16.xpose.msra.mxu1 %v1950_v58 }
 0x59d   : > { %6486 = vmatmul.mubr.msk.bf16.vlgmr.msra.gmra.mrb[28].mxu1 %vm1571_vm0, %v1935_v59 }
 0x650   : > { %v7889_v60 = vpop.f32.mrb[20].mxu1 }
 0x651   : > { %v7891_v61 = vpop.f32.mrb[21].mxu1 }
 0x652   : > { %v7893_v0 = vpop.f32.mrb[22].mxu1 }
 0x653   : > { %v7895_v2 = vpop.f32.mrb[23].mxu1 }
 0x660   : > { %v6471_v3 = vpop.f32.mrb[24].mxu1 }
 0x661   : > { %v1800_v4 = vpop.f32.mrb[25].mxu1  ;;  %v1817_v57 = vmul.f32 0.17677669, %v6471_v3 }
 0x662   : > { %v6472_v5 = vpop.f32.mrb[26].mxu1  ;;  %v1815_v56 = vmul.f32 0.17677669, %v1800_v4 }
 0x663   : > { %v1803_v6 = vpop.f32.mrb[27].mxu1  ;;  %v1818_v59 = vmul.f32 0.17677669, %v6472_v5 }
 0x664   : > { %v7922_v58 = vadd.f32 %v1815_v56, %v7845_v44 }
 0x670   : > { %v6487_v7 = vpop.f32.mrb[28].mxu1 }
 0x671   : > { %v1986_v8 = vpop.f32.mrb[29].mxu1  ;;  %v2003_v9 = vmul.f32 0.17677669, %v6487_v7  ;;  %v1816_v7 = vmul.f32 0.17677669, %v1803_v6 }
 0x672   : > { %v2001_v11 = vmul.f32 0.17677669, %v1986_v8  ;;  %v6488_v12 = vpop.f32.mrb[30].mxu1  ;;  %v7927_v8 = vadd.f32 %v1817_v57, %v7845_v44 }
 0x673   : > { %v1989_v15 = vpop.f32.mrb[31].mxu1  ;;  %v2004_v18 = vmul.f32 0.17677669, %v6488_v12  ;;  %v2007_v21 = vadd.f32 %v2003_v9, %v7845_v44 }
 0x674   : > { %v2002_v16 = vmul.f32 0.17677669, %v1989_v15  ;;  %v2005_v17 = vadd.f32 %v2001_v11, %v7845_v44 }
 0x675   : > { %v2015_v24 = vsel %vm1571_vm0, %v2007_v21, -inf  ;;  %v2008_v25 = vadd.f32 %v2004_v18, %v7845_v44 }
 0x676   : > { %v2009_v19 = vsel %vm1571_vm0, %v2005_v17, -inf  ;;  %v2006_v20 = vadd.f32 %v2002_v16, %v7845_v44 }
 0x677   : > { %2010 = vmax.xlane.f32.xlu0 %v2009_v19  ;;  %v2018_v26 = vsel %vm1571_vm0, %v2008_v25, -inf }
 0x678   : > { %v2012_v23 = vsel %vm1571_vm0, %v2006_v20, -inf }
 0x679   : > { %2013 = vmax.xlane.f32.xlu1 %v2012_v23 }
 0x67b   : > { %2016 = vmax.xlane.f32.xlu0 %v2015_v24 }
 0x67f   : > { %2019 = vmax.xlane.f32.xlu0 %v2018_v26 }
 0x68a   : > { %2057 = vrot.lane.b32.xlu1 %v7829_v35, %s9268_s26 }
 0x704   : > { %v2011_v27 = vpop.xlane.xlu0 %2010 }
 0x705   : > { %v2021_v28 = vsub.f32 %v2005_v17, %v2011_v27 }
 0x706   : > { %v2014_v29 = vpop.xlane.xlu1 %2013 }
 0x707   : > { %v2025_v32 = vmul.f32 1.442695, %v2021_v28  ;;  %v2022_v33 = vsub.f32 %v2006_v20, %v2014_v29 }
 0x708   : > { %v2017_v30 = vpop.xlane.xlu0 %2016 }
 0x709   : > { %v2023_v31 = vsub.f32 %v2007_v21, %v2017_v30  ;;  %v2027_v43 = vmul.f32 1.442695, %v2022_v33 }
 0x70a   : > { %v2058_v5 = vpop.permute.xlu1 %2057 }
 0x70b   : > { %v2029_v40 = vmul.f32 1.442695, %v2023_v31 }
 0x70c   : > { %v2020_v41 = vpop.xlane.xlu0 %2019 }
 0x70d   : > { %7088 = vpow2.f32 %v2029_v40  ;;  %v2024_v42 = vsub.f32 %v2008_v25, %v2020_v41 }
 0x70e   : > { %7090 = vpow2.f32 %v2025_v32 }
 0x70f   : > { %v2031_v46 = vmul.f32 1.442695, %v2024_v42 }
 0x711   : > { %7092 = vpow2.f32 %v2031_v46 }
 0x712   : > { %7094 = vpow2.f32 %v2027_v43 }
 0x717   : > { %v7089_v48 = vpop.eup %7088 }
 0x718   : > { %v2039_v49 = vsel %vm1571_vm0, %v7089_v48, 0.0  ;;  %v7091_v50 = vpop.eup %7090 }
 0x719   : > { %2040 = vadd.xlane.f32.xlu0 %v2039_v49  ;;  %v2033_v52 = vsel %vm1571_vm0, %v7091_v50, 0.0 }
 0x71b   : > { %v7093_v51 = vpop.eup %7092 }
 0x71c   : > { %v2042_v53 = vsel %vm1571_vm0, %v7093_v51, 0.0  ;;  %v7095_v54 = vpop.eup %7094 }
 0x71d   : > { %2034 = vadd.xlane.f32.xlu0 %v2033_v52  ;;  %2043 = vadd.xlane.f32.xlu1 %v2042_v53  ;;  %v2036_v55 = vsel %vm1571_vm0, %v7095_v54, 0.0 }
 0x721   : > { %2037 = vadd.xlane.f32.xlu1 %v2036_v55 }
 0x732   : > { %2120 = vrot.lane.b32.xlu1 %v7818_v14, %s9266_s21  ;;  %v1823_v14 = vsel %vm1571_vm0, %v7922_v58, -inf }
 0x733   : > { %2055 = vrot.lane.b32.xlu0 %v7833_v38, %s9268_s26 }
 0x736   : > { %2122 = vrot.lane.b32.xlu1 %v7831_v36, %s9266_s21  ;;  %v7932_v36 = vadd.f32 %v1818_v59, %v7845_v44 }
 0x737   : > { %2116 = vrot.lane.b32.xlu0 %v7816_v13, %s9266_s21  ;;  %v1829_v13 = vsel %vm1571_vm0, %v7927_v8, -inf }
 0x738   : > { %v1832_v3 = vsel %vm1571_vm0, %v7932_v36, -inf }
 0x73a   : > { %2118 = vrot.lane.b32.xlu1 %v7827_v34, %s9266_s21  ;;  %v1820_v34 = vadd.f32 %v1816_v7, %v7845_v44 }
 0x73c   : > { %v1826_v4 = vsel %vm1571_vm0, %v1820_v34, -inf }
 0x756   : > { %1824 = vmax.xlane.f32.xlu0 %v1823_v14 }
 0x75a   : > { %1830 = vmax.xlane.f32.xlu0 %v1829_v13 }
 0x75e   : > { %1833 = vmax.xlane.f32.xlu0 %v1832_v3  ;;  %1827 = vmax.xlane.f32.xlu1 %v1826_v4 }
 0x7a6   : > { %v2041_v6 = vpop.xlane.xlu0 %2040 }
 0x7aa   : > { %v2035_v9 = vpop.xlane.xlu0 %2034  ;;  %v2044_v11 = vpop.xlane.xlu1 %2043 }
 0x7ab   : > { %7096 = vrcp.f32 %v2044_v11 }
 0x7ac   : > { %7098 = vrcp.f32 %v2035_v9 }
 0x7ad   : > { %7100 = vrcp.f32 %v2041_v6 }
 0x7ae   : > { %v2056_v12 = vpop.permute.xlu0 %2055  ;;  %v2038_v15 = vpop.xlane.xlu1 %2037 }
 0x7af   : > { %7102 = vrcp.f32 %v2038_v15  ;;  %6489 = vmatprep.subr.bf16.mxu1 %v2056_v12 }
 0x7b0   : > { %6490 = vmatpush3.bf16.msra.mxu1 %v2056_v12 }
 0x7b1   : > { %6491 = vmatprep.subr.bf16.mxu1 %v2058_v5 }
 0x7b2   : > { %v2121_v16 = vpop.permute.xlu1 %2120  ;;  %v2117_v28 = vpop.permute.xlu0 %2116 }
 0x7b3   : > { %v2131_v29 = vsel %vm1571_vm0, %v2121_v16, 0 }
 0x7b4   : > { %6492 = vmatpush3.bf16.msra.mxu1 %v2058_v5 }
 0x7b5   : > { %6643 = vmatprep.subr.msk.bf16.mxu1 %vm1571_vm0, %v2121_v16  ;;  %v7097_v17 = vpop.eup %7096 }
 0x7b6   : > { %v7099_v18 = vpop.eup %7098  ;;  %v2052_v21 = vmul.f32 %v7097_v17, %v7093_v51  ;;  %v2123_v30 = vpop.permute.xlu1 %2122 }
 0x7b7   : > { %v7101_v19 = vpop.eup %7100  ;;  %v2049_v23 = vmul.f32 %v7099_v18, %v7091_v50  ;;  %v2134_v31 = vsel %vm1571_vm0, %v2123_v30, 0 }
 0x7b8   : > { %v2051_v25 = vmul.f32 %v7101_v19, %v7089_v48 }
 0x7b9   : > { %v7103_v20 = vpop.eup %7102 }
 0x7ba   : > { %v2050_v24 = vmul.f32 %v7103_v20, %v7095_v54  ;;  %v2054_v27 = vpack.c.bf16 %v2052_v21, %v2051_v25  ;;  %v2119_v32 = vpop.permute.xlu1 %2118 }
 0x7bc   : > { %v2053_v26 = vpack.c.bf16 %v2050_v24, %v2049_v23 }
 0x7be   : > { %6493 = vmatprep.mubr.msk.bf16.mxu1 %vm1571_vm0, %v2053_v26 }
 0x7bf   : > { %6494 = vmatmul.mubr.msk.bf16.vlgmr.msra.gmra.mrb[32].mxu1 %vm1571_vm0, %v2054_v27 }
 0x7c0   : > { %6498 = vmatpush3.bf16.xpose.msra.mxu1 %v2131_v29  ;;  %6501 = vmatprep.mubr.msk.bf16.mxu1 %vm1571_vm0, %v2117_v28 }
 0x7c1   : > { %6644 = vmatprep.subr.msk.bf16.mxu1 %vm1571_vm0, %v2123_v30 }
 0x7c8   : > { %6500 = vmatpush3.bf16.xpose.msra.mxu1 %v2134_v31 }
 0x7cf   : > { %6502 = vmatmul.mubr.msk.bf16.vlgmr.msra.gmra.mrb[36].mxu1 %vm1571_vm0, %v2119_v32 }
 0x7d0   : > { %2802 = vmatprep.mubr.bf16.mxu1 %v7356_v22 }
 0x7e3   : > { %v1825_v33 = vpop.xlane.xlu0 %1824 }
 0x7e4   : > { %v1835_v51 = vsub.f32 %v7922_v58, %v1825_v33 }
 0x7e6   : > { %v1839_v54 = vmul.f32 1.442695, %v1835_v51 }
 0x7e7   : > { %v1831_v49 = vpop.xlane.xlu0 %1830 }
 0x7e8   : > { %v1837_v55 = vsub.f32 %v7927_v8, %v1831_v49  ;;  %7104 = vpow2.f32 %v1839_v54 }
 0x7ea   : > { %v1843_v7 = vmul.f32 1.442695, %v1837_v55 }
 0x7eb   : > { %v1828_v50 = vpop.xlane.xlu1 %1827  ;;  %v1834_v53 = vpop.xlane.xlu0 %1833 }
 0x7ec   : > { %v1836_v52 = vsub.f32 %v1820_v34, %v1828_v50  ;;  %v1838_v56 = vsub.f32 %v7932_v36, %v1834_v53 }
 0x7ee   : > { %v1841_v57 = vmul.f32 1.442695, %v1836_v52  ;;  %v1845_v5 = vmul.f32 1.442695, %v1838_v56 }
 0x7f0   : > { %7106 = vpow2.f32 %v1841_v57 }
 0x7f1   : > { %7108 = vpow2.f32 %v1843_v7 }
 0x7f2   : > { %7110 = vpow2.f32 %v1845_v5  ;;  %v7105_v17 = vpop.eup %7104 }
 0x7f3   : > { %v1847_v20 = vsel %vm1571_vm0, %v7105_v17, 0.0 }
 0x7fa   : > { %v7107_v19 = vpop.eup %7106 }
 0x7fb   : > { %v7971_v21 = vpop.eup %7108  ;;  %v1850_v23 = vsel %vm1571_vm0, %v7107_v19, 0.0 }
 0x7fc   : > { %v7974_v24 = vpop.eup %7110  ;;  %v1853_v25 = vsel %vm1571_vm0, %v7971_v21, 0.0 }
 0x7fd   : > { %v1856_v26 = vsel %vm1571_vm0, %v7974_v24, 0.0 }
 0x892   : > { %v7947_v40 = vpop.f32.mrb[32].mxu1 }
 0x893   : > { %v7949_v41 = vpop.f32.mrb[33].mxu1 }
 0x894   : > { %v7951_v42 = vpop.f32.mrb[34].mxu1 }
 0x895   : > { %v6713_v43 = vpack.i.bf16 %v7951_v42, %v7947_v40  ;;  %v7955_v46 = vpop.f32.mrb[35].mxu1 }
 0x896   : > { %v6708_v48 = vpack.i.bf16 %v7955_v46, %v7949_v41 }
 0x8a2   : > { %v6503_v59 = vpop.f32.mrb[36].mxu1 }
 0x8a3   : > { %v2170_v14 = vpop.f32.mrb[37].mxu1  ;;  %v2187_v13 = vmul.f32 0.17677669, %v6503_v59 }
 0x8a4   : > { %v2185_v3 = vmul.f32 0.17677669, %v2170_v14  ;;  %v6504_v4 = vpop.f32.mrb[38].mxu1 }
 0x8a5   : > { %v2173_v6 = vpop.f32.mrb[39].mxu1  ;;  %v2188_v9 = vmul.f32 0.17677669, %v6504_v4  ;;  %v2191_v11 = vadd.f32 %v2187_v13, %v7845_v44 }
 0x8a6   : > { %v2186_v58 = vmul.f32 0.17677669, %v2173_v6  ;;  %v2189_v34 = vadd.f32 %v2185_v3, %v7845_v44 }
 0x8a7   : > { %v2192_v15 = vadd.f32 %v2188_v9, %v7845_v44  ;;  %v2199_v16 = vsel %vm1571_vm0, %v2191_v11, -inf }
 0x8a8   : > { %v2193_v8 = vsel %vm1571_vm0, %v2189_v34, -inf  ;;  %v2190_v36 = vadd.f32 %v2186_v58, %v7845_v44 }
 0x8a9   : > { %2194 = vmax.xlane.f32.xlu0 %v2193_v8  ;;  %v2202_v18 = vsel %vm1571_vm0, %v2192_v15, -inf }
 0x8aa   : > { %v2196_v12 = vsel %vm1571_vm0, %v2190_v36, -inf }
 0x8ab   : > { %2197 = vmax.xlane.f32.xlu1 %v2196_v12 }
 0x8ad   : > { %2200 = vmax.xlane.f32.xlu0 %v2199_v16 }
 0x8af   : > { %2203 = vmax.xlane.f32.xlu1 %v2202_v18 }
 0x8b1   : > { %1848 = vadd.xlane.f32.xlu0 %v1847_v20 }
 0x8b3   : > { %1851 = vadd.xlane.f32.xlu1 %v1850_v23 }
 0x8b5   : > { %1854 = vadd.xlane.f32.xlu0 %v1853_v25 }
 0x8b7   : > { %1857 = vadd.xlane.f32.xlu1 %v1856_v26 }
 0x8c8   : > { %1873 = vrot.lane.b32.xlu1 %v7829_v35, %s9264_s28 }
 0x8cc   : > { %2239 = vrot.lane.b32.xlu1 %v7833_v38, %s9266_s21 }
 0x936   : > { %v2195_v27 = vpop.xlane.xlu0 %2194 }
 0x937   : > { %v2205_v28 = vsub.f32 %v2189_v34, %v2195_v27 }
 0x938   : > { %v2198_v29 = vpop.xlane.xlu1 %2197 }
 0x939   : > { %v2209_v30 = vmul.f32 1.442695, %v2205_v28  ;;  %v2206_v32 = vsub.f32 %v2190_v36, %v2198_v29 }
 0x93a   : > { %v2201_v31 = vpop.xlane.xlu0 %2200 }
 0x93b   : > { %v2207_v33 = vsub.f32 %v2191_v11, %v2201_v31  ;;  %7112 = vpow2.f32 %v2209_v30  ;;  %v2211_v53 = vmul.f32 1.442695, %v2206_v32 }
 0x93c   : > { %v2204_v49 = vpop.xlane.xlu1 %2203 }
 0x93d   : > { %v2213_v50 = vmul.f32 1.442695, %v2207_v33  ;;  %v2208_v51 = vsub.f32 %v2192_v15, %v2204_v49 }
 0x93e   : > { %v1849_v52 = vpop.xlane.xlu0 %1848 }
 0x93f   : > { %7114 = vpow2.f32 %v2213_v50  ;;  %v2215_v54 = vmul.f32 1.442695, %v2208_v51  ;;  %v6856_v50 = vld [vmem:[%s9239_s5] sm:$0xff]   ;;  %v6857_v51 = vld [vmem:[%s9239_s5 + $0x8] sm:$0xff]  }
 0x940   : > { %7116 = vrcp.f32 %v1849_v52  ;;  %v1852_v55 = vpop.xlane.xlu1 %1851  ;;  %v6858_v52 = vld [vmem:[%s9239_s5 + $0x10] sm:$0xff]  }
 0x941   : > { %7118 = vpow2.f32 %v2215_v54  ;;  %v6860_v54 = vld [vmem:[%s9239_s5 + $0x20] sm:$0xff]  }
 0x942   : > { %7120 = vrcp.f32 %v1852_v55  ;;  %v1855_v11 = vpop.xlane.xlu0 %1854  ;;  %v6861_v55 = vld [vmem:[%s9239_s5 + $0x28] sm:$0xff]  }
 0x943   : > { %7122 = vpow2.f32 %v2211_v53  ;;  %v6859_v53 = vld [vmem:[%s9239_s5 + $0x18] sm:$0xff]  }
 0x944   : > { %v1858_v8 = vpop.xlane.xlu1 %1857 }
 0x945   : > { %v7113_v56 = vpop.eup %7112  ;;  %7124 = vrcp.f32 %v1858_v8 }
 0x946   : > { %v2217_v9 = vsel %vm1571_vm0, %v7113_v56, 0.0  ;;  %7126 = vrcp.f32 %v1855_v11 }
 0x948   : > { %v1874_v36 = vpop.permute.xlu1 %1873 }
 0x949   : > { %v7115_v57 = vpop.eup %7114 }
 0x94a   : > { %v7117_v59 = vpop.eup %7116  ;;  %v2223_v7 = vsel %vm1571_vm0, %v7115_v57, 0.0 }
 0x94b   : > { %v7119_v14 = vpop.eup %7118  ;;  %2224 = vadd.xlane.f32.xlu0 %v2223_v7  ;;  %v1863_v5 = vmul.f32 %v7117_v59, %v7105_v17 }
 0x94c   : > { %v7121_v13 = vpop.eup %7120  ;;  %v2226_v3 = vsel %vm1571_vm0, %v7119_v14, 0.0  ;;  %v2240_v12 = vpop.permute.xlu1 %2239 }
 0x94d   : > { %v7123_v4 = vpop.eup %7122  ;;  %2227 = vadd.xlane.f32.xlu1 %v2226_v3  ;;  %v1864_v6 = vmul.f32 %v7121_v13, %v7107_v19 }
 0x94e   : > { %v2220_v34 = vsel %vm1571_vm0, %v7123_v4, 0.0 }
 0x94f   : > { %2218 = vadd.xlane.f32.xlu0 %v2217_v9  ;;  %v1867_v58 = vpack.c.bf16 %v1864_v6, %v1863_v5  ;;  %v7125_v19 = vpop.eup %7124 }
 0x951   : > { %6477 = vmatprep.mubr.msk.bf16.mxu0 %vm1571_vm0, %v1867_v58  ;;  %2221 = vadd.xlane.f32.xlu1 %v2220_v34 }
 0x962   : > { %2241 = vrot.lane.b32.xlu1 %v7829_v35, %s9266_s21  ;;  %v7127_v35 = vpop.eup %7126 }
 0x963   : > { %v1865_v23 = vmul.f32 %v7127_v35, %v7971_v21 }
 0x965   : > { %1871 = vrot.lane.b32.xlu0 %v7833_v38, %s9264_s28  ;;  %v1866_v38 = vmul.f32 %v7125_v19, %v7974_v24  ;;  %s9290_s28 = smov 64  }
 0x967   : > { %v1868_v26 = vpack.c.bf16 %v1866_v38, %v1865_v23 }
 0x9d8   : > { %v2225_v15 = vpop.xlane.xlu0 %2224 }
 0x9da   : > { %v2228_v16 = vpop.xlane.xlu1 %2227 }
 0x9dc   : > { %v2219_v17 = vpop.xlane.xlu0 %2218 }
 0x9dd   : > { %7128 = vrcp.f32 %v2219_v17 }
 0x9de   : > { %7130 = vrcp.f32 %v2228_v16  ;;  %v2222_v18 = vpop.xlane.xlu1 %2221 }
 0x9df   : > { %7132 = vrcp.f32 %v2222_v18 }
 0x9e0   : > { %7134 = vrcp.f32 %v2225_v15  ;;  %v1872_v20 = vpop.permute.xlu0 %1871 }
 0x9e1   : > { %6473 = vmatprep.subr.bf16.mxu0 %v1872_v20 }
 0x9e2   : > { %6474 = vmatpush3.bf16.msra.mxu0 %v1872_v20  ;;  %v2242_v30 = vpop.permute.xlu1 %2241 }
 0x9e3   : > { %6475 = vmatprep.subr.bf16.mxu0 %v1874_v36 }
 0x9e6   : > { %6476 = vmatpush3.bf16.msra.mxu0 %v1874_v36 }
 0x9e7   : > { %v7129_v25 = vpop.eup %7128  ;;  %6505 = vmatprep.subr.bf16.mxu0 %v2240_v12 }
 0x9e8   : > { %v7131_v27 = vpop.eup %7130  ;;  %v2233_v31 = vmul.f32 %v7129_v25, %v7113_v56  ;;  %v6862_v56 = vld [vmem:[%s9239_s5 + $0x30] sm:$0xff]  }
 0x9e9   : > { %v7133_v28 = vpop.eup %7132  ;;  %6478 = vmatmul.mubr.msk.bf16.vlgmr.msra.gmra.mrb[20].mxu0 %vm1571_vm0, %v1868_v26  ;;  %v2236_v33 = vmul.f32 %v7131_v27, %v7119_v14  ;;  %v6863_v14 = vld [vmem:[%s9239_s5 + $0x38] sm:$0xff]  }
 0x9ea   : > { %v7135_v29 = vpop.eup %7134  ;;  %6506 = vmatpush3.bf16.msra.mxu0 %v2240_v12  ;;  %v2234_v32 = vmul.f32 %v7133_v28, %v7123_v4 }
 0x9eb   : > { %6507 = vmatprep.subr.bf16.mxu0 %v2242_v30  ;;  %v2235_v24 = vmul.f32 %v7135_v29, %v7115_v57 }
 0x9ec   : > { %v2237_v49 = vpack.c.bf16 %v2234_v32, %v2233_v31 }
 0x9ed   : > { %v2238_v21 = vpack.c.bf16 %v2236_v33, %v2235_v24  ;;  %v5780_v24 = vld [vmem:[%s9240_s6] ss:$0 sm:$0xff] }
 0x9ee   : > { %6508 = vmatpush3.bf16.msra.mxu0 %v2242_v30  ;;  %6509 = vmatprep.mubr.msk.bf16.mxu0 %vm1571_vm0, %v2237_v49 }
 0x9ef   : > { %6513 = vmatprep.subr.bf16.mxu0 %v6856_v50 }
 0x9f1   : > { %6510 = vmatmul.mubr.msk.bf16.vlgmr.msra.gmra.mrb[24].mxu0 %vm1571_vm0, %v2238_v21 }
 0x9f2   : > { %6514 = vmatpush3.bf16.msra.mxu0 %v6856_v50 }
 0x9f3   : > { %6515 = vmatprep.subr.bf16.mxu0 %v6857_v51 }
 0x9f6   : > { %6516 = vmatpush3.bf16.msra.mxu0 %v6857_v51 }
 0x9f7   : > { %6517 = vmatprep.subr.bf16.mxu0 %v6858_v52 }
 0x9fa   : > { %6518 = vmatpush3.bf16.msra.mxu0 %v6858_v52 }
 0x9fb   : > { %6519 = vmatprep.subr.bf16.mxu0 %v6859_v53 }
 0x9fe   : > { %6520 = vmatpush3.bf16.msra.mxu0 %v6859_v53 }
 0x9ff   : > { %6521 = vmatprep.subr.bf16.mxu0 %v6860_v54 }
 0xa02   : > { %6522 = vmatpush3.bf16.msra.mxu0 %v6860_v54 }
 0xa03   : > { %6523 = vmatprep.subr.bf16.mxu0 %v6861_v55 }
 0xa06   : > { %6524 = vmatpush3.bf16.msra.mxu0 %v6861_v55 }
 0xa07   : > { %6525 = vmatprep.subr.bf16.mxu0 %v6862_v56 }
 0xa0a   : > { %6526 = vmatpush3.bf16.msra.mxu0 %v6862_v56 }
 0xa0b   : > { %6527 = vmatprep.subr.bf16.mxu0 %v6863_v14 }
 0xa0e   : > { %6528 = vmatpush3.bf16.msra.mxu0 %v6863_v14 }
 0xabc   : > { %v6479_v57 = vpop.f32.mrb[20].mxu0 }
 0xabd   : > { %v1917_v59 = vpop.f32.mrb[21].mxu0 }
 0xabe   : > { %v6480_v7 = vpop.f32.mrb[22].mxu0 }
 0xabf   : > { %v6703_v13 = vpack.i.bf16 %v6480_v7, %v6479_v57  ;;  %v1920_v3 = vpop.f32.mrb[23].mxu0 }
 0xac0   : > { %v6698_v4 = vpack.i.bf16 %v1920_v3, %v1917_v59  ;;  %v6875_v3 = vld [vmem:[%s9243_s9 + $0x2c] ss:$16 sps:$4 sm:$0xff]  }
 0xac1   : > { %6704 = vrot.lane.b32.xlu1 %v6703_v13, %s9266_s21  ;;  %v6869_v13 = vld [vmem:[%s9243_s9 + $0xc] ss:$16 sps:$4 sm:$0xff]  }
 0xac2   : > { %6699 = vrot.lane.b32.xlu0 %v6698_v4, %s9266_s21  ;;  %2823 = vmatprep.subr.bf16.mxu0 %v6869_v13  ;;  %v6870_v4 = vld [vmem:[%s9243_s9 + $0x20] ss:$16 sps:$4 sm:$0xff]   ;;  %s9291_s21 = smov 32  }
 0xac4   : > { %v6511_v5 = vpop.f32.mrb[24].mxu0 }
 0xac5   : > { %6714 = vrot.lane.b32.xlu1 %v6713_v43, %s9268_s26  ;;  %v2285_v6 = vpop.f32.mrb[25].mxu0 }
 0xac6   : > { %6709 = vrot.lane.b32.xlu0 %v6708_v48, %s9268_s26  ;;  %v6512_v9 = vpop.f32.mrb[26].mxu0  ;;  %s9192_s26 = scalar_lea.hbm %s9292_s27, %s6126_s0 }
 0xac7   : > { %v6723_v58 = vpack.i.bf16 %v6512_v9, %v6511_v5  ;;  %v2288_v34 = vpop.f32.mrb[27].mxu0  ;;  %v6873_v5 = vld [vmem:[%s9243_s9 + $0x28] ss:$16 sps:$4 sm:$0xff]  }
 0xac8   : > { %v6718_v8 = vpack.i.bf16 %v2288_v34, %v2285_v6 }
 0xac9   : > { %6724 = vrot.lane.b32.xlu1 %v6723_v58, %s9289_s24 }
 0xaca   : > { %6719 = vrot.lane.b32.xlu0 %v6718_v8, %s9289_s24 }
 0xb33   : > { %v6705_v36 = vpop.permute.xlu1 %6704 }
 0xb34   : > { %v6700_v11 = vpop.permute.xlu0 %6699  ;;  %v6707_v12 = vunpack.i.h.bf16 %v6705_v36  ;;  %v6706_v15 = vunpack.i.l.bf16 %v6705_v36 }
 0xb35   : > { %v6702_v42 = vunpack.i.h.bf16 %v6700_v11  ;;  %v6701_v43 = vunpack.i.l.bf16 %v6700_v11 }
 0xb36   : > { %v2351_v48 = vsel %vm1571_vm0, %v7893_v0, %v6707_v12  ;;  %v2350_v19 = vsel %vm1571_vm0, %v7889_v60, %v6706_v15 }
 0xb37   : > { %v6715_v40 = vpop.permute.xlu1 %6714  ;;  %v2349_v35 = vsel %vm1571_vm0, %v7895_v2, %v6702_v42  ;;  %v2348_v38 = vsel %vm1571_vm0, %v7891_v61, %v6701_v43 }
 0xb38   : > { %v6710_v16 = vpop.permute.xlu0 %6709  ;;  %v6717_v17 = vunpack.i.h.bf16 %v6715_v40  ;;  %v6716_v18 = vunpack.i.l.bf16 %v6715_v40 }
 0xb39   : > { %v6712_v41 = vunpack.i.h.bf16 %v6710_v16  ;;  %v6711_v46 = vunpack.i.l.bf16 %v6710_v16 }
 0xb3a   : > { %v2355_v27 = vsel %vm2352_vm2, %v2350_v19, %v6716_v18  ;;  %v2356_v28 = vsel %vm2352_vm2, %v2351_v48, %v6717_v17  ;;  %v6881_v48 = vld [vmem:[%s9243_s9 + $0x4c] ss:$16 sps:$4 sm:$0xff]   ;;  %v6876_v19 = vld [vmem:[%s9243_s9 + $0x40] ss:$16 sps:$4 sm:$0xff]  }
 0xb3b   : > { %v6725_v20 = vpop.permute.xlu1 %6724  ;;  %v2353_v30 = vsel %vm2352_vm2, %v2348_v38, %v6711_v46  ;;  %v2354_v60 = vsel %vm2352_vm2, %v2349_v35, %v6712_v41  ;;  %v6878_v46 = vld [vmem:[%s9243_s9 + $0x44] ss:$16 sps:$4 sm:$0xff]   ;;  %v6887_v38 = vld [vmem:[%s9243_s9 + $0x6c] ss:$16 sps:$4 sm:$0xff]  }
 0xb3c   : > { %v6727_v23 = vunpack.i.h.bf16 %v6725_v20  ;;  %v6726_v25 = vunpack.i.l.bf16 %v6725_v20  ;;  %v6720_v26 = vpop.permute.xlu0 %6719  ;;  %v6879_v20 = vld [vmem:[%s9243_s9 + $0x48] ss:$16 sps:$4 sm:$0xff]   ;;  %v6884_v35 = vld [vmem:[%s9243_s9 + $0x64] ss:$16 sps:$4 sm:$0xff]  }
 0xb3d   : > { %v6722_v29 = vunpack.i.h.bf16 %v6720_v26  ;;  %v6721_v0 = vunpack.i.l.bf16 %v6720_v26  ;;  %v6890_v26 = vld [vmem:[%s9243_s9 + $0x84] ss:$16 sps:$4 sm:$0xff]  }
 0xb3e   : > { %v2360_v31 = vsel %vm2357_vm3, %v2355_v27, %v6726_v25  ;;  %v2361_v2 = vsel %vm2357_vm3, %v2356_v28, %v6727_v23  ;;  %v6882_v23 = vld [vmem:[%s9243_s9 + $0x60] ss:$16 sps:$4 sm:$0xff]   ;;  %v6885_v25 = vld [vmem:[%s9243_s9 + $0x68] ss:$16 sps:$4 sm:$0xff]   ;;  %v6893_v27 = vld [vmem:[%s9243_s9 + $0x8c] ss:$16 sps:$4 sm:$0xff]  }
 0xb3f   : > { %v2363_v32 = vpack.c.bf16 %v2361_v2, %v2360_v31  ;;  %v2358_v61 = vsel %vm2357_vm3, %v2353_v30, %v6721_v0  ;;  %v2359_v33 = vsel %vm2357_vm3, %v2354_v60, %v6722_v29  ;;  %v6888_v28 = vld [vmem:[%s9243_s9 + $0x80] ss:$16 sps:$4 sm:$0xff]   ;;  %v6891_v29 = vld [vmem:[%s9243_s9 + $0x88] ss:$16 sps:$4 sm:$0xff]   ;;  %v6896_v0 = vld [vmem:[%s9243_s9 + $0xa4] ss:$16 sps:$4 sm:$0xff]  }
 0xb40   : > { %v2362_v49 = vpack.c.bf16 %v2359_v33, %v2358_v61  ;;  %v6899_v30 = vld [vmem:[%s9243_s9 + $0xac] ss:$16 sps:$4 sm:$0xff]   ;;  %v6894_v60 = vld [vmem:[%s9243_s9 + $0xa0] ss:$16 sps:$4 sm:$0xff]   ;;  %v6897_v31 = vld [vmem:[%s9243_s9 + $0xa8] ss:$16 sps:$4 sm:$0xff]  }
 0xb41   : > { %v6902_v2 = vld [vmem:[%s9243_s9 + $0xc4] ss:$16 sps:$4 sm:$0xff]   ;;  %v6900_v61 = vld [vmem:[%s9243_s9 + $0xc0] ss:$16 sps:$4 sm:$0xff]   ;;  %v6903_v33 = vld [vmem:[%s9243_s9 + $0xc8] ss:$16 sps:$4 sm:$0xff]  }
 0xb42   : > { %6529 = vmatprep.mubr.bf16.mxu0 %v2362_v49  ;;  %v6908_v49 = vld [vmem:[%s9243_s9 + $0xe4] ss:$16 sps:$4 sm:$0xff]  }
 0xb43   : > { %6530 = vmatmul.mubr.bf16.vlgmr.msra.gmra.mrb[28].mxu0 %v2363_v32  ;;  %v6905_v32 = vld [vmem:[%s9243_s9 + $0xcc] ss:$16 sps:$4 sm:$0xff]  }
 0xb44   : > { %2855 = vmatprep.mubr.bf16.mxu0 %v7356_v22 }
 0xc16   : > { %v6531_v21 = vpop.f32.mrb[28].mxu0 }
 0xc17   : > { %v2469_v50 = vpop.f32.mrb[29].mxu0  ;;  %v2478_v54 = vadd.f32 %v6531_v21, %v5780_v24  ;;  %v6906_v21 = vld [vmem:[%s9243_s9 + $0xe0] ss:$16 sps:$4 sm:$0xff]  }
 0xc18   : > { %v2470_v51 = vadd.f32 %v5780_v24, %v2469_v50  ;;  %v6532_v52 = vpop.f32.mrb[30].mxu0  ;;  %v6909_v50 = vld [vmem:[%s9243_s9 + $0xe8] ss:$16 sps:$4 sm:$0xff]  }
 0xc19   : > { %v2472_v53 = vpop.f32.mrb[31].mxu0  ;;  %v8062_v59 = vadd.f32 %v2478_v54, %v7690_v45  ;;  %v2481_v7 = vadd.f32 %v6532_v52, %v5780_v24  ;;  %v6867_v45 = vld [vmem:[%s9243_s9 + $0x8] ss:$16 sps:$4 sm:$0xff]  }
 0xc1a   : > { %v8055_v55 = vadd.f32 %v2470_v51, %v7684_v37  ;;  %v2473_v56 = vadd.f32 %v5780_v24, %v2472_v53  ;;  %v6864_v37 = vld [vmem:[%s9243_s9] ss:$16 sps:$4 sm:$0xff]   ;;  %2824 = vmatpush1.bf16.msra.mxu0 %v6867_v45  ;;  %v6911_v24 = vld [vmem:[%s9243_s9 + $0xec] ss:$16 sps:$4 sm:$0xff]  }
 0xc1b   : > { %v8067_v14 = vadd.f32 %v2481_v7, %v7692_v47  ;;  %v6872_v47 = vld [vmem:[%s9243_s9 + $0x24] ss:$16 sps:$4 sm:$0xff]   ;;  %2825 = vmatprep.subr.bf16.mxu0 %v6875_v3 }
 0xc1c   : > { %v8058_v57 = vadd.f32 %v2473_v56, %v7686_v39  ;;  %2490 = vadd.xlane.f32.xlu0 %v8055_v55  ;;  %v6866_v39 = vld [vmem:[%s9243_s9 + $0x4] ss:$16 sps:$4 sm:$0xff]  }
 0xc1d   : > { %2770 = vmatprep.subr.bf16.mxu1 %v6866_v39 }
 0xc1e   : > { %2492 = vadd.xlane.f32.xlu1 %v8058_v57  ;;  %2771 = vmatpush1.bf16.msra.mxu1 %v6864_v37 }
 0xc1f   : > { %2772 = vmatprep.subr.bf16.mxu1 %v6872_v47  ;;  %2826 = vmatpush1.bf16.msra.mxu0 %v6873_v5  ;;  %v5789_v5 = vld [vmem:[%s9247_s13] ss:$0 sm:$0xff] }
 0xc20   : > { %2494 = vadd.xlane.f32.xlu0 %v8062_v59  ;;  %2827 = vmatprep.subr.bf16.mxu0 %v6881_v48 }
 0xc22   : > { %2773 = vmatpush1.bf16.msra.mxu1 %v6870_v4 }
 0xc23   : > { %2774 = vmatprep.subr.bf16.mxu1 %v6878_v46  ;;  %2828 = vmatpush1.bf16.msra.mxu0 %v6879_v20 }
 0xc24   : > { %2496 = vadd.xlane.f32.xlu0 %v8067_v14  ;;  %2829 = vmatprep.subr.bf16.mxu0 %v6887_v38  ;;  %v6915_v38 = vld [vmem:[%s9245_s11 + $0x80] sm:$0xff]  }
 0xc26   : > { %2775 = vmatpush1.bf16.msra.mxu1 %v6876_v19 }
 0xc27   : > { %2776 = vmatprep.subr.bf16.mxu1 %v6884_v35  ;;  %2830 = vmatpush1.bf16.msra.mxu0 %v6885_v25  ;;  %v6914_v35 = vld [vmem:[%s9245_s11] sm:$0xff]   ;;  %v6917_v25 = vld [vmem:[%s9245_s11 + $0xc8] sm:$0xff]  }
 0xc28   : > { %2831 = vmatprep.subr.bf16.mxu0 %v6893_v27  ;;  %v6919_v27 = vld [vmem:[%s9245_s11 + $0x88] sm:$0xff]  }
 0xc2a   : > { %2777 = vmatpush1.bf16.msra.mxu1 %v6882_v23  ;;  %v6916_v23 = vld [vmem:[%s9245_s11 + $0x48] sm:$0xff]  }
 0xc2b   : > { %2778 = vmatprep.subr.bf16.mxu1 %v6890_v26  ;;  %2832 = vmatpush1.bf16.msra.mxu0 %v6891_v29  ;;  %v6918_v26 = vld [vmem:[%s9245_s11 + $0x8] sm:$0xff]   ;;  %v6921_v29 = vld [vmem:[%s9245_s11 + $0xd0] sm:$0xff]  }
 0xc2c   : > { %2833 = vmatprep.subr.bf16.mxu0 %v6899_v30  ;;  %v6923_v30 = vld [vmem:[%s9245_s11 + $0x90] sm:$0xff]  }
 0xc2e   : > { %2779 = vmatpush1.bf16.msra.mxu1 %v6888_v28  ;;  %v6920_v28 = vld [vmem:[%s9245_s11 + $0x50] sm:$0xff]  }
 0xc2f   : > { %2780 = vmatprep.subr.bf16.mxu1 %v6896_v0  ;;  %2834 = vmatpush1.bf16.msra.mxu0 %v6897_v31  ;;  %v6922_v0 = vld [vmem:[%s9245_s11 + $0x10] sm:$0xff]   ;;  %v6925_v31 = vld [vmem:[%s9245_s11 + $0xd8] sm:$0xff]  }
 0xc30   : > { %2835 = vmatprep.subr.bf16.mxu0 %v6905_v32  ;;  %v6927_v32 = vld [vmem:[%s9245_s11 + $0x98] sm:$0xff]  }
 0xc32   : > { %2781 = vmatpush1.bf16.msra.mxu1 %v6894_v60  ;;  %v6924_v60 = vld [vmem:[%s9245_s11 + $0x58] sm:$0xff]  }
 0xc33   : > { %2782 = vmatprep.subr.bf16.mxu1 %v6902_v2  ;;  %2836 = vmatpush1.bf16.msra.mxu0 %v6903_v33  ;;  %v6926_v2 = vld [vmem:[%s9245_s11 + $0x18] sm:$0xff]   ;;  %v6929_v33 = vld [vmem:[%s9245_s11 + $0xe0] sm:$0xff]  }
 0xc34   : > { %2837 = vmatprep.subr.bf16.mxu0 %v6911_v24  ;;  %v6931_v24 = vld [vmem:[%s9245_s11 + $0xa0] sm:$0xff]  }
 0xc36   : > { %2783 = vmatpush1.bf16.msra.mxu1 %v6900_v61  ;;  %v6928_v61 = vld [vmem:[%s9245_s11 + $0x60] sm:$0xff]  }
 0xc37   : > { %2784 = vmatprep.subr.bf16.mxu1 %v6908_v49  ;;  %2838 = vmatpush1.bf16.msra.mxu0 %v6909_v50  ;;  %v6930_v49 = vld [vmem:[%s9245_s11 + $0x20] sm:$0xff]   ;;  %v6933_v50 = vld [vmem:[%s9245_s11 + $0xe8] sm:$0xff]  }
 0xc3a   : > { %2785 = vmatpush1.bf16.msra.mxu1 %v6906_v21  ;;  %v6932_v21 = vld [vmem:[%s9245_s11 + $0x68] sm:$0xff]  }
 0xca9   : > { %v2491_v6 = vpop.xlane.xlu0 %2490 }
 0xcaa   : > { %v2498_v9 = vmul.f32 0.0078125, %v2491_v6 }
 0xcab   : > { %v2493_v58 = vpop.xlane.xlu1 %2492 }
 0xcac   : > { %v8095_v34 = vsub.f32 %v8055_v55, %v2498_v9  ;;  %v2499_v8 = vmul.f32 0.0078125, %v2493_v58 }
 0xcad   : > { %v2495_v36 = vpop.xlane.xlu0 %2494 }
 0xcae   : > { %v8098_v11 = vsub.f32 %v8058_v57, %v2499_v8  ;;  %v2500_v12 = vmul.f32 0.0078125, %v2495_v36  ;;  %v2506_v15 = vmul.f32 %v8095_v34, %v8095_v34 }
 0xcb0   : > { %v8103_v40 = vsub.f32 %v8062_v59, %v2500_v12  ;;  %2510 = vadd.xlane.f32.xlu0 %v2506_v15  ;;  %v2507_v42 = vmul.f32 %v8098_v11, %v8098_v11  ;;  %v5790_v12 = vld [vmem:[%s9248_s14] ss:$0 sm:$0xff] }
 0xcb1   : > { %v2497_v43 = vpop.xlane.xlu0 %2496 }
 0xcb2   : > { %v2501_v16 = vmul.f32 0.0078125, %v2497_v43  ;;  %2512 = vadd.xlane.f32.xlu1 %v2507_v42  ;;  %v2508_v17 = vmul.f32 %v8103_v40, %v8103_v40 }
 0xcb4   : > { %v8110_v18 = vsub.f32 %v8067_v14, %v2501_v16  ;;  %2514 = vadd.xlane.f32.xlu0 %v2508_v17 }
 0xcb6   : > { %v2509_v41 = vmul.f32 %v8110_v18, %v8110_v18 }
 0xcb8   : > { %2516 = vadd.xlane.f32.xlu1 %v2509_v41 }
 0xd3d   : > { %v2511_v51 = vpop.xlane.xlu0 %2510 }
 0xd3e   : > { %v2518_v52 = vmul.f32 0.0078125, %v2511_v51  ;;  %v6934_v51 = vld [vmem:[%s9245_s11 + $0x28] sm:$0xff]  }
 0xd3f   : > { %v2513_v53 = vpop.xlane.xlu1 %2512 }
 0xd40   : > { %v2522_v54 = vadd.f32 1e-12, %v2518_v52  ;;  %v2519_v56 = vmul.f32 0.0078125, %v2513_v53  ;;  %v6935_v52 = vld [vmem:[%s9245_s11 + $0xa8] sm:$0xff]   ;;  %v6936_v53 = vld [vmem:[%s9245_s11 + $0x70] sm:$0xff]  }
 0xd41   : > { %v2515_v7 = vpop.xlane.xlu0 %2514 }
 0xd42   : > { %7136 = vrsqrt.f32 %v2522_v54  ;;  %v2523_v37 = vadd.f32 1e-12, %v2519_v56  ;;  %v2520_v39 = vmul.f32 0.0078125, %v2515_v7  ;;  %v6937_v54 = vld [vmem:[%s9245_s11 + $0xf0] sm:$0xff]  }
 0xd43   : > { %v6938_v56 = vld [vmem:[%s9245_s11 + $0x30] sm:$0xff]  }
 0xd44   : > { %7138 = vrsqrt.f32 %v2523_v37  ;;  %v2524_v45 = vadd.f32 1e-12, %v2520_v39  ;;  %v6939_v7 = vld [vmem:[%s9245_s11 + $0xb0] sm:$0xff]   ;;  %v6940_v37 = vld [vmem:[%s9245_s11 + $0x78] sm:$0xff]  }
 0xd45   : > { %v2517_v13 = vpop.xlane.xlu1 %2516  ;;  %v6941_v39 = vld [vmem:[%s9245_s11 + $0xf8] sm:$0xff]  }
 0xd46   : > { %7140 = vrsqrt.f32 %v2524_v45  ;;  %v2521_v47 = vmul.f32 0.0078125, %v2517_v13  ;;  %v6942_v45 = vld [vmem:[%s9245_s11 + $0x38] sm:$0xff]  }
 0xd47   : > { %v6943_v13 = vld [vmem:[%s9245_s11 + $0xb8] sm:$0xff]  }
 0xd48   : > { %v2525_v3 = vadd.f32 1e-12, %v2521_v47  ;;  %v2588_v47 = vld [vmem:[%s9244_s10] sm:$0xf] }
 0xd4a   : > { %7142 = vrsqrt.f32 %v2525_v3  ;;  %v2604_v3 = vsub.s32 3, %v7800_v63 }
 0xd4c   : > { %v7137_v4 = vpop.eup %7136 }
 0xd4d   : > { %v2530_v6 = vmul.f32 %v7137_v4, %v8095_v34  ;;  %v8299_v4 = vrot.slane %v2588_v47, %v7803_v62 }
 0xd4e   : > { %v7139_v9 = vpop.eup %7138 }
 0xd4f   : > { %v2531_v58 = vmul.f32 %v7139_v9, %v8098_v11  ;;  %v2540_v8 = vmul.f32 %v5789_v5, %v2530_v6  ;;  %v8305_v6 = vrot.slane %v2588_v47, %v7809_v1  ;;  %v8309_v9 = vrot.slane %v2588_v47, %v2604_v3 }
 0xd50   : > { %v7141_v36 = vpop.eup %7140 }
 0xd51   : > { %v2541_v15 = vmul.f32 %v5789_v5, %v2531_v58  ;;  %v2550_v42 = vadd.f32 %v5790_v12, %v2540_v8  ;;  %v2532_v16 = vmul.f32 %v7141_v36, %v8103_v40  ;;  %v6912_v40 = vld [vmem:[%s9245_s11 + $0x40] sm:$0xff]  }
 0xd52   : > { %6265 = vmatprep.subr.bf16.mxu1 %v6912_v40 }
 0xd53   : > { %v2551_v43 = vadd.f32 %v5790_v12, %v2541_v15  ;;  %v2542_v34 = vmul.f32 %v5789_v5, %v2532_v16 }
 0xd54   : > { %v7143_v17 = vpop.eup %7142 }
 0xd55   : > { %v2554_v41 = vpack.c.bf16 %v2551_v43, %v2550_v42  ;;  %v2533_v46 = vmul.f32 %v7143_v17, %v8110_v18  ;;  %v2552_v19 = vadd.f32 %v5790_v12, %v2542_v34  ;;  %v6913_v18 = vld [vmem:[%s9245_s11 + $0xc0] sm:$0xff]  }
 0xd56   : > { %6293 = vmatprep.subr.bf16.mxu0 %v6913_v18 }
 0xd57   : > { %2803 = vmatmul.mubr.bf16.vlgmr.msra.gmra.mrb[40].mxu1 %v2554_v41  ;;  %2856 = vmatmul.mubr.bf16.vlgmr.msra.gmra.mrb[32].mxu0 %v2554_v41  ;;  %v2543_v48 = vmul.f32 %v5789_v5, %v2533_v46  ;;  %v8302_v5 = vrot.slane %v2588_v47, %v7814_v10 }
 0xd58   : > { %2812 = vmatprep.mubr.bf16.mxu1 %v7356_v22  ;;  %2865 = vmatprep.mubr.bf16.mxu0 %v7356_v22 }
 0xd59   : > { %v2553_v11 = vadd.f32 %v5790_v12, %v2543_v48  ;;  %6266 = vmatpush3.bf16.msra.mxu1 %v6914_v35  ;;  %6294 = vmatpush3.bf16.msra.mxu0 %v6915_v38 }
 0xd5a   : > { %6267 = vmatprep.subr.bf16.mxu1 %v6916_v23  ;;  %6295 = vmatprep.subr.bf16.mxu0 %v6917_v25 }
 0xd5b   : > { %v2555_v20 = vpack.c.bf16 %v2553_v11, %v2552_v19 }
 0xd5d   : > { %6268 = vmatpush3.bf16.msra.mxu1 %v6918_v26  ;;  %6296 = vmatpush3.bf16.msra.mxu0 %v6919_v27 }
 0xd5e   : > { %6269 = vmatprep.subr.bf16.mxu1 %v6920_v28  ;;  %6297 = vmatprep.subr.bf16.mxu0 %v6921_v29 }
 0xd5f   : > { %2813 = vmatmul.mubr.bf16.gmra.mrb[44].mxu1 %v2555_v20  ;;  %2866 = vmatmul.mubr.bf16.gmra.mrb[36].mxu0 %v2555_v20 }
 0xd61   : > { %6270 = vmatpush3.bf16.msra.mxu1 %v6922_v0  ;;  %6298 = vmatpush3.bf16.msra.mxu0 %v6923_v30 }
 0xd62   : > { %6271 = vmatprep.subr.bf16.mxu1 %v6924_v60  ;;  %6299 = vmatprep.subr.bf16.mxu0 %v6925_v31 }
 0xd65   : > { %6272 = vmatpush3.bf16.msra.mxu1 %v6926_v2  ;;  %6300 = vmatpush3.bf16.msra.mxu0 %v6927_v32 }
 0xd66   : > { %6273 = vmatprep.subr.bf16.mxu1 %v6928_v61  ;;  %6301 = vmatprep.subr.bf16.mxu0 %v6929_v33 }
 0xd69   : > { %6274 = vmatpush3.bf16.msra.mxu1 %v6930_v49  ;;  %6302 = vmatpush3.bf16.msra.mxu0 %v6931_v24 }
 0xd6a   : > { %6275 = vmatprep.subr.bf16.mxu1 %v6932_v21  ;;  %6303 = vmatprep.subr.bf16.mxu0 %v6933_v50 }
 0xd6d   : > { %6276 = vmatpush3.bf16.msra.mxu1 %v6934_v51  ;;  %6304 = vmatpush3.bf16.msra.mxu0 %v6935_v52 }
 0xd6e   : > { %6277 = vmatprep.subr.bf16.mxu1 %v6936_v53  ;;  %6305 = vmatprep.subr.bf16.mxu0 %v6937_v54 }
 0xd71   : > { %6278 = vmatpush3.bf16.msra.mxu1 %v6938_v56  ;;  %6306 = vmatpush3.bf16.msra.mxu0 %v6939_v7 }
 0xd72   : > { %6279 = vmatprep.subr.bf16.mxu1 %v6940_v37  ;;  %6307 = vmatprep.subr.bf16.mxu0 %v6941_v39 }
 0xd75   : > { %6280 = vmatpush3.bf16.msra.mxu1 %v6942_v45  ;;  %6308 = vmatpush3.bf16.msra.mxu0 %v6943_v13 }
 0xe2a   : > { %v2804_v58 = vpop.f32.mrb[40].mxu1  ;;  %v2857_v8 = vpop.f32.mrb[32].mxu0 }
 0xe2b   : > { %v8312_v36 = vadd.f32 %v2804_v58, %v8299_v4  ;;  %v8315_v12 = vadd.f32 %v2857_v8, %v8302_v5  ;;  %v2806_v15 = vpop.f32.mrb[41].mxu1  ;;  %v2859_v42 = vpop.f32.mrb[33].mxu0 }
 0xe2c   : > { %v8318_v43 = vadd.f32 %v2806_v15, %v8305_v6  ;;  %v8321_v16 = vadd.f32 %v2859_v42, %v8309_v9  ;;  %v2808_v17 = vpop.f32.mrb[42].mxu1  ;;  %v2861_v41 = vpop.f32.mrb[34].mxu0 }
 0xe2d   : > { %v2876_v46 = vmul.f32 %v8312_v36, %v8312_v36  ;;  %v2878_v34 = vmul.f32 %v8315_v12, %v8315_v12  ;;  %v8328_v48 = vadd.f32 %v2808_v17, %v8299_v4  ;;  %v8331_v11 = vadd.f32 %v2861_v41, %v8302_v5  ;;  %v2810_v19 = vpop.f32.mrb[43].mxu1  ;;  %v2863_v20 = vpop.f32.mrb[35].mxu0 }
 0xe2e   : > { %v2877_v40 = vmul.f32 %v8318_v43, %v8318_v43  ;;  %v2879_v18 = vmul.f32 %v8321_v16, %v8321_v16  ;;  %v8338_v35 = vadd.f32 %v2810_v19, %v8305_v6  ;;  %v8341_v38 = vadd.f32 %v2863_v20, %v8309_v9 }
 0xe2f   : > { %v2892_v23 = vmul.f32 %v2876_v46, %v8312_v36  ;;  %v2894_v25 = vmul.f32 %v2878_v34, %v8315_v12  ;;  %v2880_v26 = vmul.f32 %v8328_v48, %v8328_v48  ;;  %v2882_v27 = vmul.f32 %v8331_v11, %v8331_v11 }
 0xe30   : > { %v2893_v28 = vmul.f32 %v2877_v40, %v8318_v43  ;;  %v2895_v29 = vmul.f32 %v2879_v18, %v8321_v16  ;;  %v2881_v0 = vmul.f32 %v8338_v35, %v8338_v35  ;;  %v2883_v30 = vmul.f32 %v8341_v38, %v8341_v38 }
 0xe31   : > { %v2908_v60 = vmul.f32 0.044715, %v2892_v23  ;;  %v2910_v31 = vmul.f32 0.044715, %v2894_v25  ;;  %v2896_v2 = vmul.f32 %v2880_v26, %v8328_v48  ;;  %v2898_v32 = vmul.f32 %v2882_v27, %v8331_v11 }
 0xe32   : > { %v2909_v61 = vmul.f32 0.044715, %v2893_v28  ;;  %v2911_v33 = vmul.f32 0.044715, %v2895_v29  ;;  %v2897_v49 = vmul.f32 %v2881_v0, %v8338_v35  ;;  %v2899_v24 = vmul.f32 %v2883_v30, %v8341_v38  ;;  %v2814_v21 = vpop.f32.mrb[44].mxu1  ;;  %v2867_v50 = vpop.f32.mrb[36].mxu0 }
 0xe33   : > { %v2924_v51 = vadd.f32 %v2908_v60, %v8312_v36  ;;  %v2926_v52 = vadd.f32 %v2910_v31, %v8315_v12  ;;  %v2912_v53 = vmul.f32 0.044715, %v2896_v2  ;;  %v2914_v54 = vmul.f32 0.044715, %v2898_v32  ;;  %v2816_v56 = vpop.f32.mrb[45].mxu1  ;;  %v2869_v7 = vpop.f32.mrb[37].mxu0 }
 0xe34   : > { %v2925_v37 = vadd.f32 %v2909_v61, %v8318_v43  ;;  %v2927_v39 = vadd.f32 %v2911_v33, %v8321_v16  ;;  %v2913_v45 = vmul.f32 0.044715, %v2897_v49  ;;  %v2915_v13 = vmul.f32 0.044715, %v2899_v24  ;;  %v2818_v47 = vpop.f32.mrb[46].mxu1  ;;  %v2871_v58 = vpop.f32.mrb[38].mxu0 }
 0xe35   : > { %v2940_v8 = vmul.f32 0.7978846, %v2924_v51  ;;  %v2942_v15 = vmul.f32 0.7978846, %v2926_v52  ;;  %v2928_v42 = vadd.f32 %v2912_v53, %v8328_v48  ;;  %v2930_v17 = vadd.f32 %v2914_v54, %v8331_v11  ;;  %v2820_v41 = vpop.f32.mrb[47].mxu1  ;;  %v2873_v46 = vpop.f32.mrb[39].mxu0 }
 0xe36   : > { %v2941_v34 = vmul.f32 0.7978846, %v2925_v37  ;;  %v2943_v19 = vmul.f32 0.7978846, %v2927_v39  ;;  %v2929_v20 = vadd.f32 %v2913_v45, %v8338_v35  ;;  %v2931_v40 = vadd.f32 %v2915_v13, %v8341_v38 }
 0xe37   : > { %7144 = vtanh.f32 %v2940_v8  ;;  %v2944_v18 = vmul.f32 0.7978846, %v2928_v42  ;;  %v2946_v23 = vmul.f32 0.7978846, %v2930_v17  ;;  %v8368_v25 = vadd.f32 %v2814_v21, %v8299_v4 }
 0xe38   : > { %7146 = vtanh.f32 %v2942_v15  ;;  %v2945_v26 = vmul.f32 0.7978846, %v2929_v20  ;;  %v2947_v27 = vmul.f32 0.7978846, %v2931_v40  ;;  %v8371_v28 = vadd.f32 %v2867_v50, %v8302_v5 }
 0xe39   : > { %7148 = vtanh.f32 %v2941_v34  ;;  %v2884_v29 = vmul.f32 %v8368_v25, %v8368_v25  ;;  %v8376_v0 = vadd.f32 %v2816_v56, %v8305_v6  ;;  %v8379_v30 = vadd.f32 %v2869_v7, %v8309_v9 }
 0xe3a   : > { %7150 = vtanh.f32 %v2943_v19  ;;  %v2886_v60 = vmul.f32 %v8371_v28, %v8371_v28  ;;  %v8384_v31 = vadd.f32 %v2818_v47, %v8299_v4  ;;  %v8387_v2 = vadd.f32 %v2871_v58, %v8302_v5 }
 0xe3b   : > { %7152 = vtanh.f32 %v2944_v18  ;;  %v2900_v32 = vmul.f32 %v2884_v29, %v8368_v25  ;;  %v2885_v61 = vmul.f32 %v8376_v0, %v8376_v0  ;;  %v2887_v33 = vmul.f32 %v8379_v30, %v8379_v30 }
 0xe3c   : > { %7154 = vtanh.f32 %v2946_v23  ;;  %v2902_v49 = vmul.f32 %v2886_v60, %v8371_v28  ;;  %v2888_v24 = vmul.f32 %v8384_v31, %v8384_v31  ;;  %v2890_v4 = vmul.f32 %v8387_v2, %v8387_v2 }
 0xe3d   : > { %7156 = vtanh.f32 %v2945_v26  ;;  %v2916_v5 = vmul.f32 0.044715, %v2900_v32  ;;  %v2901_v21 = vmul.f32 %v2885_v61, %v8376_v0  ;;  %v2903_v50 = vmul.f32 %v2887_v33, %v8379_v30 }
 0xe3e   : > { %7158 = vtanh.f32 %v2947_v27  ;;  %v2918_v51 = vmul.f32 0.044715, %v2902_v49  ;;  %v2904_v52 = vmul.f32 %v2888_v24, %v8384_v31  ;;  %v2906_v53 = vmul.f32 %v2890_v4, %v8387_v2 }
 0xe3f   : > { %v2932_v54 = vadd.f32 %v2916_v5, %v8368_v25  ;;  %v2917_v56 = vmul.f32 0.044715, %v2901_v21  ;;  %v2919_v7 = vmul.f32 0.044715, %v2903_v50  ;;  %v8405_v37 = vadd.f32 %v2820_v41, %v8305_v6 }
 0xe40   : > { %v2934_v39 = vadd.f32 %v2918_v51, %v8371_v28  ;;  %v2920_v45 = vmul.f32 0.044715, %v2904_v52  ;;  %v2922_v13 = vmul.f32 0.044715, %v2906_v53  ;;  %v8409_v47 = vadd.f32 %v2873_v46, %v8309_v9 }
 0xe41   : > { %v7145_v58 = vpop.eup %7144  ;;  %v2948_v8 = vmul.f32 0.7978846, %v2932_v54  ;;  %v2933_v15 = vadd.f32 %v2917_v56, %v8376_v0  ;;  %v2935_v42 = vadd.f32 %v2919_v7, %v8379_v30  ;;  %v2889_v17 = vmul.f32 %v8405_v37, %v8405_v37 }
 0xe42   : > { %v7147_v34 = vpop.eup %7146  ;;  %v2972_v19 = vadd.f32 1.0, %v7145_v58  ;;  %v2950_v6 = vmul.f32 0.7978846, %v2934_v39  ;;  %v2936_v41 = vadd.f32 %v2920_v45, %v8384_v31  ;;  %v2938_v20 = vadd.f32 %v2922_v13, %v8387_v2 }
 0xe43   : > { %v7149_v40 = vpop.eup %7148  ;;  %v2974_v18 = vadd.f32 1.0, %v7147_v34  ;;  %7160 = vtanh.f32 %v2948_v8  ;;  %v2949_v9 = vmul.f32 0.7978846, %v2933_v15  ;;  %v2951_v46 = vmul.f32 0.7978846, %v2935_v42 }
 0xe44   : > { %v7151_v23 = vpop.eup %7150  ;;  %v2988_v26 = vmul.f32 0.5, %v2972_v19  ;;  %7162 = vtanh.f32 %v2950_v6  ;;  %v2952_v27 = vmul.f32 0.7978846, %v2936_v41  ;;  %v2954_v29 = vmul.f32 0.7978846, %v2938_v20 }
 0xe45   : > { %v7153_v60 = vpop.eup %7152  ;;  %v2990_v32 = vmul.f32 0.5, %v2974_v18  ;;  %7164 = vtanh.f32 %v2949_v9  ;;  %v2905_v61 = vmul.f32 %v2889_v17, %v8405_v37  ;;  %v2891_v33 = vmul.f32 %v8409_v47, %v8409_v47 }
 0xe46   : > { %v7155_v49 = vpop.eup %7154  ;;  %v3004_v24 = vmul.f32 %v2988_v26, %v8312_v36  ;;  %v2976_v4 = vadd.f32 1.0, %v7153_v60  ;;  %7166 = vtanh.f32 %v2951_v46  ;;  %v2973_v5 = vadd.f32 1.0, %v7149_v40 }
 0xe47   : > { %v7157_v21 = vpop.eup %7156  ;;  %v3006_v50 = vmul.f32 %v2990_v32, %v8315_v12  ;;  %v2978_v51 = vadd.f32 1.0, %v7155_v49  ;;  %7168 = vtanh.f32 %v2952_v27  ;;  %v2921_v52 = vmul.f32 0.044715, %v2905_v61 }
 0xe48   : > { %v7159_v53 = vpop.eup %7158  ;;  %v2992_v54 = vmul.f32 0.5, %v2976_v4  ;;  %7170 = vtanh.f32 %v2954_v29  ;;  %v2907_v56 = vmul.f32 %v2891_v33, %v8409_v47  ;;  %v2977_v7 = vadd.f32 1.0, %v7157_v21 }
 0xe49   : > { %v2994_v39 = vmul.f32 0.5, %v2978_v51  ;;  %v2937_v45 = vadd.f32 %v2921_v52, %v8405_v37  ;;  %v2989_v13 = vmul.f32 0.5, %v2973_v5  ;;  %v2975_v36 = vadd.f32 1.0, %v7151_v23 }
 0xe4a   : > { %v3008_v58 = vmul.f32 %v2992_v54, %v8328_v48  ;;  %v2923_v8 = vmul.f32 0.044715, %v2907_v56  ;;  %v2993_v15 = vmul.f32 0.5, %v2977_v7  ;;  %v2979_v42 = vadd.f32 1.0, %v7159_v53 }
 0xe4b   : > { %v3010_v12 = vmul.f32 %v2994_v39, %v8331_v11  ;;  %v2953_v17 = vmul.f32 0.7978846, %v2937_v45  ;;  %v3005_v34 = vmul.f32 %v2989_v13, %v8318_v43  ;;  %v2991_v19 = vmul.f32 0.5, %v2975_v36 }
 0xe4c   : > { %v3020_v6 = vpack.c.bf16 %v3008_v58, %v3004_v24  ;;  %v2939_v41 = vadd.f32 %v2923_v8, %v8409_v47  ;;  %v3009_v20 = vmul.f32 %v2993_v15, %v8338_v35  ;;  %v2995_v40 = vmul.f32 0.5, %v2979_v42 }
 0xe4d   : > { %v7161_v18 = vpop.eup %7160  ;;  %v3022_v9 = vpack.c.bf16 %v3010_v12, %v3006_v50  ;;  %7172 = vtanh.f32 %v2953_v17  ;;  %v3007_v48 = vmul.f32 %v2991_v19, %v8321_v16 }
 0xe4e   : > { %v7163_v46 = vpop.eup %7162  ;;  %v2955_v23 = vmul.f32 0.7978846, %v2939_v41  ;;  %v3021_v26 = vpack.c.bf16 %v3009_v20, %v3005_v34  ;;  %v3011_v11 = vmul.f32 %v2995_v40, %v8341_v38  ;;  %v2980_v27 = vadd.f32 1.0, %v7161_v18 }
 0xe4f   : > { %v7165_v29 = vpop.eup %7164  ;;  %v2982_v43 = vadd.f32 1.0, %v7163_v46 }
 0xe50   : > { %v7167_v60 = vpop.eup %7166  ;;  %7174 = vtanh.f32 %v2955_v23  ;;  %3323 = vmatprep.mubr.bf16.mxu1 %v3021_v26  ;;  %v3023_v32 = vpack.c.bf16 %v3011_v11, %v3007_v48  ;;  %v2996_v49 = vmul.f32 0.5, %v2980_v27  ;;  %v2981_v4 = vadd.f32 1.0, %v7165_v29 }
 0xe51   : > { %v7169_v61 = vpop.eup %7168  ;;  %3324 = vmatmul.mubr.bf16.vlgmr.msra.gmra.mrb[48].mxu1 %v3020_v6  ;;  %v2998_v24 = vmul.f32 0.5, %v2982_v43  ;;  %v2983_v52 = vadd.f32 1.0, %v7167_v60 }
 0xe52   : > { %v7171_v35 = vpop.eup %7170  ;;  %3372 = vmatprep.mubr.bf16.mxu0 %v3023_v32  ;;  %v2984_v33 = vadd.f32 1.0, %v7169_v61  ;;  %v3012_v38 = vmul.f32 %v2996_v49, %v8368_v25  ;;  %v2997_v7 = vmul.f32 0.5, %v2981_v4 }
 0xe53   : > { %3373 = vmatmul.mubr.bf16.vlgmr.msra.gmra.mrb[40].mxu0 %v3022_v9  ;;  %v2986_v16 = vadd.f32 1.0, %v7171_v35  ;;  %v3014_v53 = vmul.f32 %v2998_v24, %v8371_v28  ;;  %v2999_v8 = vmul.f32 0.5, %v2983_v52  ;;  %v6944_v52 = vld [vmem:[%s9288_s19 + $0xc0] ss:$12 sps:$4 sm:$0xff]  }
 0xe54   : > { %v3000_v5 = vmul.f32 0.5, %v2984_v33  ;;  %v3013_v15 = vmul.f32 %v2997_v7, %v8376_v0  ;;  %v5823_v0 = vld [vmem:[%s9246_s12] ss:$0 sm:$0xff] }
 0xe55   : > { %v3002_v21 = vmul.f32 0.5, %v2986_v16  ;;  %v3015_v12 = vmul.f32 %v2999_v8, %v8379_v30 }
 0xe56   : > { %v3016_v50 = vmul.f32 %v3000_v5, %v8384_v31 }
 0xe57   : > { %v7173_v51 = vpop.eup %7172  ;;  %v3018_v54 = vmul.f32 %v3002_v21, %v8387_v2 }
 0xe58   : > { %v2985_v56 = vadd.f32 1.0, %v7173_v51  ;;  %v3024_v39 = vpack.c.bf16 %v3016_v50, %v3012_v38 }
 0xe59   : > { %v3026_v45 = vpack.c.bf16 %v3018_v54, %v3014_v53  ;;  %v6946_v53 = vld [vmem:[%s9288_s19 + $0xc4] ss:$12 sps:$4 sm:$0xff]  }
 0xe5a   : > { %v7175_v13 = vpop.eup %7174  ;;  %v3001_v36 = vmul.f32 0.5, %v2985_v56  ;;  %3642 = vmatprep.subr.bf16.mxu1 %v6946_v53 }
 0xe5b   : > { %v2987_v58 = vadd.f32 1.0, %v7175_v13  ;;  %3643 = vmatpush1.bf16.msra.mxu1 %v6944_v52 }
 0xe5c   : > { %v3017_v25 = vmul.f32 %v3001_v36, %v8405_v37 }
 0xe5d   : > { %v3003_v42 = vmul.f32 0.5, %v2987_v58 }
 0xe5e   : > { %v3025_v31 = vpack.c.bf16 %v3017_v25, %v3013_v15 }
 0xe5f   : > { %v3019_v28 = vmul.f32 %v3003_v42, %v8409_v47 }
 0xe60   : > { %3331 = vmatprep.mubr.bf16.mxu1 %v3025_v31 }
 0xe61   : > { %v3027_v2 = vpack.c.bf16 %v3019_v28, %v3015_v12  ;;  %3332 = vmatmul.mubr.bf16.gmra.mrb[52].mxu1 %v3024_v39 }
 0xe62   : > { %3674 = vmatprep.mubr.bf16.mxu1 %v7356_v22 }
 0xe63   : > { %3380 = vmatprep.mubr.bf16.mxu0 %v3027_v2 }
 0xe64   : > { %3381 = vmatmul.mubr.bf16.gmra.mrb[44].mxu0 %v3026_v45 }
 0xf24   : > { %v6281_v17 = vpop.f32.mrb[48].mxu1 }
 0xf25   : > { %v6282_v34 = vpop.f32.mrb[49].mxu1 }
 0xf26   : > { %v6309_v37 = vpop.f32.mrb[40].mxu0  ;;  %v6283_v19 = vadd.f32 %v6282_v34, %v6281_v17  ;;  %v6284_v6 = vpop.f32.mrb[50].mxu1  ;;  %v6952_v17 = vld [vmem:[%s9288_s19 + $0xf4] ss:$12 sps:$4 sm:$0xff]   ;;  %v6950_v34 = vld [vmem:[%s9288_s19 + $0xf0] ss:$12 sps:$4 sm:$0xff]  }
 0xf27   : > { %v6310_v41 = vpop.f32.mrb[41].mxu0  ;;  %v6285_v30 = vpop.f32.mrb[51].mxu1 }
 0xf28   : > { %v3326_v20 = vadd.f32 %v6283_v19, %v5823_v0  ;;  %v6311_v47 = vadd.f32 %v6310_v41, %v6309_v37  ;;  %v6312_v40 = vpop.f32.mrb[42].mxu0  ;;  %v6286_v18 = vadd.f32 %v6285_v30, %v6284_v6  ;;  %v6956_v37 = vld [vmem:[%s9288_s19 + $0x10c] ss:$12 sps:$4 sm:$0xff]   ;;  %v6954_v6 = vld [vmem:[%s9288_s19 + $0x108] ss:$12 sps:$4 sm:$0xff]  }
 0xf29   : > { %v6313_v9 = vpop.f32.mrb[43].mxu0  ;;  %v6957_v19 = vld [vmem:[%s9288_s19 + $0xe0] ss:$12 sps:$4 sm:$0xff]   ;;  %v6960_v41 = vld [vmem:[%s9288_s19 + $0x124] ss:$12 sps:$4 sm:$0xff]  }
 0xf2a   : > { %v3375_v48 = vadd.f32 %v6311_v47, %v3326_v20  ;;  %v3329_v46 = vadd.f32 %v6286_v18, %v5823_v0  ;;  %v6314_v23 = vadd.f32 %v6313_v9, %v6312_v40  ;;  %v6961_v30 = vld [vmem:[%s9288_s19 + $0xf8] ss:$12 sps:$4 sm:$0xff]   ;;  %v6958_v20 = vld [vmem:[%s9288_s19 + $0x120] ss:$12 sps:$4 sm:$0xff]   ;;  %v6964_v47 = vld [vmem:[%s9288_s19 + $0x13c] ss:$12 sps:$4 sm:$0xff]  }
 0xf2b   : > { %v6965_v40 = vld [vmem:[%s9288_s19 + $0x110] ss:$12 sps:$4 sm:$0xff]   ;;  %v6962_v18 = vld [vmem:[%s9288_s19 + $0x138] ss:$12 sps:$4 sm:$0xff]   ;;  %v6968_v9 = vld [vmem:[%s9288_s19 + $0x154] ss:$12 sps:$4 sm:$0xff]  }
 0xf2c   : > { %v3378_v26 = vadd.f32 %v6314_v23, %v3329_v46  ;;  %v8444_v11 = vadd.f32 %v3375_v48, %v8055_v55  ;;  %v6969_v48 = vld [vmem:[%s9288_s19 + $0x128] ss:$12 sps:$4 sm:$0xff]   ;;  %v6966_v46 = vld [vmem:[%s9288_s19 + $0x150] ss:$12 sps:$4 sm:$0xff]   ;;  %v6972_v23 = vld [vmem:[%s9288_s19 + $0x16c] ss:$12 sps:$4 sm:$0xff]  }
 0xf2e   : > { %3397 = vadd.xlane.f32.xlu0 %v8444_v11  ;;  %v8448_v27 = vadd.f32 %v3378_v26, %v8058_v57  ;;  %v6973_v26 = vld [vmem:[%s9288_s19 + $0x140] ss:$12 sps:$4 sm:$0xff]  }
 0xf30   : > { %3399 = vadd.xlane.f32.xlu1 %v8448_v27 }
 0xf34   : > { %v6287_v29 = vpop.f32.mrb[52].mxu1 }
 0xf35   : > { %v6288_v43 = vpop.f32.mrb[53].mxu1 }
 0xf36   : > { %v6289_v60 = vadd.f32 %v6288_v43, %v6287_v29  ;;  %v6290_v32 = vpop.f32.mrb[54].mxu1  ;;  %v6970_v29 = vld [vmem:[%s9288_s19 + $0x168] ss:$12 sps:$4 sm:$0xff]   ;;  %v6974_v43 = vld [vmem:[%s9288_s19 + $0x158] ss:$12 sps:$4 sm:$0xff]  }
 0xf37   : > { %v6315_v61 = vpop.f32.mrb[44].mxu0  ;;  %v6291_v35 = vpop.f32.mrb[55].mxu1 }
 0xf38   : > { %v3334_v33 = vadd.f32 %v6289_v60, %v5823_v0  ;;  %v6316_v49 = vpop.f32.mrb[45].mxu0  ;;  %v6292_v16 = vadd.f32 %v6291_v35, %v6290_v32  ;;  %v6975_v60 = vld [vmem:[%s9288_s19 + $0x170] ss:$12 sps:$4 sm:$0xff]  }
 0xf39   : > { %v6317_v24 = vadd.f32 %v6316_v49, %v6315_v61  ;;  %v6318_v4 = vpop.f32.mrb[46].mxu0 }
 0xf3a   : > { %v3337_v55 = vadd.f32 %v6292_v16, %v5823_v0  ;;  %v6319_v5 = vpop.f32.mrb[47].mxu0  ;;  %v6953_v0 = vld [vmem:[%s9288_s19 + $0xc8] ss:$12 sps:$4 sm:$0xff]  }
 0xf3b   : > { %v3383_v21 = vadd.f32 %v6317_v24, %v3334_v33  ;;  %v6320_v38 = vadd.f32 %v6319_v5, %v6318_v4  ;;  %6533 = vmatprep.subr.bf16.mxu0 %v6953_v0  ;;  %v5858_v4 = vld [vmem:[%s9241_s7 + $0x1] ss:$0 sm:$0xff] }
 0xf3c   : > { %6534 = vmatpush3.bf16.msra.mxu0 %v6953_v0  ;;  %v5892_v0 = vld [vmem:[%s9238_s4 + $0x3] sm:$0x7] }
 0xf3d   : > { %v3386_v50 = vadd.f32 %v6320_v38, %v3337_v55  ;;  %v8452_v57 = vadd.f32 %v3383_v21, %v8062_v59  ;;  %v6949_v59 = vld [vmem:[%s9288_s19 + $0xdc] ss:$12 sps:$4 sm:$0xff]   ;;  %6535 = vmatprep.subr.bf16.mxu0 %v6957_v19 }
 0xf3e   : > { %3644 = vmatprep.subr.bf16.mxu1 %v6949_v59  ;;  %v5859_v59 = vld [vmem:[%s9242_s8 + $0x1] ss:$0 sm:$0xff] }
 0xf3f   : > { %3401 = vadd.xlane.f32.xlu0 %v8452_v57  ;;  %v8456_v51 = vadd.f32 %v3386_v50, %v8067_v14  ;;  %v6947_v14 = vld [vmem:[%s9288_s19 + $0xd8] ss:$12 sps:$4 sm:$0xff]  }
 0xf40   : > { %3645 = vmatpush1.bf16.msra.mxu1 %v6947_v14  ;;  %6536 = vmatpush3.bf16.msra.mxu0 %v6957_v19  ;;  %v3506_v19 = vrot.slane %v5892_v0, %v7809_v1 }
 0xf41   : > { %3403 = vadd.xlane.f32.xlu1 %v8456_v51  ;;  %3646 = vmatprep.subr.bf16.mxu1 %v6952_v17 }
 0xf42   : > { %6537 = vmatprep.subr.bf16.mxu0 %v6961_v30 }
 0xf44   : > { %3647 = vmatpush1.bf16.msra.mxu1 %v6950_v34  ;;  %6538 = vmatpush3.bf16.msra.mxu0 %v6961_v30  ;;  %v3502_v34 = vrot.slane %v5892_v0, %v7803_v62 }
 0xf45   : > { %3648 = vmatprep.subr.bf16.mxu1 %v6956_v37  ;;  %6539 = vmatprep.subr.bf16.mxu0 %v6965_v40 }
 0xf48   : > { %3649 = vmatpush1.bf16.msra.mxu1 %v6954_v6  ;;  %6540 = vmatpush3.bf16.msra.mxu0 %v6965_v40 }
 0xf49   : > { %3650 = vmatprep.subr.bf16.mxu1 %v6960_v41  ;;  %6541 = vmatprep.subr.bf16.mxu0 %v6969_v48 }
 0xf4c   : > { %3651 = vmatpush1.bf16.msra.mxu1 %v6958_v20  ;;  %6542 = vmatpush3.bf16.msra.mxu0 %v6969_v48  ;;  %v3510_v48 = vrot.slane %v5892_v0, %v7814_v10 }
 0xf4d   : > { %3652 = vmatprep.subr.bf16.mxu1 %v6964_v47  ;;  %6543 = vmatprep.subr.bf16.mxu0 %v6973_v26 }
 0xf50   : > { %3653 = vmatpush1.bf16.msra.mxu1 %v6962_v18  ;;  %6544 = vmatpush3.bf16.msra.mxu0 %v6973_v26 }
 0xf51   : > { %3654 = vmatprep.subr.bf16.mxu1 %v6968_v9  ;;  %6545 = vmatprep.subr.bf16.mxu0 %v6974_v43 }
 0xf54   : > { %3655 = vmatpush1.bf16.msra.mxu1 %v6966_v46  ;;  %6546 = vmatpush3.bf16.msra.mxu0 %v6974_v43 }
 0xf55   : > { %3656 = vmatprep.subr.bf16.mxu1 %v6972_v23  ;;  %6547 = vmatprep.subr.bf16.mxu0 %v6975_v60 }
 0xf58   : > { %3657 = vmatpush1.bf16.msra.mxu1 %v6970_v29  ;;  %6548 = vmatpush3.bf16.msra.mxu0 %v6975_v60 }
 0xfbb   : > { %v3398_v54 = vpop.xlane.xlu0 %3397 }
 0xfbc   : > { %v3405_v56 = vmul.f32 0.0078125, %v3398_v54 }
 0xfbd   : > { %v3400_v7 = vpop.xlane.xlu1 %3399 }
 0xfbe   : > { %v8472_v39 = vsub.f32 %v8444_v11, %v3405_v56  ;;  %v3406_v45 = vmul.f32 0.0078125, %v3400_v7 }
 0xfc0   : > { %v8475_v13 = vsub.f32 %v8448_v27, %v3406_v45  ;;  %v3413_v36 = vmul.f32 %v8472_v39, %v8472_v39 }
 0xfc2   : > { %3417 = vadd.xlane.f32.xlu0 %v3413_v36  ;;  %v3414_v58 = vmul.f32 %v8475_v13, %v8475_v13 }
 0xfc4   : > { %3419 = vadd.xlane.f32.xlu1 %v3414_v58 }
 0xfcc   : > { %v3402_v8 = vpop.xlane.xlu0 %3401 }
 0xfcd   : > { %v3407_v15 = vmul.f32 0.0078125, %v3402_v8 }
 0xfce   : > { %v3404_v25 = vpop.xlane.xlu1 %3403 }
 0xfcf   : > { %v8482_v42 = vsub.f32 %v8452_v57, %v3407_v15  ;;  %v3408_v31 = vmul.f32 0.0078125, %v3404_v25 }
 0xfd1   : > { %v8485_v12 = vsub.f32 %v8456_v51, %v3408_v31  ;;  %v3415_v28 = vmul.f32 %v8482_v42, %v8482_v42 }
 0xfd3   : > { %3421 = vadd.xlane.f32.xlu0 %v3415_v28  ;;  %v3416_v2 = vmul.f32 %v8485_v12, %v8485_v12 }
 0xfd5   : > { %3423 = vadd.xlane.f32.xlu1 %v3416_v2 }
0x104f   : > { %v3418_v32 = vpop.xlane.xlu0 %3417 }
0x1050   : > { %v3425_v61 = vmul.f32 0.0078125, %v3418_v32 }
0x1051   : > { %v3420_v35 = vpop.xlane.xlu1 %3419 }
0x1052   : > { %v3429_v33 = vadd.f32 1e-12, %v3425_v61  ;;  %v3426_v49 = vmul.f32 0.0078125, %v3420_v35 }
0x1054   : > { %7176 = vrsqrt.f32 %v3429_v33  ;;  %v3430_v16 = vadd.f32 1e-12, %v3426_v49 }
0x1056   : > { %7178 = vrsqrt.f32 %v3430_v16 }
0x105e   : > { %v7177_v24 = vpop.eup %7176 }
0x105f   : > { %v3437_v55 = vmul.f32 %v7177_v24, %v8472_v39 }
0x1060   : > { %v7179_v5 = vpop.eup %7178  ;;  %v3422_v21 = vpop.xlane.xlu0 %3421 }
0x1061   : > { %v3447_v38 = vmul.f32 %v5858_v4, %v3437_v55  ;;  %v3438_v50 = vmul.f32 %v7179_v5, %v8475_v13  ;;  %v3427_v52 = vmul.f32 0.0078125, %v3422_v21 }
0x1062   : > { %v3424_v53 = vpop.xlane.xlu1 %3423 }
0x1063   : > { %v3448_v14 = vmul.f32 %v5858_v4, %v3438_v50  ;;  %v3431_v54 = vadd.f32 1e-12, %v3427_v52  ;;  %v3428_v56 = vmul.f32 0.0078125, %v3424_v53  ;;  %v3457_v45 = vadd.f32 %v5859_v59, %v3447_v38 }
0x1065   : > { %7180 = vrsqrt.f32 %v3431_v54  ;;  %v3432_v7 = vadd.f32 1e-12, %v3428_v56  ;;  %v3458_v36 = vadd.f32 %v5859_v59, %v3448_v14 }
0x1067   : > { %7182 = vrsqrt.f32 %v3432_v7  ;;  %v3461_v39 = vpack.c.bf16 %v3458_v36, %v3457_v45 }
0x1069   : > { %3675 = vmatmul.mubr.bf16.vlgmr.msra.gmra.mrb[56].mxu1 %v3461_v39  ;;  %6549 = vmatprep.mubr.bf16.mxu0 %v3461_v39 }
0x106a   : > { %3684 = vmatprep.mubr.bf16.mxu1 %v7356_v22 }
0x106f   : > { %v7181_v13 = vpop.eup %7180 }
0x1070   : > { %v3439_v58 = vmul.f32 %v7181_v13, %v8482_v42 }
0x1071   : > { %v7183_v8 = vpop.eup %7182 }
0x1072   : > { %v3440_v15 = vmul.f32 %v7183_v8, %v8485_v12  ;;  %v3449_v25 = vmul.f32 %v5858_v4, %v3439_v58 }
0x1074   : > { %v3450_v31 = vmul.f32 %v5858_v4, %v3440_v15  ;;  %v3459_v28 = vadd.f32 %v5859_v59, %v3449_v25 }
0x1076   : > { %v3460_v2 = vadd.f32 %v5859_v59, %v3450_v31 }
0x1078   : > { %v3462_v17 = vpack.c.bf16 %v3460_v2, %v3459_v28 }
0x107a   : > { %3685 = vmatmul.mubr.bf16.gmra.mrb[60].mxu1 %v3462_v17  ;;  %6550 = vmatmul.mubr.bf16.vlgmr.msra.gmra.mrb[48].mxu0 %v3462_v17 }
0x113c   : > { %v3676_v37 = vpop.f32.mrb[56].mxu1 }
0x113d   : > { %v3678_v42 = vpop.f32.mrb[57].mxu1  ;;  %v3677_v41 = vadd.f32 %v3676_v37, %v3502_v34 }
0x113e   : > { %v3680_v6 = vpop.f32.mrb[58].mxu1  ;;  %v3679_v20 = vadd.f32 %v3678_v42, %v3506_v19 }
0x113f   : > { %v3681_v12 = vadd.f32 %v3680_v6, %v3502_v34  ;;  %v3682_v30 = vpop.f32.mrb[59].mxu1 }
0x1140   : > { %v3683_v47 = vadd.f32 %v3682_v30, %v3506_v19 }
0x1141   : > { %v8567_v40 = vpack.c.bf16 %v3681_v12, %v3677_v41 }
0x1142   : > { %v8569_v18 = vpack.c.bf16 %v3683_v47, %v3679_v20 }
0x1143   : > { %6557 = vmatprep.mubr.msk.bf16.mxu1 %vm1571_vm0, %v8567_v40 }
0x1144   : > { %6645 = vmatprep.subr.msk.bf16.mxu1 %vm1571_vm0, %v8569_v18  ;;  %v3757_v9 = vsel %vm1571_vm0, %v8569_v18, 0 }
0x1145   : > { %6554 = vmatpush3.bf16.xpose.msra.mxu1 %v3757_v9 }
0x114d   : > { %v3686_v46 = vpop.f32.mrb[60].mxu1  ;;  %v6551_v23 = vpop.f32.mrb[48].mxu0 }
0x114e   : > { %v3688_v26 = vpop.f32.mrb[61].mxu1  ;;  %v3729_v29 = vpop.f32.mrb[49].mxu0  ;;  %v3687_v32 = vadd.f32 %v3686_v46, %v3502_v34  ;;  %v3738_v61 = vadd.f32 %v6551_v23, %v3510_v48 }
0x114f   : > { %v3690_v43 = vpop.f32.mrb[62].mxu1  ;;  %v6552_v60 = vpop.f32.mrb[50].mxu0  ;;  %v3689_v24 = vadd.f32 %v3688_v26, %v3506_v19  ;;  %v3730_v4 = vadd.f32 %v3729_v29, %v3510_v48 }
0x1150   : > { %v3691_v35 = vadd.f32 %v3690_v43, %v3502_v34  ;;  %v3741_v33 = vadd.f32 %v6552_v60, %v3510_v48  ;;  %v3692_v49 = vpop.f32.mrb[63].mxu1  ;;  %v3732_v16 = vpop.f32.mrb[51].mxu0 }
0x1151   : > { %v3693_v55 = vadd.f32 %v3692_v49, %v3506_v19  ;;  %v3733_v5 = vadd.f32 %v3732_v16, %v3510_v48 }
0x1152   : > { %v8578_v21 = vpack.c.bf16 %v3691_v35, %v3687_v32  ;;  %v8580_v38 = vpack.c.bf16 %v3741_v33, %v3738_v61 }
0x1153   : > { %v8582_v50 = vpack.c.bf16 %v3693_v55, %v3689_v24  ;;  %v8584_v52 = vpack.c.bf16 %v3733_v5, %v3730_v4 }
0x1155   : > { %6646 = vmatprep.subr.msk.bf16.mxu1 %vm1571_vm0, %v8582_v50  ;;  %v3760_v53 = vsel %vm1571_vm0, %v8582_v50, 0 }
0x1156   : > { %6556 = vmatpush3.bf16.xpose.msra.mxu1 %v3760_v53 }
0x1157   : > { %6561 = vmatprep.subr.bf16.mxu1 %v8584_v52 }
0x115d   : > { %6558 = vmatmul.mubr.msk.bf16.vlgmr.msra.gmra.mrb[64].mxu1 %vm1571_vm0, %v8578_v21 }
0x115e   : > { %6562 = vmatpush3.bf16.msra.mxu1 %v8584_v52 }
0x115f   : > { %6563 = vmatprep.subr.bf16.mxu1 %v8580_v38 }
0x1162   : > { %6564 = vmatpush3.bf16.msra.mxu1 %v8580_v38 }
0x1230   : > { %v6559_v59 = vpop.f32.mrb[64].mxu1 }
0x1231   : > { %v3796_v14 = vpop.f32.mrb[65].mxu1  ;;  %v3813_v54 = vmul.f32 0.17677669, %v6559_v59 }
0x1232   : > { %v3811_v56 = vmul.f32 0.17677669, %v3796_v14  ;;  %v6560_v7 = vpop.f32.mrb[66].mxu1 }
0x1233   : > { %v3799_v45 = vpop.f32.mrb[67].mxu1  ;;  %v3814_v36 = vmul.f32 0.17677669, %v6560_v7  ;;  %v3817_v15 = vadd.f32 %v3813_v54, %v7845_v44 }
0x1234   : > { %v3812_v39 = vmul.f32 0.17677669, %v3799_v45  ;;  %v3815_v13 = vadd.f32 %v3811_v56, %v7845_v44 }
0x1235   : > { %v3818_v31 = vadd.f32 %v3814_v36, %v7845_v44  ;;  %v3825_v28 = vsel %vm1571_vm0, %v3817_v15, -inf }
0x1236   : > { %v3819_v58 = vsel %vm1571_vm0, %v3815_v13, -inf  ;;  %v3816_v8 = vadd.f32 %v3812_v39, %v7845_v44 }
0x1237   : > { %3820 = vmax.xlane.f32.xlu0 %v3819_v58  ;;  %v3828_v2 = vsel %vm1571_vm0, %v3818_v31, -inf }
0x1238   : > { %v3822_v25 = vsel %vm1571_vm0, %v3816_v8, -inf }
0x1239   : > { %3823 = vmax.xlane.f32.xlu1 %v3822_v25 }
0x123b   : > { %3826 = vmax.xlane.f32.xlu0 %v3825_v28 }
0x123d   : > { %3829 = vmax.xlane.f32.xlu1 %v3828_v2 }
0x12c4   : > { %v3821_v17 = vpop.xlane.xlu0 %3820 }
0x12c5   : > { %v3831_v0 = vsub.f32 %v3815_v13, %v3821_v17 }
0x12c6   : > { %v3824_v34 = vpop.xlane.xlu1 %3823 }
0x12c7   : > { %v3832_v37 = vsub.f32 %v3816_v8, %v3824_v34  ;;  %v3835_v41 = vmul.f32 1.442695, %v3831_v0 }
0x12c8   : > { %v3827_v19 = vpop.xlane.xlu0 %3826 }
0x12c9   : > { %v3837_v42 = vmul.f32 1.442695, %v3832_v37  ;;  %v3833_v6 = vsub.f32 %v3817_v15, %v3827_v19 }
0x12ca   : > { %v3830_v12 = vpop.xlane.xlu1 %3829 }
0x12cb   : > { %7184 = vpow2.f32 %v3837_v42  ;;  %v3839_v30 = vmul.f32 1.442695, %v3833_v6  ;;  %v3834_v20 = vsub.f32 %v3818_v31, %v3830_v12 }
0x12cd   : > { %7186 = vpow2.f32 %v3839_v30  ;;  %v3841_v47 = vmul.f32 1.442695, %v3834_v20 }
0x12ce   : > { %7188 = vpow2.f32 %v3835_v41 }
0x12cf   : > { %7190 = vpow2.f32 %v3841_v47 }
0x12d5   : > { %v7185_v9 = vpop.eup %7184 }
0x12d6   : > { %v3846_v48 = vsel %vm1571_vm0, %v7185_v9, 0.0 }
0x12d7   : > { %v7187_v46 = vpop.eup %7186  ;;  %3847 = vadd.xlane.f32.xlu1 %v3846_v48 }
0x12d8   : > { %v7189_v23 = vpop.eup %7188  ;;  %v3849_v26 = vsel %vm1571_vm0, %v7187_v46, 0.0 }
0x12d9   : > { %v7191_v29 = vpop.eup %7190  ;;  %3850 = vadd.xlane.f32.xlu0 %v3849_v26  ;;  %v3843_v60 = vsel %vm1571_vm0, %v7189_v23, 0.0 }
0x12da   : > { %v3852_v43 = vsel %vm1571_vm0, %v7191_v29, 0.0 }
0x12db   : > { %3853 = vadd.xlane.f32.xlu1 %v3852_v43 }
0x12dd   : > { %3844 = vadd.xlane.f32.xlu0 %v3843_v60 }
0x12ec   : > { %3930 = vrot.lane.b32.xlu1 %v8582_v50, %s9289_s24 }
0x12f0   : > { %3922 = vrot.lane.b32.xlu1 %v8567_v40, %s9289_s24 }
0x12f3   : > { %3928 = vrot.lane.b32.xlu0 %v8569_v18, %s9289_s24 }
0x12f4   : > { %3924 = vrot.lane.b32.xlu1 %v8578_v21, %s9289_s24 }
0x1364   : > { %v3848_v32 = vpop.xlane.xlu1 %3847 }
0x1365   : > { %7192 = vrcp.f32 %v3848_v32 }
0x1366   : > { %v3851_v61 = vpop.xlane.xlu0 %3850 }
0x1368   : > { %v3854_v35 = vpop.xlane.xlu1 %3853 }
0x1369   : > { %7194 = vrcp.f32 %v3854_v35 }
0x136a   : > { %7196 = vrcp.f32 %v3851_v61  ;;  %v3845_v33 = vpop.xlane.xlu0 %3844 }
0x136b   : > { %7198 = vrcp.f32 %v3845_v33 }
0x136c   : > { %v3931_v53 = vpop.permute.xlu1 %3930 }
0x136d   : > { %v3942_v39 = vsel %vm1571_vm0, %v3931_v53, 0 }
0x136e   : > { %v3929_v49 = vpop.permute.xlu0 %3928 }
0x136f   : > { %6647 = vmatprep.subr.msk.bf16.mxu1 %vm1571_vm0, %v3929_v49  ;;  %v7193_v16 = vpop.eup %7192  ;;  %v3939_v45 = vsel %vm1571_vm0, %v3929_v49, 0 }
0x1370   : > { %v3860_v14 = vmul.f32 %v7193_v16, %v7185_v9  ;;  %v3923_v36 = vpop.permute.xlu1 %3922 }
0x1373   : > { %v7195_v24 = vpop.eup %7194 }
0x1374   : > { %v7197_v4 = vpop.eup %7196  ;;  %v3862_v5 = vmul.f32 %v7195_v24, %v7191_v29  ;;  %v3925_v13 = vpop.permute.xlu1 %3924 }
0x1375   : > { %v7199_v55 = vpop.eup %7198  ;;  %v3861_v54 = vmul.f32 %v7197_v4, %v7187_v46 }
0x1376   : > { %v3859_v59 = vmul.f32 %v7199_v55, %v7189_v23 }
0x1377   : > { %v3864_v7 = vpack.c.bf16 %v3862_v5, %v3861_v54 }
0x1378   : > { %v3863_v56 = vpack.c.bf16 %v3860_v14, %v3859_v59 }
0x137a   : > { %6565 = vmatprep.mubr.msk.bf16.mxu1 %vm1571_vm0, %v3863_v56 }
0x137b   : > { %6566 = vmatmul.mubr.msk.bf16.vlgmr.msra.gmra.mrb[68].mxu1 %vm1571_vm0, %v3864_v7 }
0x137c   : > { %6570 = vmatpush3.bf16.xpose.msra.mxu1 %v3939_v45  ;;  %6573 = vmatprep.mubr.msk.bf16.mxu1 %vm1571_vm0, %v3923_v36 }
0x137d   : > { %6648 = vmatprep.subr.msk.bf16.mxu1 %vm1571_vm0, %v3931_v53 }
0x1384   : > { %6572 = vmatpush3.bf16.xpose.msra.mxu1 %v3942_v39 }
0x138b   : > { %6574 = vmatmul.mubr.msk.bf16.vlgmr.msra.gmra.mrb[72].mxu1 %vm1571_vm0, %v3925_v13 }
0x144e   : > { %v8624_v58 = vpop.f32.mrb[68].mxu1 }
0x144f   : > { %v8626_v8 = vpop.f32.mrb[69].mxu1 }
0x1450   : > { %v8628_v15 = vpop.f32.mrb[70].mxu1 }
0x1451   : > { %v8630_v25 = vpop.f32.mrb[71].mxu1 }
0x145e   : > { %v6575_v31 = vpop.f32.mrb[72].mxu1 }
0x145f   : > { %v3978_v28 = vpop.f32.mrb[73].mxu1  ;;  %v3995_v2 = vmul.f32 0.17677669, %v6575_v31 }
0x1460   : > { %v3993_v17 = vmul.f32 0.17677669, %v3978_v28  ;;  %v6576_v0 = vpop.f32.mrb[74].mxu1 }
0x1461   : > { %v3981_v34 = vpop.f32.mrb[75].mxu1  ;;  %v3996_v42 = vmul.f32 0.17677669, %v6576_v0  ;;  %v3999_v12 = vadd.f32 %v3995_v2, %v7845_v44 }
0x1462   : > { %v3994_v37 = vmul.f32 0.17677669, %v3981_v34  ;;  %v3997_v19 = vadd.f32 %v3993_v17, %v7845_v44 }
0x1463   : > { %v4007_v20 = vsel %vm1571_vm0, %v3999_v12, -inf  ;;  %v4000_v47 = vadd.f32 %v3996_v42, %v7845_v44 }
0x1464   : > { %v4001_v6 = vsel %vm1571_vm0, %v3997_v19, -inf  ;;  %v3998_v41 = vadd.f32 %v3994_v37, %v7845_v44 }
0x1465   : > { %4002 = vmax.xlane.f32.xlu0 %v4001_v6  ;;  %v4010_v9 = vsel %vm1571_vm0, %v4000_v47, -inf }
0x1466   : > { %v4004_v30 = vsel %vm1571_vm0, %v3998_v41, -inf }
0x1467   : > { %4005 = vmax.xlane.f32.xlu1 %v4004_v30 }
0x1469   : > { %4008 = vmax.xlane.f32.xlu0 %v4007_v20 }
0x146d   : > { %4011 = vmax.xlane.f32.xlu0 %v4010_v9 }
0x1478   : > { %4051 = vrot.lane.b32.xlu1 %v8580_v38, %s9289_s24 }
0x14f2   : > { %v4003_v48 = vpop.xlane.xlu0 %4002 }
0x14f3   : > { %v4013_v46 = vsub.f32 %v3997_v19, %v4003_v48 }
0x14f4   : > { %v4006_v23 = vpop.xlane.xlu1 %4005 }
0x14f5   : > { %v4017_v43 = vmul.f32 1.442695, %v4013_v46  ;;  %v4014_v60 = vsub.f32 %v3998_v41, %v4006_v23 }
0x14f6   : > { %v4009_v26 = vpop.xlane.xlu0 %4008 }
0x14f7   : > { %v4015_v29 = vsub.f32 %v3999_v12, %v4009_v26  ;;  %v4019_v33 = vmul.f32 1.442695, %v4014_v60 }
0x14f8   : > { %v4052_v54 = vpop.permute.xlu1 %4051 }
0x14f9   : > { %v4021_v32 = vmul.f32 1.442695, %v4015_v29 }
0x14fa   : > { %v4012_v61 = vpop.xlane.xlu0 %4011 }
0x14fb   : > { %7200 = vpow2.f32 %v4021_v32  ;;  %v4016_v35 = vsub.f32 %v4000_v47, %v4012_v61 }
0x14fc   : > { %7202 = vpow2.f32 %v4017_v43 }
0x14fd   : > { %v4023_v49 = vmul.f32 1.442695, %v4016_v35 }
0x14ff   : > { %7204 = vpow2.f32 %v4023_v49 }
0x1500   : > { %7206 = vpow2.f32 %v4019_v33 }
0x1505   : > { %v7201_v16 = vpop.eup %7200 }
0x1506   : > { %v4031_v24 = vsel %vm1571_vm0, %v7201_v16, 0.0  ;;  %v7203_v4 = vpop.eup %7202 }
0x1507   : > { %4032 = vadd.xlane.f32.xlu0 %v4031_v24  ;;  %v4025_v5 = vsel %vm1571_vm0, %v7203_v4, 0.0 }
0x1509   : > { %v7205_v55 = vpop.eup %7204 }
0x150a   : > { %v4034_v53 = vsel %vm1571_vm0, %v7205_v55, 0.0  ;;  %v7207_v59 = vpop.eup %7206 }
0x150b   : > { %4026 = vadd.xlane.f32.xlu0 %v4025_v5  ;;  %4035 = vadd.xlane.f32.xlu1 %v4034_v53  ;;  %v4028_v14 = vsel %vm1571_vm0, %v7207_v59, 0.0 }
0x150f   : > { %4029 = vadd.xlane.f32.xlu1 %v4028_v14 }
0x1520   : > { %4114 = vrot.lane.b32.xlu1 %v8569_v18, %s9290_s28 }
0x1521   : > { %4049 = vrot.lane.b32.xlu0 %v8584_v52, %s9289_s24 }
0x1524   : > { %4116 = vrot.lane.b32.xlu1 %v8582_v50, %s9290_s28 }
0x1525   : > { %4110 = vrot.lane.b32.xlu0 %v8567_v40, %s9290_s28 }
0x1528   : > { %4112 = vrot.lane.b32.xlu1 %v8578_v21, %s9290_s28 }
0x1594   : > { %v4033_v56 = vpop.xlane.xlu0 %4032 }
0x1598   : > { %v4027_v7 = vpop.xlane.xlu0 %4026  ;;  %v4036_v45 = vpop.xlane.xlu1 %4035 }
0x1599   : > { %7208 = vrcp.f32 %v4036_v45 }
0x159a   : > { %7210 = vrcp.f32 %v4027_v7 }
0x159b   : > { %7212 = vrcp.f32 %v4033_v56 }
0x159c   : > { %v4050_v36 = vpop.permute.xlu0 %4049  ;;  %v4030_v39 = vpop.xlane.xlu1 %4029 }
0x159d   : > { %7214 = vrcp.f32 %v4030_v39  ;;  %6577 = vmatprep.subr.bf16.mxu0 %v4050_v36 }
0x159e   : > { %6578 = vmatpush3.bf16.msra.mxu0 %v4050_v36 }
0x159f   : > { %6579 = vmatprep.subr.bf16.mxu0 %v4052_v54 }
0x15a0   : > { %v4115_v13 = vpop.permute.xlu1 %4114  ;;  %v4111_v41 = vpop.permute.xlu0 %4110 }
0x15a1   : > { %v4125_v12 = vsel %vm1571_vm0, %v4115_v13, 0 }
0x15a2   : > { %6580 = vmatpush3.bf16.msra.mxu0 %v4052_v54 }
0x15a3   : > { %6649 = vmatprep.subr.msk.bf16.mxu0 %vm1571_vm0, %v4115_v13  ;;  %v7209_v31 = vpop.eup %7208 }
0x15a4   : > { %v7211_v28 = vpop.eup %7210  ;;  %v4044_v0 = vmul.f32 %v7209_v31, %v7205_v55  ;;  %v4117_v30 = vpop.permute.xlu1 %4116 }
0x15a5   : > { %v7213_v2 = vpop.eup %7212  ;;  %v4041_v34 = vmul.f32 %v7211_v28, %v7203_v4  ;;  %v4128_v20 = vsel %vm1571_vm0, %v4117_v30, 0 }
0x15a6   : > { %v4043_v19 = vmul.f32 %v7213_v2, %v7201_v16 }
0x15a7   : > { %v7215_v17 = vpop.eup %7214 }
0x15a8   : > { %v4042_v37 = vmul.f32 %v7215_v17, %v7207_v59  ;;  %v4046_v6 = vpack.c.bf16 %v4044_v0, %v4043_v19  ;;  %v4113_v47 = vpop.permute.xlu1 %4112 }
0x15aa   : > { %v4045_v42 = vpack.c.bf16 %v4042_v37, %v4041_v34 }
0x15ac   : > { %6581 = vmatprep.mubr.msk.bf16.mxu0 %vm1571_vm0, %v4045_v42 }
0x15ad   : > { %6582 = vmatmul.mubr.msk.bf16.vlgmr.msra.gmra.mrb[52].mxu0 %vm1571_vm0, %v4046_v6 }
0x15ae   : > { %6586 = vmatpush3.bf16.xpose.msra.mxu0 %v4125_v12  ;;  %6589 = vmatprep.mubr.msk.bf16.mxu0 %vm1571_vm0, %v4111_v41 }
0x15af   : > { %6650 = vmatprep.subr.msk.bf16.mxu0 %vm1571_vm0, %v4117_v30 }
0x15b6   : > { %6588 = vmatpush3.bf16.xpose.msra.mxu0 %v4128_v20 }
0x15bd   : > { %6590 = vmatmul.mubr.msk.bf16.vlgmr.msra.gmra.mrb[56].mxu0 %vm1571_vm0, %v4113_v47 }
0x1680   : > { %v8664_v9 = vpop.f32.mrb[52].mxu0 }
0x1681   : > { %v8666_v48 = vpop.f32.mrb[53].mxu0 }
0x1682   : > { %v8668_v46 = vpop.f32.mrb[54].mxu0 }
0x1683   : > { %v6733_v23 = vpack.i.bf16 %v8668_v46, %v8664_v9  ;;  %v8672_v26 = vpop.f32.mrb[55].mxu0 }
0x1684   : > { %v6728_v29 = vpack.i.bf16 %v8672_v26, %v8666_v48 }
0x1690   : > { %v6591_v43 = vpop.f32.mrb[56].mxu0 }
0x1691   : > { %v4164_v60 = vpop.f32.mrb[57].mxu0  ;;  %v4181_v32 = vmul.f32 0.17677669, %v6591_v43 }
0x1692   : > { %v4179_v61 = vmul.f32 0.17677669, %v4164_v60  ;;  %v6592_v35 = vpop.f32.mrb[58].mxu0 }
0x1693   : > { %v4167_v33 = vpop.f32.mrb[59].mxu0  ;;  %v4185_v24 = vadd.f32 %v4181_v32, %v7845_v44  ;;  %v4182_v4 = vmul.f32 0.17677669, %v6592_v35 }
0x1694   : > { %v4183_v49 = vadd.f32 %v4179_v61, %v7845_v44  ;;  %v4180_v16 = vmul.f32 0.17677669, %v4167_v33 }
0x1695   : > { %v4186_v59 = vadd.f32 %v4182_v4, %v7845_v44  ;;  %v4193_v14 = vsel %vm1571_vm0, %v4185_v24, -inf }
0x1696   : > { %v4184_v55 = vadd.f32 %v4180_v16, %v7845_v44  ;;  %v4187_v5 = vsel %vm1571_vm0, %v4183_v49, -inf }
0x1697   : > { %4188 = vmax.xlane.f32.xlu0 %v4187_v5  ;;  %v4196_v54 = vsel %vm1571_vm0, %v4186_v59, -inf }
0x1698   : > { %v4190_v53 = vsel %vm1571_vm0, %v4184_v55, -inf }
0x1699   : > { %4191 = vmax.xlane.f32.xlu1 %v4190_v53 }
0x169b   : > { %4194 = vmax.xlane.f32.xlu0 %v4193_v14 }
0x169f   : > { %4197 = vmax.xlane.f32.xlu0 %v4196_v54 }
0x16aa   : > { %4235 = vrot.lane.b32.xlu1 %v8580_v38, %s9290_s28 }
0x1724   : > { %v4189_v56 = vpop.xlane.xlu0 %4188 }
0x1725   : > { %v4199_v7 = vsub.f32 %v4183_v49, %v4189_v56 }
0x1726   : > { %v4192_v45 = vpop.xlane.xlu1 %4191 }
0x1727   : > { %v4203_v13 = vmul.f32 1.442695, %v4199_v7  ;;  %v4200_v31 = vsub.f32 %v4184_v55, %v4192_v45 }
0x1728   : > { %v4195_v36 = vpop.xlane.xlu0 %4194 }
0x1729   : > { %v4201_v39 = vsub.f32 %v4185_v24, %v4195_v36  ;;  %v4205_v0 = vmul.f32 1.442695, %v4200_v31 }
0x172a   : > { %v4236_v47 = vpop.permute.xlu1 %4235 }
0x172b   : > { %v4207_v28 = vmul.f32 1.442695, %v4201_v39 }
0x172c   : > { %v4198_v2 = vpop.xlane.xlu0 %4197 }
0x172d   : > { %7216 = vpow2.f32 %v4207_v28  ;;  %v4202_v17 = vsub.f32 %v4186_v59, %v4198_v2 }
0x172e   : > { %7218 = vpow2.f32 %v4203_v13 }
0x172f   : > { %v4209_v34 = vmul.f32 1.442695, %v4202_v17 }
0x1731   : > { %7220 = vpow2.f32 %v4209_v34 }
0x1732   : > { %7222 = vpow2.f32 %v4205_v0 }
0x1737   : > { %v7217_v37 = vpop.eup %7216 }
0x1738   : > { %v4217_v19 = vsel %vm1571_vm0, %v7217_v37, 0.0  ;;  %v7219_v42 = vpop.eup %7218 }
0x1739   : > { %4218 = vadd.xlane.f32.xlu0 %v4217_v19  ;;  %v4211_v41 = vsel %vm1571_vm0, %v7219_v42, 0.0 }
0x173b   : > { %v7221_v6 = vpop.eup %7220 }
0x173c   : > { %v4220_v12 = vsel %vm1571_vm0, %v7221_v6, 0.0  ;;  %v7223_v30 = vpop.eup %7222 }
0x173d   : > { %4212 = vadd.xlane.f32.xlu0 %v4211_v41  ;;  %4221 = vadd.xlane.f32.xlu1 %v4220_v12  ;;  %v4214_v20 = vsel %vm1571_vm0, %v7223_v30, 0.0 }
0x1741   : > { %4215 = vadd.xlane.f32.xlu1 %v4214_v20 }
0x1752   : > { %4298 = vrot.lane.b32.xlu1 %v8569_v18, %s9291_s21 }
0x1753   : > { %4233 = vrot.lane.b32.xlu0 %v8584_v52, %s9290_s28 }
0x1756   : > { %4300 = vrot.lane.b32.xlu1 %v8582_v50, %s9291_s21 }
0x1757   : > { %4294 = vrot.lane.b32.xlu0 %v8567_v40, %s9291_s21 }
0x175a   : > { %4296 = vrot.lane.b32.xlu1 %v8578_v21, %s9291_s21 }
0x17c6   : > { %v4219_v43 = vpop.xlane.xlu0 %4218 }
0x17ca   : > { %v4213_v60 = vpop.xlane.xlu0 %4212  ;;  %v4222_v32 = vpop.xlane.xlu1 %4221 }
0x17cb   : > { %7224 = vrcp.f32 %v4222_v32 }
0x17cc   : > { %7226 = vrcp.f32 %v4213_v60 }
0x17cd   : > { %7228 = vrcp.f32 %v4219_v43 }
0x17ce   : > { %v4234_v18 = vpop.permute.xlu0 %4233  ;;  %v4216_v61 = vpop.xlane.xlu1 %4215 }
0x17cf   : > { %7230 = vrcp.f32 %v4216_v61  ;;  %6593 = vmatprep.subr.bf16.mxu1 %v4234_v18 }
0x17d0   : > { %6594 = vmatpush3.bf16.msra.mxu1 %v4234_v18 }
0x17d1   : > { %6595 = vmatprep.subr.bf16.mxu1 %v4236_v47 }
0x17d2   : > { %v4299_v50 = vpop.permute.xlu1 %4298  ;;  %v4295_v53 = vpop.permute.xlu0 %4294 }
0x17d3   : > { %v4309_v59 = vsel %vm1571_vm0, %v4299_v50, 0 }
0x17d4   : > { %6596 = vmatpush3.bf16.msra.mxu1 %v4236_v47 }
0x17d5   : > { %6651 = vmatprep.subr.msk.bf16.mxu1 %vm1571_vm0, %v4299_v50  ;;  %v7225_v40 = vpop.eup %7224 }
0x17d6   : > { %v7227_v35 = vpop.eup %7226  ;;  %v4230_v49 = vmul.f32 %v7225_v40, %v7221_v6  ;;  %v4301_v14 = vpop.permute.xlu1 %4300 }
0x17d7   : > { %v7229_v21 = vpop.eup %7228  ;;  %v4227_v16 = vmul.f32 %v7227_v35, %v7219_v42  ;;  %v4312_v54 = vsel %vm1571_vm0, %v4301_v14, 0 }
0x17d8   : > { %v4229_v4 = vmul.f32 %v7229_v21, %v7217_v37 }
0x17d9   : > { %v7231_v33 = vpop.eup %7230 }
0x17da   : > { %v4228_v24 = vmul.f32 %v7231_v33, %v7223_v30  ;;  %v4232_v5 = vpack.c.bf16 %v4230_v49, %v4229_v4  ;;  %v4297_v56 = vpop.permute.xlu1 %4296 }
0x17dc   : > { %v4231_v55 = vpack.c.bf16 %v4228_v24, %v4227_v16 }
0x17de   : > { %6597 = vmatprep.mubr.msk.bf16.mxu1 %vm1571_vm0, %v4231_v55 }
0x17df   : > { %6598 = vmatmul.mubr.msk.bf16.vlgmr.msra.gmra.mrb[76].mxu1 %vm1571_vm0, %v4232_v5 }
0x17e0   : > { %6602 = vmatpush3.bf16.xpose.msra.mxu1 %v4309_v59  ;;  %6605 = vmatprep.mubr.msk.bf16.mxu1 %vm1571_vm0, %v4295_v53 }
0x17e1   : > { %6652 = vmatprep.subr.msk.bf16.mxu1 %vm1571_vm0, %v4301_v14 }
0x17e8   : > { %6604 = vmatpush3.bf16.xpose.msra.mxu1 %v4312_v54 }
0x17ef   : > { %6606 = vmatmul.mubr.msk.bf16.vlgmr.msra.gmra.mrb[80].mxu1 %vm1571_vm0, %v4297_v56 }
0x17f0   : > { %4984 = vmatprep.mubr.bf16.mxu1 %v7356_v22 }
0x18b2   : > { %v6599_v7 = vpop.f32.mrb[76].mxu1 }
0x18b3   : > { %v4279_v45 = vpop.f32.mrb[77].mxu1 }
0x18b4   : > { %v6600_v36 = vpop.f32.mrb[78].mxu1 }
0x18b5   : > { %v6743_v39 = vpack.i.bf16 %v6600_v36, %v6599_v7  ;;  %v4282_v13 = vpop.f32.mrb[79].mxu1 }
0x18b6   : > { %v6738_v31 = vpack.i.bf16 %v4282_v13, %v4279_v45 }
0x18c2   : > { %v6607_v28 = vpop.f32.mrb[80].mxu1 }
0x18c3   : > { %v4348_v2 = vpop.f32.mrb[81].mxu1  ;;  %v4365_v17 = vmul.f32 0.17677669, %v6607_v28 }
0x18c4   : > { %v4363_v0 = vmul.f32 0.17677669, %v4348_v2  ;;  %v6608_v34 = vpop.f32.mrb[82].mxu1 }
0x18c5   : > { %v4351_v37 = vpop.f32.mrb[83].mxu1  ;;  %v4369_v6 = vadd.f32 %v4365_v17, %v7845_v44  ;;  %v4366_v41 = vmul.f32 0.17677669, %v6608_v34  ;;  %v6976_v17 = vld [vmem:[%s9239_s5 + $0x40] sm:$0xff]   ;;  %v6978_v34 = vld [vmem:[%s9239_s5 + $0x50] sm:$0xff]  }
0x18c6   : > { %v4367_v19 = vadd.f32 %v4363_v0, %v7845_v44  ;;  %v4364_v42 = vmul.f32 0.17677669, %v4351_v37  ;;  %v6977_v0 = vld [vmem:[%s9239_s5 + $0x48] sm:$0xff]   ;;  %v6979_v37 = vld [vmem:[%s9239_s5 + $0x58] sm:$0xff]  }
0x18c7   : > { %v4370_v47 = vadd.f32 %v4366_v41, %v7845_v44  ;;  %v4377_v43 = vsel %vm1571_vm0, %v4369_v6, -inf  ;;  %v6983_v41 = vld [vmem:[%s9239_s5 + $0x78] sm:$0xff]  }
0x18c8   : > { %v4368_v12 = vadd.f32 %v4364_v42, %v7845_v44  ;;  %v4371_v30 = vsel %vm1571_vm0, %v4367_v19, -inf  ;;  %v6981_v42 = vld [vmem:[%s9239_s5 + $0x68] sm:$0xff]  }
0x18c9   : > { %4372 = vmax.xlane.f32.xlu0 %v4371_v30  ;;  %v4380_v60 = vsel %vm1571_vm0, %v4370_v47, -inf }
0x18ca   : > { %v4374_v20 = vsel %vm1571_vm0, %v4368_v12, -inf }
0x18cb   : > { %4375 = vmax.xlane.f32.xlu1 %v4374_v20 }
0x18cd   : > { %4378 = vmax.xlane.f32.xlu0 %v4377_v43 }
0x18d1   : > { %4381 = vmax.xlane.f32.xlu0 %v4380_v60 }
0x1956   : > { %v4373_v32 = vpop.xlane.xlu0 %4372 }
0x1957   : > { %v4383_v18 = vsub.f32 %v4367_v19, %v4373_v32  ;;  %v6980_v19 = vld [vmem:[%s9239_s5 + $0x60] sm:$0xff]  }
0x1958   : > { %v4376_v61 = vpop.xlane.xlu1 %4375 }
0x1959   : > { %v4387_v35 = vmul.f32 1.442695, %v4383_v18  ;;  %v4384_v21 = vsub.f32 %v4368_v12, %v4376_v61 }
0x195a   : > { %v4379_v50 = vpop.xlane.xlu0 %4378 }
0x195b   : > { %v4385_v40 = vsub.f32 %v4369_v6, %v4379_v50  ;;  %v4389_v24 = vmul.f32 1.442695, %v4384_v21  ;;  %v6982_v6 = vld [vmem:[%s9239_s5 + $0x70] sm:$0xff]  }
0x195d   : > { %v4391_v33 = vmul.f32 1.442695, %v4385_v40 }
0x195e   : > { %v4382_v49 = vpop.xlane.xlu0 %4381 }
0x195f   : > { %7232 = vpow2.f32 %v4391_v33  ;;  %v4386_v16 = vsub.f32 %v4370_v47, %v4382_v49 }
0x1960   : > { %7234 = vpow2.f32 %v4387_v35 }
0x1961   : > { %v4393_v44 = vmul.f32 1.442695, %v4386_v16 }
0x1963   : > { %7236 = vpow2.f32 %v4393_v44 }
0x1964   : > { %7238 = vpow2.f32 %v4389_v24 }
0x1969   : > { %v7233_v4 = vpop.eup %7232 }
0x196a   : > { %v4401_v55 = vsel %vm1571_vm0, %v7233_v4, 0.0  ;;  %v7235_v5 = vpop.eup %7234 }
0x196b   : > { %4402 = vadd.xlane.f32.xlu0 %v4401_v55  ;;  %v4395_v59 = vsel %vm1571_vm0, %v7235_v5, 0.0 }
0x196d   : > { %v7237_v53 = vpop.eup %7236 }
0x196e   : > { %v4404_v14 = vsel %vm1571_vm0, %v7237_v53, 0.0  ;;  %v7239_v54 = vpop.eup %7238 }
0x196f   : > { %4396 = vadd.xlane.f32.xlu0 %v4395_v59  ;;  %4405 = vadd.xlane.f32.xlu1 %v4404_v14  ;;  %v4398_v56 = vsel %vm1571_vm0, %v7239_v54, 0.0 }
0x1973   : > { %4399 = vadd.xlane.f32.xlu1 %v4398_v56 }
0x1984   : > { %4419 = vrot.lane.b32.xlu1 %v8580_v38, %s9291_s21 }
0x1985   : > { %4417 = vrot.lane.b32.xlu0 %v8584_v52, %s9291_s21 }
0x1988   : > { %6729 = vrot.lane.b32.xlu1 %v6728_v29, %s9291_s21 }
0x1989   : > { %6739 = vrot.lane.b32.xlu0 %v6738_v31, %s9290_s28 }
0x198c   : > { %6734 = vrot.lane.b32.xlu1 %v6733_v23, %s9291_s21 }
0x1990   : > { %6744 = vrot.lane.b32.xlu1 %v6743_v39, %s9290_s28  ;;  %s5617_s28 = sshll.u32 %s597_s22, 4  ;;  %s9194_s28 = int_to_ptr.vmem [resolvable:$true] %s5617_s28 }
0x1991   : > { %p7299_p0 = scmp.lt.s32.totalorder %s9194_s28, %s7297_s20 }
0x19f8   : > { %v4403_v7 = vpop.xlane.xlu0 %4402 }
0x19fc   : > { %v4397_v45 = vpop.xlane.xlu0 %4396  ;;  %v4406_v38 = vpop.xlane.xlu1 %4405 }
0x19fd   : > { %7240 = vrcp.f32 %v4406_v38 }
0x19fe   : > { %7242 = vrcp.f32 %v4397_v45 }
0x19ff   : > { %7244 = vrcp.f32 %v4403_v7 }
0x1a00   : > { %v4418_v52 = vpop.permute.xlu0 %4417  ;;  %v4400_v36 = vpop.xlane.xlu1 %4399 }
0x1a01   : > { %7246 = vrcp.f32 %v4400_v36  ;;  %6609 = vmatprep.subr.bf16.mxu0 %v4418_v52 }
0x1a02   : > { %6610 = vmatpush3.bf16.msra.mxu0 %v4418_v52 }
0x1a04   : > { %v4420_v48 = vpop.permute.xlu1 %4419  ;;  %v6740_v35 = vpop.permute.xlu0 %6739 }
0x1a05   : > { %6611 = vmatprep.subr.bf16.mxu0 %v4420_v48  ;;  %v6742_v24 = vunpack.i.h.bf16 %v6740_v35  ;;  %v6741_v44 = vunpack.i.l.bf16 %v6740_v35 }
0x1a06   : > { %6612 = vmatpush3.bf16.msra.mxu0 %v4420_v48 }
0x1a07   : > { %v7241_v26 = vpop.eup %7240  ;;  %6617 = vmatprep.subr.bf16.mxu0 %v6976_v17 }
0x1a08   : > { %v7243_v29 = vpop.eup %7242  ;;  %v4414_v23 = vmul.f32 %v7241_v26, %v7237_v53  ;;  %v6730_v32 = vpop.permute.xlu1 %6729 }
0x1a09   : > { %v7245_v9 = vpop.eup %7244  ;;  %v4411_v39 = vmul.f32 %v7243_v29, %v7235_v5  ;;  %v6732_v50 = vunpack.i.h.bf16 %v6730_v32  ;;  %v6731_v40 = vunpack.i.l.bf16 %v6730_v32 }
0x1a0a   : > { %v4413_v31 = vmul.f32 %v7245_v9, %v7233_v4  ;;  %v5950_v9 = vld [vmem:[%s9240_s6 + $0x1] ss:$0 sm:$0xff] }
0x1a0b   : > { %v7247_v46 = vpop.eup %7246  ;;  %v4527_v4 = vsel %vm1571_vm0, %v8630_v25, %v6732_v50  ;;  %v4526_v55 = vsel %vm1571_vm0, %v8626_v8, %v6731_v40 }
0x1a0c   : > { %v4412_v13 = vmul.f32 %v7247_v46, %v7239_v54  ;;  %v4416_v2 = vpack.c.bf16 %v4414_v23, %v4413_v31  ;;  %v6735_v18 = vpop.permute.xlu1 %6734  ;;  %v4530_v36 = vsel %vm2352_vm2, %v4526_v55, %v6741_v44  ;;  %v6999_v44 = vld [vmem:[%s9243_s9 + $0x148] ss:$16 sps:$4 sm:$0xff]   ;;  %v7002_v55 = vld [vmem:[%s9243_s9 + $0x160] ss:$16 sps:$4 sm:$0xff]  }
0x1a0d   : > { %v6737_v21 = vunpack.i.h.bf16 %v6735_v18  ;;  %v6736_v33 = vunpack.i.l.bf16 %v6735_v18 }
0x1a0e   : > { %v4415_v28 = vpack.c.bf16 %v4412_v13, %v4411_v39 }
0x1a0f   : > { %v4529_v53 = vsel %vm1571_vm0, %v8628_v15, %v6737_v21  ;;  %v4528_v59 = vsel %vm1571_vm0, %v8624_v58, %v6736_v33  ;;  %v4531_v15 = vsel %vm2352_vm2, %v4527_v4, %v6742_v24  ;;  %v6996_v24 = vld [vmem:[%s9243_s9 + $0x140] ss:$16 sps:$4 sm:$0xff]   ;;  %v7007_v4 = vld [vmem:[%s9243_s9 + $0x16c] ss:$16 sps:$4 sm:$0xff]  }
0x1a10   : > { %6613 = vmatprep.mubr.msk.bf16.mxu0 %vm1571_vm0, %v4415_v28  ;;  %v6745_v61 = vpop.permute.xlu1 %6744 }
0x1a11   : > { %6614 = vmatmul.mubr.msk.bf16.vlgmr.msra.gmra.mrb[60].mxu0 %vm1571_vm0, %v4416_v2  ;;  %v6747_v49 = vunpack.i.h.bf16 %v6745_v61  ;;  %v6746_v16 = vunpack.i.l.bf16 %v6745_v61 }
0x1a12   : > { %6618 = vmatpush3.bf16.msra.mxu0 %v6976_v17 }
0x1a13   : > { %6619 = vmatprep.subr.bf16.mxu0 %v6977_v0  ;;  %v4532_v7 = vsel %vm2352_vm2, %v4528_v59, %v6746_v16  ;;  %v4533_v45 = vsel %vm2352_vm2, %v4529_v53, %v6747_v49  ;;  %v6998_v49 = vld [vmem:[%s9243_s9 + $0x144] ss:$16 sps:$4 sm:$0xff]   ;;  %v7001_v16 = vld [vmem:[%s9243_s9 + $0x14c] ss:$16 sps:$4 sm:$0xff]  }
0x1a14   : > { %v7010_v53 = vld [vmem:[%s9243_s9 + $0x184] ss:$16 sps:$4 sm:$0xff]   ;;  %v7013_v59 = vld [vmem:[%s9243_s9 + $0x18c] ss:$16 sps:$4 sm:$0xff]  }
0x1a16   : > { %6620 = vmatpush3.bf16.msra.mxu0 %v6977_v0 }
0x1a17   : > { %6621 = vmatprep.subr.bf16.mxu0 %v6978_v34 }
0x1a1a   : > { %6622 = vmatpush3.bf16.msra.mxu0 %v6978_v34 }
0x1a1b   : > { %6623 = vmatprep.subr.bf16.mxu0 %v6979_v37 }
0x1a1e   : > { %6624 = vmatpush3.bf16.msra.mxu0 %v6979_v37 }
0x1a1f   : > { %6625 = vmatprep.subr.bf16.mxu0 %v6980_v19 }
0x1a22   : > { %6626 = vmatpush3.bf16.msra.mxu0 %v6980_v19  ;;  %v6984_v19 = vld [vmem:[%s9243_s9 + $0x100] ss:$16 sps:$4 sm:$0xff]  }
0x1a23   : > { %6627 = vmatprep.subr.bf16.mxu0 %v6981_v42 }
0x1a26   : > { %6628 = vmatpush3.bf16.msra.mxu0 %v6981_v42  ;;  %v6986_v42 = vld [vmem:[%s9243_s9 + $0x104] ss:$16 sps:$4 sm:$0xff]  }
0x1a27   : > { %6629 = vmatprep.subr.bf16.mxu0 %v6982_v6  ;;  %4952 = vmatprep.subr.bf16.mxu1 %v6986_v42 }
0x1a28   : > { %4953 = vmatpush1.bf16.msra.mxu1 %v6984_v19  ;;  %v8907_v19 = vld [vmem:[%s9247_s13 + $0x1] ss:$0 sm:$0xff] }
0x1a2a   : > { %6630 = vmatpush3.bf16.msra.mxu0 %v6982_v6  ;;  %v6995_v6 = vld [vmem:[%s9243_s9 + $0x12c] ss:$16 sps:$4 sm:$0xff]  }
0x1a2b   : > { %6631 = vmatprep.subr.bf16.mxu0 %v6983_v41 }
0x1a2e   : > { %6632 = vmatpush3.bf16.msra.mxu0 %v6983_v41  ;;  %v6990_v41 = vld [vmem:[%s9243_s9 + $0x120] ss:$16 sps:$4 sm:$0xff]  }
0x1ae4   : > { %v6615_v12 = vpop.f32.mrb[60].mxu0 }
0x1ae5   : > { %v4463_v30 = vpop.f32.mrb[61].mxu0 }
0x1ae6   : > { %v6616_v20 = vpop.f32.mrb[62].mxu0 }
0x1ae7   : > { %v6753_v47 = vpack.i.bf16 %v6616_v20, %v6615_v12  ;;  %v4466_v43 = vpop.f32.mrb[63].mxu0  ;;  %v6993_v12 = vld [vmem:[%s9243_s9 + $0x128] ss:$16 sps:$4 sm:$0xff]  }
0x1ae8   : > { %v6748_v60 = vpack.i.bf16 %v4466_v43, %v4463_v30 }
0x1ae9   : > { %6754 = vrot.lane.b32.xlu1 %v6753_v47, %s9289_s24 }
0x1aea   : > { %6749 = vrot.lane.b32.xlu0 %v6748_v60, %s9289_s24  ;;  %s7292_s24 = scalar_lea.vmem %s9194_s28, 16 }
0x1aeb   : > { %p7293_p11 = scmp.ne.s32.totalorder %s9194_s28, %s7292_s24  ;;  %p7300_p1 = scmp.lt.s32.totalorder %s7298_s2, %s7292_s24 }
0x1aed   : > { %p7294_p12 = pnand %p7293_p11, %p7500_p5  ;;  %p7301_p2 = por %p7300_p1, %p7299_p0 }
0x1aef   : > { %p7295_p13 = pneg %p7294_p12 }
0x1af1   : > { %p7302_p3 = pnand %p7301_p2, %p7295_p13 }
0x1b5b   : > { %v6755_v5 = vpop.permute.xlu1 %6754 }
0x1b5c   : > { %v6757_v14 = vunpack.i.h.bf16 %v6755_v5  ;;  %v6756_v54 = vunpack.i.l.bf16 %v6755_v5  ;;  %v6750_v56 = vpop.permute.xlu0 %6749  ;;  %v7005_v5 = vld [vmem:[%s9243_s9 + $0x168] ss:$16 sps:$4 sm:$0xff]  }
0x1b5d   : > { %v6752_v38 = vunpack.i.h.bf16 %v6750_v56  ;;  %v6751_v52 = vunpack.i.l.bf16 %v6750_v56  ;;  %v7016_v56 = vld [vmem:[%s9243_s9 + $0x1a4] ss:$16 sps:$4 sm:$0xff]  }
0x1b5e   : > { %v4536_v25 = vsel %vm2357_vm3, %v4532_v7, %v6756_v54  ;;  %v4537_v8 = vsel %vm2357_vm3, %v4533_v45, %v6757_v14  ;;  %v7008_v14 = vld [vmem:[%s9243_s9 + $0x180] ss:$16 sps:$4 sm:$0xff]   ;;  %v7011_v54 = vld [vmem:[%s9243_s9 + $0x188] ss:$16 sps:$4 sm:$0xff]   ;;  %v7019_v7 = vld [vmem:[%s9243_s9 + $0x1ac] ss:$16 sps:$4 sm:$0xff]  }
0x1b5f   : > { %v4539_v48 = vpack.c.bf16 %v4537_v8, %v4536_v25  ;;  %v4534_v58 = vsel %vm2357_vm3, %v4530_v36, %v6751_v52  ;;  %v4535_v26 = vsel %vm2357_vm3, %v4531_v15, %v6752_v38  ;;  %v7014_v45 = vld [vmem:[%s9243_s9 + $0x1a0] ss:$16 sps:$4 sm:$0xff]   ;;  %v7017_v38 = vld [vmem:[%s9243_s9 + $0x1a8] ss:$16 sps:$4 sm:$0xff]   ;;  %v7022_v52 = vld [vmem:[%s9243_s9 + $0x1c4] ss:$16 sps:$4 sm:$0xff]  }
0x1b60   : > { %v4538_v29 = vpack.c.bf16 %v4535_v26, %v4534_v58  ;;  %v7025_v25 = vld [vmem:[%s9243_s9 + $0x1cc] ss:$16 sps:$4 sm:$0xff]   ;;  %v7020_v8 = vld [vmem:[%s9243_s9 + $0x1c0] ss:$16 sps:$4 sm:$0xff]   ;;  %v7023_v36 = vld [vmem:[%s9243_s9 + $0x1c8] ss:$16 sps:$4 sm:$0xff]  }
0x1b61   : > { %v7028_v15 = vld [vmem:[%s9243_s9 + $0x1e4] ss:$16 sps:$4 sm:$0xff]   ;;  %v7026_v58 = vld [vmem:[%s9243_s9 + $0x1e0] ss:$16 sps:$4 sm:$0xff]   ;;  %v7029_v26 = vld [vmem:[%s9243_s9 + $0x1e8] ss:$16 sps:$4 sm:$0xff]  }
0x1b62   : > { %6633 = vmatprep.mubr.bf16.mxu0 %v4538_v29 }
0x1b63   : > { %6634 = vmatmul.mubr.bf16.vlgmr.msra.gmra.mrb[64].mxu0 %v4539_v48  ;;  %v7031_v48 = vld [vmem:[%s9243_s9 + $0x1ec] ss:$16 sps:$4 sm:$0xff]  }
0x1b64   : > { %5037 = vmatprep.mubr.bf16.mxu0 %v7356_v22 }
0x1c36   : > { %v6635_v46 = vpop.f32.mrb[64].mxu0 }
0x1c37   : > { %v4656_v23 = vadd.f32 %v6635_v46, %v5950_v9  ;;  %v4647_v39 = vpop.f32.mrb[65].mxu0 }
0x1c38   : > { %v4648_v13 = vadd.f32 %v5950_v9, %v4647_v39  ;;  %v6636_v31 = vpop.f32.mrb[66].mxu0 }
0x1c39   : > { %v4650_v28 = vpop.f32.mrb[67].mxu0  ;;  %v4659_v0 = vadd.f32 %v6636_v31, %v5950_v9  ;;  %v4664_v33 = vadd.f32 %v4656_v23, %v8452_v57  ;;  %v7004_v57 = vld [vmem:[%s9243_s9 + $0x164] ss:$16 sps:$4 sm:$0xff]  }
0x1c3a   : > { %v8784_v2 = vadd.f32 %v4648_v13, %v8444_v11  ;;  %v4651_v17 = vadd.f32 %v5950_v9, %v4650_v28  ;;  %v6987_v11 = vld [vmem:[%s9243_s9 + $0x108] ss:$16 sps:$4 sm:$0xff]  }
0x1c3b   : > { %v4665_v37 = vadd.f32 %v4659_v0, %v8456_v51  ;;  %v6992_v51 = vld [vmem:[%s9243_s9 + $0x124] ss:$16 sps:$4 sm:$0xff]  }
0x1c3c   : > { %v4663_v34 = vadd.f32 %v4651_v17, %v8448_v27  ;;  %4670 = vadd.xlane.f32.xlu0 %v8784_v2  ;;  %v6989_v27 = vld [vmem:[%s9243_s9 + $0x10c] ss:$16 sps:$4 sm:$0xff]   ;;  %4954 = vmatprep.subr.bf16.mxu1 %v6992_v51  ;;  %v8914_v51 = vld [vmem:[%s9248_s14 + $0x1] ss:$0 sm:$0xff] }
0x1c3d   : > { %5005 = vmatprep.subr.bf16.mxu0 %v6989_v27  ;;  %4955 = vmatpush1.bf16.msra.mxu1 %v6990_v41 }
0x1c3e   : > { %4672 = vadd.xlane.f32.xlu1 %v4663_v34  ;;  %5006 = vmatpush1.bf16.msra.mxu0 %v6987_v11 }
0x1c3f   : > { %5007 = vmatprep.subr.bf16.mxu0 %v6995_v6  ;;  %4956 = vmatprep.subr.bf16.mxu1 %v6998_v49  ;;  %v7044_v49 = vld [vmem:[%s9245_s11 + $0x158] sm:$0xff]  }
0x1c41   : > { %4957 = vmatpush1.bf16.msra.mxu1 %v6996_v24  ;;  %v7046_v24 = vld [vmem:[%s9245_s11 + $0x118] sm:$0xff]  }
0x1c42   : > { %4676 = vadd.xlane.f32.xlu1 %v4665_v37  ;;  %5008 = vmatpush1.bf16.msra.mxu0 %v6993_v12 }
0x1c43   : > { %5009 = vmatprep.subr.bf16.mxu0 %v7001_v16  ;;  %4958 = vmatprep.subr.bf16.mxu1 %v7004_v57  ;;  %v7045_v16 = vld [vmem:[%s9245_s11 + $0x1d8] sm:$0xff]   ;;  %v7048_v57 = vld [vmem:[%s9245_s11 + $0x160] sm:$0xff]  }
0x1c45   : > { %4959 = vmatpush1.bf16.msra.mxu1 %v7002_v55  ;;  %v7050_v55 = vld [vmem:[%s9245_s11 + $0x120] sm:$0xff]  }
0x1c46   : > { %5010 = vmatpush1.bf16.msra.mxu0 %v6999_v44  ;;  %4960 = vmatprep.subr.bf16.mxu1 %v7010_v53  ;;  %v7047_v44 = vld [vmem:[%s9245_s11 + $0x198] sm:$0xff]   ;;  %v7052_v53 = vld [vmem:[%s9245_s11 + $0x168] sm:$0xff]  }
0x1c47   : > { %5011 = vmatprep.subr.bf16.mxu0 %v7007_v4  ;;  %v7049_v4 = vld [vmem:[%s9245_s11 + $0x1e0] sm:$0xff]  }
0x1c49   : > { %4961 = vmatpush1.bf16.msra.mxu1 %v7008_v14  ;;  %v7054_v14 = vld [vmem:[%s9245_s11 + $0x128] sm:$0xff]  }
0x1c4a   : > { %5012 = vmatpush1.bf16.msra.mxu0 %v7005_v5  ;;  %4962 = vmatprep.subr.bf16.mxu1 %v7016_v56  ;;  %v7051_v5 = vld [vmem:[%s9245_s11 + $0x1a0] sm:$0xff]   ;;  %v7056_v56 = vld [vmem:[%s9245_s11 + $0x170] sm:$0xff]  }
0x1c4b   : > { %5013 = vmatprep.subr.bf16.mxu0 %v7013_v59  ;;  %v7053_v59 = vld [vmem:[%s9245_s11 + $0x1e8] sm:$0xff]  }
0x1c4d   : > { %4963 = vmatpush1.bf16.msra.mxu1 %v7014_v45  ;;  %v7058_v45 = vld [vmem:[%s9245_s11 + $0x130] sm:$0xff]  }
0x1c4e   : > { %5014 = vmatpush1.bf16.msra.mxu0 %v7011_v54  ;;  %4964 = vmatprep.subr.bf16.mxu1 %v7022_v52  ;;  %v7055_v54 = vld [vmem:[%s9245_s11 + $0x1a8] sm:$0xff]  }
0x1c4f   : > { %5015 = vmatprep.subr.bf16.mxu0 %v7019_v7  ;;  %v7057_v7 = vld [vmem:[%s9245_s11 + $0x1f0] sm:$0xff]  }
0x1c51   : > { %4965 = vmatpush1.bf16.msra.mxu1 %v7020_v8  ;;  %v7061_v8 = vld [vmem:[%s9245_s11 + $0x1f8] sm:$0xff]  }
0x1c52   : > { %5016 = vmatpush1.bf16.msra.mxu0 %v7017_v38  ;;  %4966 = vmatprep.subr.bf16.mxu1 %v7028_v15  ;;  %v7059_v38 = vld [vmem:[%s9245_s11 + $0x1b0] sm:$0xff]   ;;  %v7063_v15 = vld [vmem:[%s9245_s11 + $0x1b8] sm:$0xff]  }
0x1c53   : > { %5017 = vmatprep.subr.bf16.mxu0 %v7025_v25  ;;  %v7060_v25 = vld [vmem:[%s9245_s11 + $0x178] sm:$0xff]  }
0x1c55   : > { %4967 = vmatpush1.bf16.msra.mxu1 %v7026_v58 }
0x1c56   : > { %5018 = vmatpush1.bf16.msra.mxu0 %v7023_v36  ;;  %v7062_v36 = vld [vmem:[%s9245_s11 + $0x138] sm:$0xff]  }
0x1c57   : > { %5019 = vmatprep.subr.bf16.mxu0 %v7031_v48 }
0x1c5a   : > { %5020 = vmatpush1.bf16.msra.mxu0 %v7029_v26 }
0x1cc9   : > { %v4671_v30 = vpop.xlane.xlu0 %4670 }
0x1cca   : > { %v4678_v20 = vmul.f32 0.0078125, %v4671_v30 }
0x1ccb   : > { %v4673_v47 = vpop.xlane.xlu1 %4672 }
0x1ccc   : > { %v8814_v43 = vsub.f32 %v8784_v2, %v4678_v20  ;;  %v4679_v60 = vmul.f32 0.0078125, %v4673_v47  ;;  %v7032_v20 = vld [vmem:[%s9245_s11 + $0x140] sm:$0xff]  }
0x1ccd   : > { %v7033_v47 = vld [vmem:[%s9245_s11 + $0x1c0] sm:$0xff]   ;;  %6373 = vmatprep.subr.bf16.mxu1 %v7032_v20 }
0x1cce   : > { %v8816_v32 = vsub.f32 %v4663_v34, %v4679_v60  ;;  %v4686_v18 = vmul.f32 %v8814_v43, %v8814_v43  ;;  %v7035_v60 = vld [vmem:[%s9245_s11 + $0x180] sm:$0xff]   ;;  %6401 = vmatprep.subr.bf16.mxu0 %v7033_v47 }
0x1ccf   : > { %v4677_v61 = vpop.xlane.xlu1 %4676 }
0x1cd0   : > { %v4681_v50 = vmul.f32 0.0078125, %v4677_v61  ;;  %4690 = vadd.xlane.f32.xlu0 %v4686_v18  ;;  %v4687_v35 = vmul.f32 %v8816_v32, %v8816_v32  ;;  %v7038_v18 = vld [vmem:[%s9245_s11 + $0x108] sm:$0xff]  }
0x1cd1   : > { %v7039_v61 = vld [vmem:[%s9245_s11 + $0x188] sm:$0xff]  }
0x1cd2   : > { %v8820_v40 = vsub.f32 %v4665_v37, %v4681_v50  ;;  %v7040_v50 = vld [vmem:[%s9245_s11 + $0x150] sm:$0xff]  }
0x1cd4   : > { %4692 = vadd.xlane.f32.xlu0 %v4687_v35  ;;  %v4689_v21 = vmul.f32 %v8820_v40, %v8820_v40  ;;  %v7041_v35 = vld [vmem:[%s9245_s11 + $0x1d0] sm:$0xff]  }
0x1cd6   : > { %4696 = vadd.xlane.f32.xlu1 %v4689_v21  ;;  %v7042_v21 = vld [vmem:[%s9245_s11 + $0x110] sm:$0xff]  }
0x1cd8   : > { %4674 = vadd.xlane.f32.xlu0 %v4664_v33 }
0x1d5d   : > { %v4691_v29 = vpop.xlane.xlu0 %4690 }
0x1d5e   : > { %v4698_v9 = vmul.f32 0.0078125, %v4691_v29 }
0x1d60   : > { %v4702_v46 = vadd.f32 1e-12, %v4698_v9 }
0x1d61   : > { %v4693_v23 = vpop.xlane.xlu0 %4692 }
0x1d62   : > { %7248 = vrsqrt.f32 %v4702_v46  ;;  %v4699_v39 = vmul.f32 0.0078125, %v4693_v23 }
0x1d63   : > { %v4697_v52 = vpop.xlane.xlu1 %4696 }
0x1d64   : > { %v4703_v13 = vadd.f32 1e-12, %v4699_v39  ;;  %v4701_v48 = vmul.f32 0.0078125, %v4697_v52 }
0x1d65   : > { %v4675_v31 = vpop.xlane.xlu0 %4674 }
0x1d66   : > { %7250 = vrsqrt.f32 %v4703_v13  ;;  %v4680_v28 = vmul.f32 0.0078125, %v4675_v31  ;;  %v4705_v58 = vadd.f32 1e-12, %v4701_v48 }
0x1d68   : > { %v8899_v17 = vsub.f32 %v4664_v33, %v4680_v28  ;;  %v7043_v33 = vld [vmem:[%s9245_s11 + $0x190] sm:$0xff]   ;;  %7252 = vrsqrt.f32 %v4705_v58 }
0x1d6a   : > { %v4688_v0 = vmul.f32 %v8899_v17, %v8899_v17 }
0x1d6c   : > { %v7249_v34 = vpop.eup %7248  ;;  %4694 = vadd.xlane.f32.xlu0 %v4688_v0 }
0x1d6d   : > { %v4710_v37 = vmul.f32 %v7249_v34, %v8814_v43  ;;  %v7034_v43 = vld [vmem:[%s9245_s11 + $0x100] sm:$0xff]  }
0x1d6f   : > { %v4720_v27 = vmul.f32 %v8907_v19, %v4710_v37 }
0x1d70   : > { %v7251_v42 = vpop.eup %7250 }
0x1d71   : > { %v4711_v11 = vmul.f32 %v7251_v42, %v8816_v32  ;;  %v4730_v41 = vadd.f32 %v8914_v51, %v4720_v27  ;;  %v7037_v32 = vld [vmem:[%s9245_s11 + $0x1c8] sm:$0xff]   ;;  %v5995_v42 = vld [vmem:[%s9244_s10 + $0x4] sm:$0xf] }
0x1d72   : > { %v7253_v46 = vpop.eup %7252 }
0x1d73   : > { %v4721_v6 = vmul.f32 %v8907_v19, %v4711_v11  ;;  %v4713_v23 = vmul.f32 %v7253_v46, %v8820_v40  ;;  %v9027_v40 = vrot.slane %v5995_v42, %v7803_v62  ;;  %v9033_v11 = vrot.slane %v5995_v42, %v7809_v1 }
0x1d75   : > { %v4731_v12 = vadd.f32 %v8914_v51, %v4721_v6  ;;  %v4723_v31 = vmul.f32 %v8907_v19, %v4713_v23 }
0x1d77   : > { %v4734_v30 = vpack.c.bf16 %v4731_v12, %v4730_v41  ;;  %v4733_v34 = vadd.f32 %v8914_v51, %v4723_v31 }
0x1d79   : > { %4985 = vmatmul.mubr.bf16.vlgmr.msra.gmra.mrb[84].mxu1 %v4734_v30  ;;  %5038 = vmatmul.mubr.bf16.vlgmr.msra.gmra.mrb[68].mxu0 %v4734_v30 }
0x1d7a   : > { %4994 = vmatprep.mubr.bf16.mxu1 %v7356_v22  ;;  %5047 = vmatprep.mubr.bf16.mxu0 %v7356_v22  ;;  %v7036_v22 = vld [vmem:[%s9245_s11 + $0x148] sm:$0xff]  }
0x1d7b   : > { %6374 = vmatpush3.bf16.msra.mxu1 %v7034_v43  ;;  %6402 = vmatpush3.bf16.msra.mxu0 %v7035_v60 }
0x1d7c   : > { %6375 = vmatprep.subr.bf16.mxu1 %v7036_v22  ;;  %6403 = vmatprep.subr.bf16.mxu0 %v7037_v32 }
0x1d7f   : > { %6376 = vmatpush3.bf16.msra.mxu1 %v7038_v18  ;;  %6404 = vmatpush3.bf16.msra.mxu0 %v7039_v61 }
0x1d80   : > { %6377 = vmatprep.subr.bf16.mxu1 %v7040_v50  ;;  %6405 = vmatprep.subr.bf16.mxu0 %v7041_v35 }
0x1d83   : > { %6378 = vmatpush3.bf16.msra.mxu1 %v7042_v21  ;;  %6406 = vmatpush3.bf16.msra.mxu0 %v7043_v33 }
0x1d84   : > { %6379 = vmatprep.subr.bf16.mxu1 %v7044_v49  ;;  %6407 = vmatprep.subr.bf16.mxu0 %v7045_v16 }
0x1d87   : > { %6380 = vmatpush3.bf16.msra.mxu1 %v7046_v24  ;;  %6408 = vmatpush3.bf16.msra.mxu0 %v7047_v44 }
0x1d88   : > { %6381 = vmatprep.subr.bf16.mxu1 %v7048_v57  ;;  %6409 = vmatprep.subr.bf16.mxu0 %v7049_v4 }
0x1d8b   : > { %6382 = vmatpush3.bf16.msra.mxu1 %v7050_v55  ;;  %6410 = vmatpush3.bf16.msra.mxu0 %v7051_v5 }
0x1d8c   : > { %6383 = vmatprep.subr.bf16.mxu1 %v7052_v53  ;;  %6411 = vmatprep.subr.bf16.mxu0 %v7053_v59 }
0x1d8f   : > { %6384 = vmatpush3.bf16.msra.mxu1 %v7054_v14  ;;  %6412 = vmatpush3.bf16.msra.mxu0 %v7055_v54 }
0x1d90   : > { %6385 = vmatprep.subr.bf16.mxu1 %v7056_v56  ;;  %6413 = vmatprep.subr.bf16.mxu0 %v7057_v7 }
0x1d93   : > { %6386 = vmatpush3.bf16.msra.mxu1 %v7058_v45  ;;  %6414 = vmatpush3.bf16.msra.mxu0 %v7059_v38 }
0x1d94   : > { %6387 = vmatprep.subr.bf16.mxu1 %v7060_v25  ;;  %6415 = vmatprep.subr.bf16.mxu0 %v7061_v8 }
0x1d97   : > { %6388 = vmatpush3.bf16.msra.mxu1 %v7062_v36  ;;  %6416 = vmatpush3.bf16.msra.mxu0 %v7063_v15 }
0x1df9   : > { %v4695_v26 = vpop.xlane.xlu0 %4694 }
0x1dfa   : > { %v4700_v29 = vmul.f32 0.0078125, %v4695_v26 }
0x1dfc   : > { %v4704_v9 = vadd.f32 1e-12, %v4700_v29 }
0x1dfe   : > { %7254 = vrsqrt.f32 %v4704_v9 }
0x1e08   : > { %v7255_v39 = vpop.eup %7254 }
0x1e09   : > { %v4712_v13 = vmul.f32 %v7255_v39, %v8899_v17  ;;  %v9030_v17 = vrot.slane %v5995_v42, %v7814_v10 }
0x1e0b   : > { %v4722_v28 = vmul.f32 %v8907_v19, %v4712_v13  ;;  %v9037_v19 = vrot.slane %v5995_v42, %v2604_v3 }
0x1e0d   : > { %v4732_v0 = vadd.f32 %v8914_v51, %v4722_v28 }
0x1e0f   : > { %v4735_v37 = vpack.c.bf16 %v4733_v34, %v4732_v0 }
0x1e11   : > { %4995 = vmatmul.mubr.bf16.gmra.mrb[88].mxu1 %v4735_v37  ;;  %5048 = vmatmul.mubr.bf16.gmra.mrb[72].mxu0 %v4735_v37 }
0x1e4c   : > { %v4986_v27 = vpop.f32.mrb[84].mxu1  ;;  %v5039_v51 = vpop.f32.mrb[68].mxu0 }
0x1e4d   : > { %v9040_v6 = vadd.f32 %v4986_v27, %v9027_v40  ;;  %v9043_v41 = vadd.f32 %v5039_v51, %v9030_v17  ;;  %v4988_v62 = vpop.f32.mrb[85].mxu1  ;;  %v5041_v12 = vpop.f32.mrb[69].mxu0 }
0x1e4e   : > { %v9046_v10 = vadd.f32 %v4988_v62, %v9033_v11  ;;  %v9049_v1 = vadd.f32 %v5041_v12, %v9037_v19  ;;  %v4990_v30 = vpop.f32.mrb[86].mxu1  ;;  %v5043_v63 = vpop.f32.mrb[70].mxu0 }
0x1e4f   : > { %v5058_v3 = vmul.f32 %v9040_v6, %v9040_v6  ;;  %v5060_v20 = vmul.f32 %v9043_v41, %v9043_v41  ;;  %v9056_v47 = vadd.f32 %v4990_v30, %v9027_v40  ;;  %v9059_v43 = vadd.f32 %v5043_v63, %v9030_v17  ;;  %v4992_v60 = vpop.f32.mrb[87].mxu1  ;;  %v5045_v22 = vpop.f32.mrb[71].mxu0 }
0x1e50   : > { %v5059_v32 = vmul.f32 %v9046_v10, %v9046_v10  ;;  %v5061_v18 = vmul.f32 %v9049_v1, %v9049_v1  ;;  %v9066_v61 = vadd.f32 %v4992_v60, %v9033_v11  ;;  %v9069_v50 = vadd.f32 %v5045_v22, %v9037_v19 }
0x1e51   : > { %v5074_v35 = vmul.f32 %v5058_v3, %v9040_v6  ;;  %v5076_v21 = vmul.f32 %v5060_v20, %v9043_v41  ;;  %v5062_v33 = vmul.f32 %v9056_v47, %v9056_v47  ;;  %v5064_v49 = vmul.f32 %v9059_v43, %v9059_v43 }
0x1e52   : > { %v5075_v16 = vmul.f32 %v5059_v32, %v9046_v10  ;;  %v5077_v24 = vmul.f32 %v5061_v18, %v9049_v1  ;;  %v5063_v44 = vmul.f32 %v9066_v61, %v9066_v61  ;;  %v5065_v57 = vmul.f32 %v9069_v50, %v9069_v50 }
0x1e53   : > { %v5090_v4 = vmul.f32 0.044715, %v5074_v35  ;;  %v5092_v55 = vmul.f32 0.044715, %v5076_v21  ;;  %v5078_v5 = vmul.f32 %v5062_v33, %v9056_v47  ;;  %v5080_v53 = vmul.f32 %v5064_v49, %v9059_v43 }
0x1e54   : > { %v5091_v59 = vmul.f32 0.044715, %v5075_v16  ;;  %v5093_v14 = vmul.f32 0.044715, %v5077_v24  ;;  %v5079_v54 = vmul.f32 %v5063_v44, %v9066_v61  ;;  %v5081_v56 = vmul.f32 %v5065_v57, %v9069_v50 }
0x1e55   : > { %v5106_v7 = vadd.f32 %v5090_v4, %v9040_v6  ;;  %v5108_v45 = vadd.f32 %v5092_v55, %v9043_v41  ;;  %v5094_v38 = vmul.f32 0.044715, %v5078_v5  ;;  %v5096_v52 = vmul.f32 0.044715, %v5080_v53 }
0x1e56   : > { %v5107_v25 = vadd.f32 %v5091_v59, %v9046_v10  ;;  %v5109_v8 = vadd.f32 %v5093_v14, %v9049_v1  ;;  %v5095_v36 = vmul.f32 0.044715, %v5079_v54  ;;  %v5097_v15 = vmul.f32 0.044715, %v5081_v56 }
0x1e57   : > { %v5122_v48 = vmul.f32 0.7978846, %v5106_v7  ;;  %v5124_v58 = vmul.f32 0.7978846, %v5108_v45  ;;  %v5110_v26 = vadd.f32 %v5094_v38, %v9056_v47  ;;  %v5112_v29 = vadd.f32 %v5096_v52, %v9059_v43 }
0x1e58   : > { %v5123_v9 = vmul.f32 0.7978846, %v5107_v25  ;;  %v5125_v46 = vmul.f32 0.7978846, %v5109_v8  ;;  %v5111_v23 = vadd.f32 %v5095_v36, %v9066_v61  ;;  %v5113_v39 = vadd.f32 %v5097_v15, %v9069_v50 }
0x1e59   : > { %7256 = vtanh.f32 %v5122_v48  ;;  %v5126_v13 = vmul.f32 0.7978846, %v5110_v26  ;;  %v5128_v31 = vmul.f32 0.7978846, %v5112_v29 }
0x1e5a   : > { %7258 = vtanh.f32 %v5124_v58  ;;  %v5127_v28 = vmul.f32 0.7978846, %v5111_v23  ;;  %v5129_v0 = vmul.f32 0.7978846, %v5113_v39 }
0x1e5b   : > { %7260 = vtanh.f32 %v5123_v9 }
0x1e5c   : > { %7262 = vtanh.f32 %v5125_v46 }
0x1e5d   : > { %7264 = vtanh.f32 %v5126_v13 }
0x1e5e   : > { %7266 = vtanh.f32 %v5128_v31 }
0x1e5f   : > { %7268 = vtanh.f32 %v5127_v28 }
0x1e60   : > { %7270 = vtanh.f32 %v5129_v0 }
0x1e63   : > { %v7257_v34 = vpop.eup %7256 }
0x1e64   : > { %v7259_v37 = vpop.eup %7258  ;;  %v5154_v42 = vadd.f32 1.0, %v7257_v34 }
0x1e65   : > { %v7261_v27 = vpop.eup %7260  ;;  %v5156_v51 = vadd.f32 1.0, %v7259_v37 }
0x1e66   : > { %v7263_v62 = vpop.eup %7262  ;;  %v5155_v12 = vadd.f32 1.0, %v7261_v27  ;;  %v5170_v20 = vmul.f32 0.5, %v5154_v42 }
0x1e67   : > { %v7265_v30 = vpop.eup %7264  ;;  %v5157_v63 = vadd.f32 1.0, %v7263_v62  ;;  %v5172_v32 = vmul.f32 0.5, %v5156_v51 }
0x1e68   : > { %v7267_v3 = vpop.eup %7266  ;;  %v5158_v60 = vadd.f32 1.0, %v7265_v30  ;;  %v5171_v49 = vmul.f32 0.5, %v5155_v12  ;;  %v5186_v57 = vmul.f32 %v5170_v20, %v9040_v6 }
0x1e69   : > { %v7269_v22 = vpop.eup %7268  ;;  %v5160_v18 = vadd.f32 1.0, %v7267_v3  ;;  %v5173_v44 = vmul.f32 0.5, %v5157_v63  ;;  %v5188_v5 = vmul.f32 %v5172_v32, %v9043_v41 }
0x1e6a   : > { %v7271_v35 = vpop.eup %7270  ;;  %v5174_v21 = vmul.f32 0.5, %v5158_v60  ;;  %v5159_v33 = vadd.f32 1.0, %v7269_v22  ;;  %v5187_v54 = vmul.f32 %v5171_v49, %v9046_v10 }
0x1e6b   : > { %v5176_v16 = vmul.f32 0.5, %v5160_v18  ;;  %v5161_v24 = vadd.f32 1.0, %v7271_v35  ;;  %v5189_v45 = vmul.f32 %v5173_v44, %v9049_v1 }
0x1e6c   : > { %v5190_v4 = vmul.f32 %v5174_v21, %v9056_v47  ;;  %v5175_v55 = vmul.f32 0.5, %v5159_v33 }
0x1e6d   : > { %v5192_v53 = vmul.f32 %v5176_v16, %v9059_v43  ;;  %v5177_v59 = vmul.f32 0.5, %v5161_v24 }
0x1e6e   : > { %v5202_v14 = vpack.c.bf16 %v5190_v4, %v5186_v57  ;;  %v5191_v56 = vmul.f32 %v5175_v55, %v9066_v61 }
0x1e6f   : > { %v5204_v7 = vpack.c.bf16 %v5192_v53, %v5188_v5  ;;  %v5193_v38 = vmul.f32 %v5177_v59, %v9069_v50 }
0x1e70   : > { %v5203_v52 = vpack.c.bf16 %v5191_v56, %v5187_v54 }
0x1e71   : > { %v5205_v6 = vpack.c.bf16 %v5193_v38, %v5189_v45 }
0x1e72   : > { %5507 = vmatprep.mubr.bf16.mxu1 %v5203_v52 }
0x1e73   : > { %5553 = vmatprep.mubr.bf16.mxu0 %v5205_v6  ;;  %5508 = vmatmul.mubr.bf16.vlgmr.msra.gmra.mrb[92].mxu1 %v5202_v14 }
0x1e74   : > { %5554 = vmatmul.mubr.bf16.vlgmr.msra.gmra.mrb[76].mxu0 %v5204_v7 }
0x1ee4   : > { %v4996_v41 = vpop.f32.mrb[88].mxu1  ;;  %v5049_v47 = vpop.f32.mrb[72].mxu0 }
0x1ee5   : > { %v9104_v43 = vadd.f32 %v4996_v41, %v9027_v40  ;;  %v9107_v10 = vadd.f32 %v5049_v47, %v9030_v17  ;;  %v4998_v61 = vpop.f32.mrb[89].mxu1  ;;  %v5051_v25 = vpop.f32.mrb[73].mxu0 }
0x1ee6   : > { %v9110_v1 = vadd.f32 %v4998_v61, %v9033_v11  ;;  %v9113_v50 = vadd.f32 %v5051_v25, %v9037_v19  ;;  %v5000_v8 = vpop.f32.mrb[90].mxu1  ;;  %v5053_v36 = vpop.f32.mrb[74].mxu0 }
0x1ee7   : > { %v5066_v15 = vmul.f32 %v9104_v43, %v9104_v43  ;;  %v5068_v48 = vmul.f32 %v9107_v10, %v9107_v10  ;;  %v9120_v58 = vadd.f32 %v5000_v8, %v9027_v40  ;;  %v9123_v26 = vadd.f32 %v5053_v36, %v9030_v17  ;;  %v5002_v29 = vpop.f32.mrb[91].mxu1  ;;  %v5055_v9 = vpop.f32.mrb[75].mxu0 }
0x1ee8   : > { %v5067_v46 = vmul.f32 %v9110_v1, %v9110_v1  ;;  %v5069_v23 = vmul.f32 %v9113_v50, %v9113_v50  ;;  %v9130_v39 = vadd.f32 %v5002_v29, %v9033_v11  ;;  %v9133_v13 = vadd.f32 %v5055_v9, %v9037_v19 }
0x1ee9   : > { %v5082_v40 = vmul.f32 %v5066_v15, %v9104_v43  ;;  %v5084_v31 = vmul.f32 %v5068_v48, %v9107_v10  ;;  %v5070_v17 = vmul.f32 %v9120_v58, %v9120_v58  ;;  %v5072_v28 = vmul.f32 %v9123_v26, %v9123_v26 }
0x1eea   : > { %v5083_v0 = vmul.f32 %v5067_v46, %v9110_v1  ;;  %v5085_v34 = vmul.f32 %v5069_v23, %v9113_v50  ;;  %v5071_v11 = vmul.f32 %v9130_v39, %v9130_v39  ;;  %v5073_v19 = vmul.f32 %v9133_v13, %v9133_v13 }
0x1eeb   : > { %v5098_v37 = vmul.f32 0.044715, %v5082_v40  ;;  %v5100_v42 = vmul.f32 0.044715, %v5084_v31  ;;  %v5086_v27 = vmul.f32 %v5070_v17, %v9120_v58  ;;  %v5088_v51 = vmul.f32 %v5072_v28, %v9123_v26 }
0x1eec   : > { %v5099_v62 = vmul.f32 0.044715, %v5083_v0  ;;  %v5101_v12 = vmul.f32 0.044715, %v5085_v34  ;;  %v5087_v30 = vmul.f32 %v5071_v11, %v9130_v39  ;;  %v5089_v63 = vmul.f32 %v5073_v19, %v9133_v13 }
0x1eed   : > { %v5114_v3 = vadd.f32 %v5098_v37, %v9104_v43  ;;  %v5116_v20 = vadd.f32 %v5100_v42, %v9107_v10  ;;  %v5102_v60 = vmul.f32 0.044715, %v5086_v27  ;;  %v5104_v22 = vmul.f32 0.044715, %v5088_v51 }
0x1eee   : > { %v5115_v32 = vadd.f32 %v5099_v62, %v9110_v1  ;;  %v5117_v18 = vadd.f32 %v5101_v12, %v9113_v50  ;;  %v5103_v35 = vmul.f32 0.044715, %v5087_v30  ;;  %v5105_v21 = vmul.f32 0.044715, %v5089_v63 }
0x1eef   : > { %v5130_v33 = vmul.f32 0.7978846, %v5114_v3  ;;  %v5132_v49 = vmul.f32 0.7978846, %v5116_v20  ;;  %v5118_v16 = vadd.f32 %v5102_v60, %v9120_v58  ;;  %v5120_v24 = vadd.f32 %v5104_v22, %v9123_v26 }
0x1ef0   : > { %v5131_v44 = vmul.f32 0.7978846, %v5115_v32  ;;  %v5133_v57 = vmul.f32 0.7978846, %v5117_v18  ;;  %v5119_v4 = vadd.f32 %v5103_v35, %v9130_v39  ;;  %v5121_v55 = vadd.f32 %v5105_v21, %v9133_v13 }
0x1ef1   : > { %7272 = vtanh.f32 %v5130_v33  ;;  %v5134_v5 = vmul.f32 0.7978846, %v5118_v16  ;;  %v5136_v53 = vmul.f32 0.7978846, %v5120_v24 }
0x1ef2   : > { %7274 = vtanh.f32 %v5132_v49  ;;  %v5135_v59 = vmul.f32 0.7978846, %v5119_v4  ;;  %v5137_v14 = vmul.f32 0.7978846, %v5121_v55 }
0x1ef3   : > { %7276 = vtanh.f32 %v5131_v44 }
0x1ef4   : > { %7278 = vtanh.f32 %v5133_v57 }
0x1ef5   : > { %7280 = vtanh.f32 %v5134_v5 }
0x1ef6   : > { %7282 = vtanh.f32 %v5136_v53 }
0x1ef7   : > { %7284 = vtanh.f32 %v5135_v59 }
0x1ef8   : > { %7286 = vtanh.f32 %v5137_v14 }
0x1efb   : > { %v7273_v54 = vpop.eup %7272 }
0x1efc   : > { %v7275_v56 = vpop.eup %7274  ;;  %v5162_v7 = vadd.f32 1.0, %v7273_v54 }
0x1efd   : > { %v7277_v45 = vpop.eup %7276  ;;  %v5164_v38 = vadd.f32 1.0, %v7275_v56 }
0x1efe   : > { %v7279_v52 = vpop.eup %7278  ;;  %v5163_v6 = vadd.f32 1.0, %v7277_v45  ;;  %v5178_v8 = vmul.f32 0.5, %v5162_v7 }
0x1eff   : > { %v7281_v41 = vpop.eup %7280  ;;  %v5165_v47 = vadd.f32 1.0, %v7279_v52  ;;  %v5180_v48 = vmul.f32 0.5, %v5164_v38  ;;  %v5568_v38 = vld [vmem:[%s9249_s15] sm:$0x1] }
0x1f00   : > { %v7283_v61 = vpop.eup %7282  ;;  %v5166_v25 = vadd.f32 1.0, %v7281_v41  ;;  %v5179_v46 = vmul.f32 0.5, %v5163_v6  ;;  %v5194_v0 = vmul.f32 %v5178_v8, %v9104_v43  ;;  %v5569_v6 = vld [vmem:[%s9250_s16] sm:$0x1] }
0x1f01   : > { %v7285_v36 = vpop.eup %7284  ;;  %v5168_v15 = vadd.f32 1.0, %v7283_v61  ;;  %v5181_v31 = vmul.f32 0.5, %v5165_v47  ;;  %v5196_v19 = vmul.f32 %v5180_v48, %v9107_v10 }
0x1f02   : > { %v7287_v29 = vpop.eup %7286  ;;  %v5167_v9 = vadd.f32 1.0, %v7285_v36  ;;  %v5182_v23 = vmul.f32 0.5, %v5166_v25  ;;  %v5195_v42 = vmul.f32 %v5179_v46, %v9110_v1  ;;  %v6093_v1 = vld [vmem:[%s9246_s12 + $0x1] ss:$0 sm:$0xff] }
0x1f03   : > { %v5169_v40 = vadd.f32 1.0, %v7287_v29  ;;  %v5184_v17 = vmul.f32 0.5, %v5168_v15  ;;  %v5197_v62 = vmul.f32 %v5181_v31, %v9113_v50 }
0x1f04   : > { %v5183_v28 = vmul.f32 0.5, %v5167_v9  ;;  %v5198_v34 = vmul.f32 %v5182_v23, %v9120_v58 }
0x1f05   : > { %v5185_v11 = vmul.f32 0.5, %v5169_v40  ;;  %v5200_v37 = vmul.f32 %v5184_v17, %v9123_v26  ;;  %v5586_v40 = vld [vmem:[%s9251_s17] sm:$0x1] }
0x1f06   : > { %v5199_v27 = vmul.f32 %v5183_v28, %v9130_v39  ;;  %v5206_v51 = vpack.c.bf16 %v5198_v34, %v5194_v0  ;;  %v5587_v17 = vld [vmem:[%s9252_s18] sm:$0x1] }
0x1f07   : > { %v5201_v12 = vmul.f32 %v5185_v11, %v9133_v13  ;;  %v5208_v30 = vpack.c.bf16 %v5200_v37, %v5196_v19 }
0x1f08   : > { %v5207_v63 = vpack.c.bf16 %v5199_v27, %v5195_v42 }
0x1f09   : > { %v5209_v3 = vpack.c.bf16 %v5201_v12, %v5197_v62 }
0x1f0a   : > { %5514 = vmatprep.mubr.bf16.mxu1 %v5207_v63 }
0x1f0b   : > { %5560 = vmatprep.mubr.bf16.mxu0 %v5209_v3  ;;  %5515 = vmatmul.mubr.bf16.gmra.mrb[96].mxu1 %v5206_v51 }
0x1f0c   : > { %5561 = vmatmul.mubr.bf16.gmra.mrb[80].mxu0 %v5208_v30 }
0x1f46   : > { %v6389_v43 = vpop.f32.mrb[92].mxu1 }
0x1f47   : > { %v6417_v10 = vpop.f32.mrb[76].mxu0  ;;  %v6390_v58 = vpop.f32.mrb[93].mxu1 }
0x1f48   : > { %v6391_v26 = vadd.f32 %v6390_v58, %v6389_v43  ;;  %v6418_v39 = vpop.f32.mrb[77].mxu0  ;;  %v6392_v20 = vpop.f32.mrb[94].mxu1 }
0x1f49   : > { %v6419_v50 = vadd.f32 %v6418_v39, %v6417_v10  ;;  %v6420_v60 = vpop.f32.mrb[78].mxu0  ;;  %v6393_v13 = vpop.f32.mrb[95].mxu1 }
0x1f4a   : > { %v5510_v22 = vadd.f32 %v6391_v26, %v6093_v1  ;;  %v6421_v32 = vpop.f32.mrb[79].mxu0 }
0x1f4c   : > { %v5556_v18 = vadd.f32 %v6419_v50, %v5510_v22 }
0x1f4e   : > { %v5567_v35 = vadd.f32 %v5556_v18, %v8784_v2 }
0x1f50   : > { %v5571_v21 = vsel %vm5570_vm4, %v5567_v35, 0.0 }
0x1f51   : > { %5572 = vadd.xlane.f32.xlu0 %v5571_v21 }
0x1fde   : > { %v5573_v33 = vpop.xlane.xlu0 %5572  ;;  %v6395_v49 = vpop.f32.mrb[96].mxu1 }
0x1fdf   : > { %v6423_v16 = vpop.f32.mrb[80].mxu0  ;;  %v5574_v24 = vmul.f32 0.0078125, %v5573_v33  ;;  %v6396_v44 = vpop.f32.mrb[97].mxu1 }
0x1fe0   : > { %v6424_v57 = vpop.f32.mrb[81].mxu0  ;;  %v6398_v4 = vpop.f32.mrb[98].mxu1 }
0x1fe1   : > { %v5575_v55 = vsub.f32 %v5567_v35, %v5574_v24  ;;  %v6426_v5 = vpop.f32.mrb[82].mxu0  ;;  %v6399_v53 = vpop.f32.mrb[99].mxu1 }
0x1fe2   : > { %v6427_v59 = vpop.f32.mrb[83].mxu0 }
0x1fe3   : > { %v5576_v14 = vmul.f32 %v5575_v55, %v5575_v55 }
0x1fe5   : > { %v5577_v54 = vsel %vm5570_vm4, %v5576_v14, 0.0 }
0x1fe6   : > { %5578 = vadd.xlane.f32.xlu1 %v5577_v54 }
0x2073   : > { %v5579_v56 = vpop.xlane.xlu1 %5578 }
0x2074   : > { %v5580_v2 = vmul.f32 0.0078125, %v5579_v56 }
0x2076   : > { %v5581_v7 = vadd.f32 1e-12, %v5580_v2 }
0x2078   : > { %7288 = vrsqrt.f32 %v5581_v7 }
0x2082   : > { %v7289_v45 = vpop.eup %7288 }
0x2083   : > { %v5583_v52 = vmul.f32 %v7289_v45, %v5575_v55 }
0x2085   : > { %v5584_v41 = vmul.f32 %v5583_v52, %v5568_v38 }
0x2087   : > { %v5585_v47 = vadd.f32 %v5584_v41, %v5569_v6 }
0x2089   : > { %v5588_v61 = vsel %vm5570_vm4, %v5585_v47, 0.0 }
0x208a   : > { %5589 = vadd.xlane.f32.xlu0 %v5588_v61 }
0x2117   : > { %v5590_v25 = vpop.xlane.xlu0 %5589 }
0x2118   : > { %v5591_v8 = vmul.f32 0.0078125, %v5590_v25 }
0x211a   : > { %v5592_v36 = vsub.f32 %v5585_v47, %v5591_v8 }
0x211c   : > { %v5593_v15 = vmul.f32 %v5592_v36, %v5592_v36 }
0x211e   : > { %v5594_v48 = vsel %vm5570_vm4, %v5593_v15, 0.0 }
0x211f   : > { %5595 = vadd.xlane.f32.xlu1 %v5594_v48 }
0x21ac   : > { %v5596_v29 = vpop.xlane.xlu1 %5595 }
0x21ad   : > { %v5597_v9 = vmul.f32 0.0078125, %v5596_v29 }
0x21af   : > { %v5598_v46 = vadd.f32 1e-05, %v5597_v9 }
0x21b1   : > { %7290 = vrsqrt.f32 %v5598_v46 }
0x21bb   : > { %v7291_v23 = vpop.eup %7290 }
0x21bc   : > { %v5600_v31 = vmul.f32 %v7291_v23, %v5592_v36 }
0x21be   : > { %v5601_v28 = vmul.f32 %v5600_v31, %v5586_v40 }
0x21c0   : > { %v5602_v0 = vadd.f32 %v5601_v28, %v5587_v17 }
0x21c2   : > { %5603 = vst [vmem:[%s597_s22] sm:$0x1] %v5602_v0 }
0x21c3   : > { %7305 = shalt.err (!%p7302_p3)
}
0x21c4   : > { %s7306_s23 = scalar_lea.hbm %s9192_s26, 16  ;;  %s7310_s21 = scalar_lea.hbm %s9292_s27, 32 }
0x21c5   : > { %p7307_p4 = scmp.ne.s32.totalorder %s9192_s26, %s7306_s23  ;;  %p7311_p9 = scmp.lt.u32.totalorder %s9192_s26, %s9292_s27 }
0x21c6   : > { %p7312_p10 = scmp.lt.u32.totalorder %s7310_s21, %s7306_s23  ;;  %p7314_p12 = scmp.lt.u32.totalorder %s7306_s23, %s9192_s26 }
0x21c7   : > { %p7308_p7 = pnand %p7307_p4, %p7500_p5 }
0x21c8   : > { %p7313_p11 = por %p7312_p10, %p7311_p9 }
0x21c9   : > { %p7309_p8 = pneg %p7308_p7 }
0x21ca   : > { %p7315_p13 = por %p7314_p12, %p7313_p11 }
0x21cc   : > { %p7316_p0 = pnand %p7315_p13, %p7309_p8 }
0x21ce   : > { %7319 = shalt.err (!%p7316_p0)
}
0x21cf   : > { %6654 = dma.vmem_to_hbm [thread:$0]  (%p7500_p5), %s9194_s28, 16, %s9192_s26, %s5605_s25  }
0x21d0 PF: > { %s9293_s24 = sld [smem:[#allocation7_spill]]  ;;  %s9294_s20 = sld [smem:[#allocation5_spill]] }
0x21d6   : > { %p6660_p1 = scmp.ge.s32.totalorder %s9293_s24, 2  ;;  %s5629_s0 = sand.u32 1, %s9294_s20  }
0x21d7   : > { %s5630_s22 = scalar_lea.sflag [#allocation3], %s5629_s0 }
0x21d8   : > { %p6657_p2 = pnand %p6660_p1, %p7504_p6 }
0x21da   : > { %7337 = dma.done.wait (!%p6657_p2), %s5630_s22, 16  }
0x21db   : > { %7339 = vsyncadd (!%p6657_p2), %s5630_s22, 4294967280  ;;  %s9296_s21 = sld [smem:[#allocation8_spill]]  ;;  %s9297_s23 = sld [smem:[#allocation6_spill]] }
0x21dc   : > { %s9298_s20 = sld [smem:[#allocation9_spill]]  ;;  %s9299_s0 = smov %s7346_s30 }
0x21e1   : > { %p29_p3 = scmp.ge.s32.totalorder %s9296_s21, 4   ;;  %s9300_s30 = smov %s9297_s23 }
0x21e3   :  { %31 = sbr.rel (!%p29_p3) target bundleno = 9 (0x9), region = 143 }
0x21ea   :  { %5634 = vsyncpa [#allocation3], 1 }
0x21eb   :  { %5636 = vsyncpa [#allocation3 + $0x1], 1 }

</bundles_post_ra>
